<compile_context>
chip_gen: v7x
topology: tpu7x:2x2x1
jax: 0.10.0
libtpu: 0.0.40
codegen_flags: <defaults>
</compile_context>

<pallas_src>
import numpy as np
import jax
import jax.numpy as jnp
from jax.experimental import pallas as pl
from jax.experimental.pallas import tpu as pltpu

EPS = 1e-5


# ----------------------------------------------------------------------------
# In-kernel helpers (trace-time; all data stays in VMEM / vregs)
# ----------------------------------------------------------------------------
def _conv3_in_relu(x, w_ref, b_ref, row_idx, extra=None):
    """Conv1d(k=3, pad=1) + InstanceNorm1d(affine=False) + ReLU on a [L, C] tile.

    Taps are folded into one wide-K matmul: operand = [x(l-1)|x(l)|x(l+1)]
    ([L, 3C], single bf16 cast); `w_ref` holds the conv weight reshaped
    host-side to [3C, Cout].  The zero-padded halo is built with pltpu.roll
    (XLU) + a single-row mask.  `extra` is an optional pre-norm additive term
    (rank-1 time-embedding contribution in enc1).
    """
    L = x.shape[0]
    xm1 = jnp.where(row_idx == 0, 0.0, pltpu.roll(x, shift=1, axis=0))          # x[l-1]
    xp1 = jnp.where(row_idx == L - 1, 0.0, pltpu.roll(x, shift=L - 1, axis=0))  # x[l+1]
    xw = jnp.concatenate([xm1, x, xp1], axis=-1).astype(jnp.bfloat16)           # [L, 3C]
    y = jnp.dot(xw, w_ref[...], preferred_element_type=jnp.float32) + b_ref[...]
    if extra is not None:
        y = y + extra
    # InstanceNorm1d (affine=False, biased variance over length), fp32 stats.
    mean = jnp.mean(y, axis=0, keepdims=True)
    var = jnp.mean(jnp.square(y - mean), axis=0, keepdims=True)
    y = (y - mean) * jax.lax.rsqrt(var + EPS)
    return jnp.maximum(y, 0.0)


def _double_conv(x, w1, b1, w2, b2, row_idx, extra=None):
    h = _conv3_in_relu(x, w1, b1, row_idx, extra)
    return _conv3_in_relu(h, w2, b2, row_idx)


def _maxpool2(x):
    # MaxPool1d(2): pairwise max over adjacent rows (sublane interleave, no matmul).
    L, C = x.shape
    return jnp.max(jnp.reshape(x, (L // 2, 2, C)), axis=1)


# ----------------------------------------------------------------------------
# The fused kernel: whole forward pass for one batch element
# ----------------------------------------------------------------------------
def _unet_kernel(x_ref, t_ref, up2_ref, up4_ref, up8_ref, *refs):
    o_ref = refs[-1]
    p = refs[:-1]
    tw1, tb1, tw2, tb2 = p[0], p[1], p[2], p[3]
    e1w1x, e1w1t, e1b1, e1w2, e1b2 = p[4], p[5], p[6], p[7], p[8]
    blk = [p[9 + 4 * i: 9 + 4 * (i + 1)] for i in range(6)]   # enc2..dec1: (w1,b1,w2,b2)
    wf_t, bfin = p[33], p[34]

    L = x_ref.shape[1]
    # Row-index columns, built ONCE per length scale and reused by every conv.
    row_l = jax.lax.broadcasted_iota(jnp.int32, (L, 1), 0)
    row_l2 = jax.lax.broadcasted_iota(jnp.int32, (L // 2, 1), 0)
    row_l4 = jax.lax.broadcasted_iota(jnp.int32, (L // 4, 1), 0)
    row_l8 = jax.lax.broadcasted_iota(jnp.int32, (L // 8, 1), 0)

    x0 = x_ref[0]                                   # [L, Cin] fp32

    # ---- time MLP: Linear(1,E) -> SiLU -> Linear(E,E), folded in -----------
    t_val = t_ref[0]                                # [1, 1]
    h = t_val * tw1[...] + tb1[...]                 # K=1 linear == VPU scale
    h = h * (1.0 / (1.0 + jnp.exp(-h)))             # SiLU (exp on EUP)
    temb = jnp.dot(h, tw2[...], preferred_element_type=jnp.float32) + tb2[...]

    # Broadcast t_emb is constant over L -> its conv1 contribution is rank-1:
    # per-tap [1,E]@[E,32] dots + corrections at l=0 / l=L-1 (zero-padded taps).
    t_m1 = jnp.dot(temb, e1w1t[0], preferred_element_type=jnp.float32)
    t_c = jnp.dot(temb, e1w1t[1], preferred_element_type=jnp.float32)
    t_p1 = jnp.dot(temb, e1w1t[2], preferred_element_type=jnp.float32)
    temb_bias = jnp.where(row_l == 0, t_c + t_p1,
                          jnp.where(row_l == L - 1, t_m1 + t_c, t_m1 + t_c + t_p1))

    # ---- encoder ------------------------------------------------------------
    e1 = _double_conv(x0, e1w1x, e1b1, e1w2, e1b2, row_l, extra=temb_bias)   # [L,   32]
    e2 = _double_conv(_maxpool2(e1), *blk[0], row_l2)                        # [L/2, 64]
    e3 = _double_conv(_maxpool2(e2), *blk[1], row_l4)                        # [L/4, 128]
    b = _double_conv(_maxpool2(e3), *blk[2], row_l8)                         # [L/8, 256]

    # ---- decoder (linear upsample = small bf16 interp-matrix matmul) -------
    b_up = jnp.dot(up2_ref[...], b.astype(jnp.bfloat16),
                   preferred_element_type=jnp.float32)
    d3 = _double_conv(jnp.concatenate([b_up, e3], axis=-1), *blk[3], row_l4)   # [L/4, 128]
    d3_up = jnp.dot(up4_ref[...], d3.astype(jnp.bfloat16),
                    preferred_element_type=jnp.float32)
    d2 = _double_conv(jnp.concatenate([d3_up, e2], axis=-1), *blk[4], row_l2)  # [L/2, 64]
    d2_up = jnp.dot(up8_ref[...], d2.astype(jnp.bfloat16),
                    preferred_element_type=jnp.float32)
    d1 = _double_conv(jnp.concatenate([d2_up, e1], axis=-1), *blk[5], row_l)   # [L,   32]

    # ---- final 1x1 conv, fused into a lane-dense [out_ch, L] store ---------
    d1t = jnp.transpose(d1).astype(jnp.bfloat16)    # [32, L]
    out = jnp.dot(wf_t[...], d1t, preferred_element_type=jnp.float32) + bfin[...]
    o_ref[0] = out                                  # [out_ch, L] (NCL layout)


# ----------------------------------------------------------------------------
# Host-side helpers
# ----------------------------------------------------------------------------
def _const_index_map(ndim):
    return lambda i: (0,) * ndim


def _linear_upsample_matrix(lin, lout):
    # nn.Upsample(scale_factor=2, mode='linear', align_corners=True) as a matrix.
    m = np.zeros((lout, lin), dtype=np.float32)
    if lin == 1:
        m[:, 0] = 1.0
    else:
        scale = (lin - 1) / (lout - 1)
        for j in range(lout):
            pos = j * scale
            i0 = min(int(np.floor(pos)), lin - 1)
            i1 = min(i0 + 1, lin - 1)
            frac = pos - i0
            m[j, i0] += 1.0 - frac
            m[j, i1] += frac
    return jnp.asarray(m).astype(jnp.bfloat16)   # interp weights are bf16-safe here


def forward(flat_params, x_ncl, t):
    """x_ncl: [B, C_in, L] (PyTorch NCL layout), t: [B] time steps.
    Returns [B, out_channels, L] (already NCL -- the kernel stores lane-dense)."""
    B, Cin, L = x_ncl.shape
    # TODO(synk): the F.pad length-fixup branch of the PyTorch model is omitted;
    # L % 8 == 0 guarantees the upsampled lengths always match the skips exactly.
    assert L % 8 == 0, "L must be divisible by 8 (3 pool/upsample levels)"
    out_ch = flat_params[-2].shape[0]

    x = jnp.transpose(x_ncl, (0, 2, 1)).astype(jnp.float32)     # [B, L, Cin]
    t3 = jnp.reshape(t, (B, 1, 1)).astype(jnp.float32)
    up2 = _linear_upsample_matrix(L // 8, L // 4)
    up4 = _linear_upsample_matrix(L // 4, L // 2)
    up8 = _linear_upsample_matrix(L // 2, L)

    inputs = [x, t3, up2, up4, up8, *flat_params]
    in_specs = [
        pl.BlockSpec((1, L, Cin), lambda i: (i, 0, 0)),
        pl.BlockSpec((1, 1, 1), lambda i: (i, 0, 0)),
    ]
    for a in inputs[2:]:
        in_specs.append(pl.BlockSpec(a.shape, _const_index_map(a.ndim)))

    # TODO(synk): for long sequences, tile the length axis (grid=(B, L//TL) with a
    # 1-row halo via roll) and single-buffer constant weight inputs
    # (pipeline_mode=pl.Buffered(1)) so the working set fits v7x's 64 MiB VMEM.
    out = pl.pallas_call(
        _unet_kernel,
        out_shape=jax.ShapeDtypeStruct((B, out_ch, L), jnp.float32),
        grid=(B,),
        in_specs=in_specs,
        out_specs=pl.BlockSpec((1, out_ch, L), lambda i: (i, 0, 0)),
        compiler_params=pltpu.CompilerParams(
            dimension_semantics=("parallel",),
            vmem_limit_bytes=32 * 1024 * 1024),
    )(*inputs)
    return out                                                  # [B, out_ch, L]


# ----------------------------------------------------------------------------
# Parameter construction (deterministic, synthetic) and kernel-ready packing
# ----------------------------------------------------------------------------
def _init_conv(key, cin, cout, k):
    kw, kb = jax.random.split(key)
    scale = 1.0 / np.sqrt(cin * k)
    w = jax.random.normal(kw, (k, cin, cout), jnp.float32) * scale
    b = jax.random.normal(kb, (1, cout), jnp.float32) * scale
    return w, b


def init_params(key, in_channels=2, out_channels=1, time_emb_dim=32):
    keys = jax.random.split(key, 20)
    ki = iter(keys)
    p = {}
    p["t_w1"] = jax.random.normal(next(ki), (1, time_emb_dim), jnp.float32)
    p["t_b1"] = jax.random.normal(next(ki), (1, time_emb_dim), jnp.float32) * 0.1
    p["t_w2"] = jax.random.normal(next(ki), (time_emb_dim, time_emb_dim),
                                  jnp.float32) / np.sqrt(time_emb_dim)
    p["t_b2"] = jax.random.normal(next(ki), (1, time_emb_dim), jnp.float32) * 0.1
    total = in_channels + time_emb_dim
    dims = {"enc1": (total, 32), "enc2": (32, 64), "enc3": (64, 128),
            "bottleneck": (128, 256), "dec3": (256 + 128, 128),
            "dec2": (128 + 64, 64), "dec1": (64 + 32, 32)}
    for name, (cin, cout) in dims.items():
        p[name] = [_init_conv(next(ki), cin, cout, 3),
                   _init_conv(next(ki), cout, cout, 3)]
    p["final"] = _init_conv(next(ki), 32, out_channels, 1)
    return p


def prepare_params(p, in_channels=2):
    """Flatten params into the exact argument order consumed by the fused kernel.

    Conv weights [3, Cin, Cout] are reshaped to [3*Cin, Cout] (matching the
    in-kernel [x(l-1)|x(l)|x(l+1)] operand) and cast to bf16; biases stay f32.
    enc1's first conv is split so the time-embedding channels use the rank-1
    path; the final 1x1 conv is stored transposed ([out_ch, 32]) for the
    lane-dense output store.  NOTE for real checkpoints: torch Conv1d weights
    [Cout, Cin, k] map here as w[k, Cin, Cout] with NO kernel flip
    (cross-correlation).
    """
    bf16 = jnp.bfloat16

    def fold_taps(w):                               # [3, Ci, Co] -> [3*Ci, Co] bf16
        k, ci, co = w.shape
        return jnp.reshape(w, (k * ci, co)).astype(bf16)

    flat = [p["t_w1"], p["t_b1"], p["t_w2"], p["t_b2"]]
    (w1, b1), (w2, b2) = p["enc1"]
    flat += [fold_taps(w1[:, :in_channels, :]),     # raw-input taps  [3*Cin, 32]
             w1[:, in_channels:, :],                # t_emb part [3, E, 32] (rank-1)
             b1, fold_taps(w2), b2]
    for name in ("enc2", "enc3", "bottleneck", "dec3", "dec2", "dec1"):
        (w1, b1), (w2, b2) = p[name]
        flat += [fold_taps(w1), b1, fold_taps(w2), b2]
    wf, bfin = p["final"]                           # [1, 32, out_ch], [1, out_ch]
    flat += [jnp.transpose(wf[0]).astype(bf16),     # [out_ch, 32]
             jnp.transpose(bfin)]                   # [out_ch, 1]
    return tuple(flat)


# ----------------------------------------------------------------------------
if __name__ == "__main__":
    B, C_IN, L = 2, 2, 16
    key = jax.random.PRNGKey(0)
    k_p, k_x, k_t = jax.random.split(key, 3)

    params = init_params(k_p, in_channels=C_IN, out_channels=1, time_emb_dim=32)
    flat = prepare_params(params, in_channels=C_IN)

    x = jax.random.normal(k_x, (B, C_IN, L), jnp.float32)       # PyTorch NCL
    t = jax.random.uniform(k_t, (B,), jnp.float32) * 10.0       # time steps

    fwd = jax.jit(forward)
    out = jax.block_until_ready(fwd(flat, x, t))

    assert out.shape == (B, 1, L), out.shape
    assert jnp.all(jnp.isfinite(out))
    print("KERNEL_OK")
</pallas_src>

<mosaic_0001>
module attributes {stable_mosaic.version = 11 : i64} {
  func.func @_unet_kernel(%arg0: i32, %arg1: memref<1x16x2xf32, #tpu.memory_space<vmem>>, %arg2: memref<1x1x1xf32, #tpu.memory_space<vmem>>, %arg3: memref<4x2xbf16, #tpu.memory_space<vmem>>, %arg4: memref<8x4xbf16, #tpu.memory_space<vmem>>, %arg5: memref<16x8xbf16, #tpu.memory_space<vmem>>, %arg6: memref<1x32xf32, #tpu.memory_space<vmem>>, %arg7: memref<1x32xf32, #tpu.memory_space<vmem>>, %arg8: memref<32x32xf32, #tpu.memory_space<vmem>>, %arg9: memref<1x32xf32, #tpu.memory_space<vmem>>, %arg10: memref<6x32xbf16, #tpu.memory_space<vmem>>, %arg11: memref<3x32x32xf32, #tpu.memory_space<vmem>>, %arg12: memref<1x32xf32, #tpu.memory_space<vmem>>, %arg13: memref<96x32xbf16, #tpu.memory_space<vmem>>, %arg14: memref<1x32xf32, #tpu.memory_space<vmem>>, %arg15: memref<96x64xbf16, #tpu.memory_space<vmem>>, %arg16: memref<1x64xf32, #tpu.memory_space<vmem>>, %arg17: memref<192x64xbf16, #tpu.memory_space<vmem>>, %arg18: memref<1x64xf32, #tpu.memory_space<vmem>>, %arg19: memref<192x128xbf16, #tpu.memory_space<vmem>>, %arg20: memref<1x128xf32, #tpu.memory_space<vmem>>, %arg21: memref<384x128xbf16, #tpu.memory_space<vmem>>, %arg22: memref<1x128xf32, #tpu.memory_space<vmem>>, %arg23: memref<384x256xbf16, #tpu.memory_space<vmem>>, %arg24: memref<1x256xf32, #tpu.memory_space<vmem>>, %arg25: memref<768x256xbf16, #tpu.memory_space<vmem>>, %arg26: memref<1x256xf32, #tpu.memory_space<vmem>>, %arg27: memref<1152x128xbf16, #tpu.memory_space<vmem>>, %arg28: memref<1x128xf32, #tpu.memory_space<vmem>>, %arg29: memref<384x128xbf16, #tpu.memory_space<vmem>>, %arg30: memref<1x128xf32, #tpu.memory_space<vmem>>, %arg31: memref<576x64xbf16, #tpu.memory_space<vmem>>, %arg32: memref<1x64xf32, #tpu.memory_space<vmem>>, %arg33: memref<192x64xbf16, #tpu.memory_space<vmem>>, %arg34: memref<1x64xf32, #tpu.memory_space<vmem>>, %arg35: memref<288x32xbf16, #tpu.memory_space<vmem>>, %arg36: memref<1x32xf32, #tpu.memory_space<vmem>>, %arg37: memref<96x32xbf16, #tpu.memory_space<vmem>>, %arg38: memref<1x32xf32, #tpu.memory_space<vmem>>, %arg39: memref<1x32xbf16, #tpu.memory_space<vmem>>, %arg40: memref<1x1xf32, #tpu.memory_space<vmem>>, %arg41: memref<1x1x16xf32, #tpu.memory_space<vmem>>) attributes {dimension_semantics = [#tpu.dimension_semantics<parallel>], iteration_bounds = array<i64: 2>, scalar_prefetch = 0 : i64, scratch_operands = 0 : i64, tpu.core_type = #tpu.core_type<tc>, window_params = [{transform_indices = @transform_0, window_bounds = array<i64: 1, 16, 2>}, {transform_indices = @transform_1, window_bounds = array<i64: 1, 1, 1>}, {pipeline_mode = #tpu.pipeline_mode<synchronous>, transform_indices = @transform_2, window_bounds = array<i64: 4, 2>}, {pipeline_mode = #tpu.pipeline_mode<synchronous>, transform_indices = @transform_3, window_bounds = array<i64: 8, 4>}, {pipeline_mode = #tpu.pipeline_mode<synchronous>, transform_indices = @transform_4, window_bounds = array<i64: 16, 8>}, {pipeline_mode = #tpu.pipeline_mode<synchronous>, transform_indices = @transform_5, window_bounds = array<i64: 1, 32>}, {pipeline_mode = #tpu.pipeline_mode<synchronous>, transform_indices = @transform_6, window_bounds = array<i64: 1, 32>}, {pipeline_mode = #tpu.pipeline_mode<synchronous>, transform_indices = @transform_7, window_bounds = array<i64: 32, 32>}, {pipeline_mode = #tpu.pipeline_mode<synchronous>, transform_indices = @transform_8, window_bounds = array<i64: 1, 32>}, {pipeline_mode = #tpu.pipeline_mode<synchronous>, transform_indices = @transform_9, window_bounds = array<i64: 6, 32>}, {pipeline_mode = #tpu.pipeline_mode<synchronous>, transform_indices = @transform_10, window_bounds = array<i64: 3, 32, 32>}, {pipeline_mode = #tpu.pipeline_mode<synchronous>, transform_indices = @transform_11, window_bounds = array<i64: 1, 32>}, {pipeline_mode = #tpu.pipeline_mode<synchronous>, transform_indices = @transform_12, window_bounds = array<i64: 96, 32>}, {pipeline_mode = #tpu.pipeline_mode<synchronous>, transform_indices = @transform_13, window_bounds = array<i64: 1, 32>}, {pipeline_mode = #tpu.pipeline_mode<synchronous>, transform_indices = @transform_14, window_bounds = array<i64: 96, 64>}, {pipeline_mode = #tpu.pipeline_mode<synchronous>, transform_indices = @transform_15, window_bounds = array<i64: 1, 64>}, {pipeline_mode = #tpu.pipeline_mode<synchronous>, transform_indices = @transform_16, window_bounds = array<i64: 192, 64>}, {pipeline_mode = #tpu.pipeline_mode<synchronous>, transform_indices = @transform_17, window_bounds = array<i64: 1, 64>}, {pipeline_mode = #tpu.pipeline_mode<synchronous>, transform_indices = @transform_18, window_bounds = array<i64: 192, 128>}, {pipeline_mode = #tpu.pipeline_mode<synchronous>, transform_indices = @transform_19, window_bounds = array<i64: 1, 128>}, {pipeline_mode = #tpu.pipeline_mode<synchronous>, transform_indices = @transform_20, window_bounds = array<i64: 384, 128>}, {pipeline_mode = #tpu.pipeline_mode<synchronous>, transform_indices = @transform_21, window_bounds = array<i64: 1, 128>}, {pipeline_mode = #tpu.pipeline_mode<synchronous>, transform_indices = @transform_22, window_bounds = array<i64: 384, 256>}, {pipeline_mode = #tpu.pipeline_mode<synchronous>, transform_indices = @transform_23, window_bounds = array<i64: 1, 256>}, {pipeline_mode = #tpu.pipeline_mode<synchronous>, transform_indices = @transform_24, window_bounds = array<i64: 768, 256>}, {pipeline_mode = #tpu.pipeline_mode<synchronous>, transform_indices = @transform_25, window_bounds = array<i64: 1, 256>}, {pipeline_mode = #tpu.pipeline_mode<synchronous>, transform_indices = @transform_26, window_bounds = array<i64: 1152, 128>}, {pipeline_mode = #tpu.pipeline_mode<synchronous>, transform_indices = @transform_27, window_bounds = array<i64: 1, 128>}, {pipeline_mode = #tpu.pipeline_mode<synchronous>, transform_indices = @transform_28, window_bounds = array<i64: 384, 128>}, {pipeline_mode = #tpu.pipeline_mode<synchronous>, transform_indices = @transform_29, window_bounds = array<i64: 1, 128>}, {pipeline_mode = #tpu.pipeline_mode<synchronous>, transform_indices = @transform_30, window_bounds = array<i64: 576, 64>}, {pipeline_mode = #tpu.pipeline_mode<synchronous>, transform_indices = @transform_31, window_bounds = array<i64: 1, 64>}, {pipeline_mode = #tpu.pipeline_mode<synchronous>, transform_indices = @transform_32, window_bounds = array<i64: 192, 64>}, {pipeline_mode = #tpu.pipeline_mode<synchronous>, transform_indices = @transform_33, window_bounds = array<i64: 1, 64>}, {pipeline_mode = #tpu.pipeline_mode<synchronous>, transform_indices = @transform_34, window_bounds = array<i64: 288, 32>}, {pipeline_mode = #tpu.pipeline_mode<synchronous>, transform_indices = @transform_35, window_bounds = array<i64: 1, 32>}, {pipeline_mode = #tpu.pipeline_mode<synchronous>, transform_indices = @transform_36, window_bounds = array<i64: 96, 32>}, {pipeline_mode = #tpu.pipeline_mode<synchronous>, transform_indices = @transform_37, window_bounds = array<i64: 1, 32>}, {pipeline_mode = #tpu.pipeline_mode<synchronous>, transform_indices = @transform_38, window_bounds = array<i64: 1, 32>}, {pipeline_mode = #tpu.pipeline_mode<synchronous>, transform_indices = @transform_39, window_bounds = array<i64: 1, 1>}, {transform_indices = @transform_40, window_bounds = array<i64: 1, 1, 16>}]} {
    %0 = tpu.iota {dimensions = array<i32: 0>} : vector<16x1xi32>
    %1 = tpu.iota {dimensions = array<i32: 0>} : vector<8x1xi32>
    %2 = tpu.iota {dimensions = array<i32: 0>} : vector<4x1xi32>
    %3 = tpu.iota {dimensions = array<i32: 0>} : vector<2x1xi32>
    %c0 = arith.constant 0 : index
    %c0_0 = arith.constant 0 : index
    %c0_1 = arith.constant 0 : index
    %4 = vector.load %arg1[%c0, %c0_0, %c0_1] : memref<1x16x2xf32, #tpu.memory_space<vmem>>, vector<1x16x2xf32>
    %5 = vector.shape_cast %4 : vector<1x16x2xf32> to vector<16x2xf32>
    %c0_2 = arith.constant 0 : index
    %c0_3 = arith.constant 0 : index
    %c0_4 = arith.constant 0 : index
    %6 = vector.load %arg2[%c0_2, %c0_3, %c0_4] : memref<1x1x1xf32, #tpu.memory_space<vmem>>, vector<1x1x1xf32>
    %7 = vector.shape_cast %6 : vector<1x1x1xf32> to vector<1x1xf32>
    %c0_5 = arith.constant 0 : index
    %c0_6 = arith.constant 0 : index
    %8 = vector.load %arg6[%c0_5, %c0_6] : memref<1x32xf32, #tpu.memory_space<vmem>>, vector<1x32xf32>
    %9 = vector.broadcast %7 : vector<1x1xf32> to vector<1x32xf32>
    %10 = arith.mulf %9, %8 : vector<1x32xf32>
    %c0_7 = arith.constant 0 : index
    %c0_8 = arith.constant 0 : index
    %11 = vector.load %arg7[%c0_7, %c0_8] : memref<1x32xf32, #tpu.memory_space<vmem>>, vector<1x32xf32>
    %12 = arith.addf %10, %11 : vector<1x32xf32>
    %cst = arith.constant 0.000000e+00 : f32
    %13 = vector.broadcast %cst : f32 to vector<1x32xf32>
    %14 = arith.subf %13, %12 : vector<1x32xf32>
    %15 = math.exp %14 : vector<1x32xf32>
    %cst_9 = arith.constant 1.000000e+00 : f32
    %16 = vector.broadcast %cst_9 : f32 to vector<1x32xf32>
    %17 = arith.addf %16, %15 : vector<1x32xf32>
    %cst_10 = arith.constant 1.000000e+00 : f32
    %18 = vector.broadcast %cst_10 : f32 to vector<1x32xf32>
    %19 = arith.divf %18, %17 : vector<1x32xf32>
    %20 = arith.mulf %12, %19 : vector<1x32xf32>
    %c0_11 = arith.constant 0 : index
    %c0_12 = arith.constant 0 : index
    %21 = vector.load %arg8[%c0_11, %c0_12] : memref<32x32xf32, #tpu.memory_space<vmem>>, vector<32x32xf32>
    %cst_13 = arith.constant dense<0.000000e+00> : vector<1x32xf32>
    %22 = tpu.matmul %20, %21, %cst_13 {dimension_numbers = #tpu.dot_dimension_numbers<[1], [0], [0], [1], [0, 0, 1, 1], [], []>} : vector<1x32xf32>, vector<32x32xf32>, vector<1x32xf32> -> vector<1x32xf32>
    %c0_14 = arith.constant 0 : index
    %c0_15 = arith.constant 0 : index
    %23 = vector.load %arg9[%c0_14, %c0_15] : memref<1x32xf32, #tpu.memory_space<vmem>>, vector<1x32xf32>
    %24 = arith.addf %22, %23 : vector<1x32xf32>
    %c0_16 = arith.constant 0 : index
    %c0_17 = arith.constant 0 : index
    %c0_18 = arith.constant 0 : index
    %25 = vector.load %arg11[%c0_16, %c0_17, %c0_18] : memref<3x32x32xf32, #tpu.memory_space<vmem>>, vector<1x32x32xf32>
    %26 = vector.shape_cast %25 : vector<1x32x32xf32> to vector<32x32xf32>
    %cst_19 = arith.constant dense<0.000000e+00> : vector<1x32xf32>
    %27 = tpu.matmul %24, %26, %cst_19 {dimension_numbers = #tpu.dot_dimension_numbers<[1], [0], [0], [1], [0, 0, 1, 1], [], []>} : vector<1x32xf32>, vector<32x32xf32>, vector<1x32xf32> -> vector<1x32xf32>
    %c1 = arith.constant 1 : index
    %c0_20 = arith.constant 0 : index
    %c0_21 = arith.constant 0 : index
    %28 = vector.load %arg11[%c1, %c0_20, %c0_21] : memref<3x32x32xf32, #tpu.memory_space<vmem>>, vector<1x32x32xf32>
    %29 = vector.shape_cast %28 : vector<1x32x32xf32> to vector<32x32xf32>
    %cst_22 = arith.constant dense<0.000000e+00> : vector<1x32xf32>
    %30 = tpu.matmul %24, %29, %cst_22 {dimension_numbers = #tpu.dot_dimension_numbers<[1], [0], [0], [1], [0, 0, 1, 1], [], []>} : vector<1x32xf32>, vector<32x32xf32>, vector<1x32xf32> -> vector<1x32xf32>
    %c2 = arith.constant 2 : index
    %c0_23 = arith.constant 0 : index
    %c0_24 = arith.constant 0 : index
    %31 = vector.load %arg11[%c2, %c0_23, %c0_24] : memref<3x32x32xf32, #tpu.memory_space<vmem>>, vector<1x32x32xf32>
    %32 = vector.shape_cast %31 : vector<1x32x32xf32> to vector<32x32xf32>
    %cst_25 = arith.constant dense<0.000000e+00> : vector<1x32xf32>
    %33 = tpu.matmul %24, %32, %cst_25 {dimension_numbers = #tpu.dot_dimension_numbers<[1], [0], [0], [1], [0, 0, 1, 1], [], []>} : vector<1x32xf32>, vector<32x32xf32>, vector<1x32xf32> -> vector<1x32xf32>
    %c0_i32 = arith.constant 0 : i32
    %34 = vector.broadcast %c0_i32 : i32 to vector<16x1xi32>
    %35 = arith.cmpi eq, %0, %34 : vector<16x1xi32>
    %36 = arith.addf %30, %33 : vector<1x32xf32>
    %c15_i32 = arith.constant 15 : i32
    %37 = vector.broadcast %c15_i32 : i32 to vector<16x1xi32>
    %38 = arith.cmpi eq, %0, %37 : vector<16x1xi32>
    %39 = arith.addf %27, %30 : vector<1x32xf32>
    %40 = arith.addf %27, %30 : vector<1x32xf32>
    %41 = arith.addf %40, %33 : vector<1x32xf32>
    %42 = vector.shape_cast %38 : vector<16x1xi1> to vector<16x1xi1>
    %43 = vector.broadcast %42 : vector<16x1xi1> to vector<16x32xi1>
    %44 = vector.shape_cast %39 : vector<1x32xf32> to vector<1x32xf32>
    %45 = vector.broadcast %44 : vector<1x32xf32> to vector<16x32xf32>
    %46 = vector.shape_cast %41 : vector<1x32xf32> to vector<1x32xf32>
    %47 = vector.broadcast %46 : vector<1x32xf32> to vector<16x32xf32>
    %48 = arith.select %43, %45, %47 : vector<16x32xi1>, vector<16x32xf32>
    %49 = vector.shape_cast %35 : vector<16x1xi1> to vector<16x1xi1>
    %50 = vector.broadcast %49 : vector<16x1xi1> to vector<16x32xi1>
    %51 = vector.shape_cast %36 : vector<1x32xf32> to vector<1x32xf32>
    %52 = vector.broadcast %51 : vector<1x32xf32> to vector<16x32xf32>
    %53 = arith.select %50, %52, %48 : vector<16x32xi1>, vector<16x32xf32>
    %c0_i32_26 = arith.constant 0 : i32
    %54 = vector.broadcast %c0_i32_26 : i32 to vector<16x1xi32>
    %55 = arith.cmpi eq, %0, %54 : vector<16x1xi32>
    %c1_i32 = arith.constant 1 : i32
    %56 = tpu.dynamic_rotate %5 by %c1_i32 dim 0 : vector<16x2xf32>, i32 -> vector<16x2xf32>
    %cst_27 = arith.constant 0.000000e+00 : f32
    %57 = vector.shape_cast %55 : vector<16x1xi1> to vector<16x1xi1>
    %58 = vector.broadcast %57 : vector<16x1xi1> to vector<16x2xi1>
    %59 = vector.broadcast %cst_27 : f32 to vector<16x2xf32>
    %60 = arith.select %58, %59, %56 : vector<16x2xi1>, vector<16x2xf32>
    %c15_i32_28 = arith.constant 15 : i32
    %61 = vector.broadcast %c15_i32_28 : i32 to vector<16x1xi32>
    %62 = arith.cmpi eq, %0, %61 : vector<16x1xi32>
    %c15_i32_29 = arith.constant 15 : i32
    %63 = tpu.dynamic_rotate %5 by %c15_i32_29 dim 0 : vector<16x2xf32>, i32 -> vector<16x2xf32>
    %cst_30 = arith.constant 0.000000e+00 : f32
    %64 = vector.shape_cast %62 : vector<16x1xi1> to vector<16x1xi1>
    %65 = vector.broadcast %64 : vector<16x1xi1> to vector<16x2xi1>
    %66 = vector.broadcast %cst_30 : f32 to vector<16x2xf32>
    %67 = arith.select %65, %66, %63 : vector<16x2xi1>, vector<16x2xf32>
    %68 = tpu.concatenate %60, %5, %67 in 1 : vector<16x2xf32>, vector<16x2xf32>, vector<16x2xf32> -> vector<16x6xf32>
    %69 = arith.truncf %68 : vector<16x6xf32> to vector<16x6xbf16>
    %c0_31 = arith.constant 0 : index
    %c0_32 = arith.constant 0 : index
    %70 = vector.load %arg10[%c0_31, %c0_32] : memref<6x32xbf16, #tpu.memory_space<vmem>>, vector<6x32xbf16>
    %cst_33 = arith.constant dense<0.000000e+00> : vector<16x32xf32>
    %71 = tpu.matmul %69, %70, %cst_33 {dimension_numbers = #tpu.dot_dimension_numbers<[1], [0], [0], [1], [0, 0, 1, 1], [], []>} : vector<16x6xbf16>, vector<6x32xbf16>, vector<16x32xf32> -> vector<16x32xf32>
    %c0_34 = arith.constant 0 : index
    %c0_35 = arith.constant 0 : index
    %72 = vector.load %arg12[%c0_34, %c0_35] : memref<1x32xf32, #tpu.memory_space<vmem>>, vector<1x32xf32>
    %73 = vector.broadcast %72 : vector<1x32xf32> to vector<16x32xf32>
    %74 = arith.addf %71, %73 : vector<16x32xf32>
    %75 = arith.addf %74, %53 : vector<16x32xf32>
    %cst_36 = arith.constant dense<0.000000e+00> : vector<32xf32>
    %76 = vector.multi_reduction <add>, %75, %cst_36 [0] : vector<16x32xf32> to vector<32xf32>
    %77 = vector.shape_cast %76 : vector<32xf32> to vector<1x32xf32>
    %cst_37 = arith.constant 1.600000e+01 : f32
    %78 = vector.broadcast %cst_37 : f32 to vector<1x32xf32>
    %79 = arith.divf %77, %78 : vector<1x32xf32>
    %80 = vector.broadcast %79 : vector<1x32xf32> to vector<16x32xf32>
    %81 = arith.subf %75, %80 : vector<16x32xf32>
    %82 = arith.mulf %81, %81 : vector<16x32xf32>
    %cst_38 = arith.constant dense<0.000000e+00> : vector<32xf32>
    %83 = vector.multi_reduction <add>, %82, %cst_38 [0] : vector<16x32xf32> to vector<32xf32>
    %84 = vector.shape_cast %83 : vector<32xf32> to vector<1x32xf32>
    %cst_39 = arith.constant 1.600000e+01 : f32
    %85 = vector.broadcast %cst_39 : f32 to vector<1x32xf32>
    %86 = arith.divf %84, %85 : vector<1x32xf32>
    %87 = vector.broadcast %79 : vector<1x32xf32> to vector<16x32xf32>
    %88 = arith.subf %75, %87 : vector<16x32xf32>
    %cst_40 = arith.constant 9.99999974E-6 : f32
    %89 = vector.broadcast %cst_40 : f32 to vector<1x32xf32>
    %90 = arith.addf %86, %89 : vector<1x32xf32>
    %91 = math.rsqrt %90 : vector<1x32xf32>
    %92 = vector.broadcast %91 : vector<1x32xf32> to vector<16x32xf32>
    %93 = arith.mulf %88, %92 : vector<16x32xf32>
    %cst_41 = arith.constant 0.000000e+00 : f32
    %94 = vector.broadcast %cst_41 : f32 to vector<16x32xf32>
    %95 = arith.maximumf %93, %94 : vector<16x32xf32>
    %c0_i32_42 = arith.constant 0 : i32
    %96 = vector.broadcast %c0_i32_42 : i32 to vector<16x1xi32>
    %97 = arith.cmpi eq, %0, %96 : vector<16x1xi32>
    %c1_i32_43 = arith.constant 1 : i32
    %98 = tpu.dynamic_rotate %95 by %c1_i32_43 dim 0 : vector<16x32xf32>, i32 -> vector<16x32xf32>
    %cst_44 = arith.constant 0.000000e+00 : f32
    %99 = vector.shape_cast %97 : vector<16x1xi1> to vector<16x1xi1>
    %100 = vector.broadcast %99 : vector<16x1xi1> to vector<16x32xi1>
    %101 = vector.broadcast %cst_44 : f32 to vector<16x32xf32>
    %102 = arith.select %100, %101, %98 : vector<16x32xi1>, vector<16x32xf32>
    %c15_i32_45 = arith.constant 15 : i32
    %103 = vector.broadcast %c15_i32_45 : i32 to vector<16x1xi32>
    %104 = arith.cmpi eq, %0, %103 : vector<16x1xi32>
    %c15_i32_46 = arith.constant 15 : i32
    %105 = tpu.dynamic_rotate %95 by %c15_i32_46 dim 0 : vector<16x32xf32>, i32 -> vector<16x32xf32>
    %cst_47 = arith.constant 0.000000e+00 : f32
    %106 = vector.shape_cast %104 : vector<16x1xi1> to vector<16x1xi1>
    %107 = vector.broadcast %106 : vector<16x1xi1> to vector<16x32xi1>
    %108 = vector.broadcast %cst_47 : f32 to vector<16x32xf32>
    %109 = arith.select %107, %108, %105 : vector<16x32xi1>, vector<16x32xf32>
    %110 = tpu.concatenate %102, %95, %109 in 1 : vector<16x32xf32>, vector<16x32xf32>, vector<16x32xf32> -> vector<16x96xf32>
    %111 = arith.truncf %110 : vector<16x96xf32> to vector<16x96xbf16>
    %c0_48 = arith.constant 0 : index
    %c0_49 = arith.constant 0 : index
    %112 = vector.load %arg13[%c0_48, %c0_49] : memref<96x32xbf16, #tpu.memory_space<vmem>>, vector<96x32xbf16>
    %cst_50 = arith.constant dense<0.000000e+00> : vector<16x32xf32>
    %113 = tpu.matmul %111, %112, %cst_50 {dimension_numbers = #tpu.dot_dimension_numbers<[1], [0], [0], [1], [0, 0, 1, 1], [], []>} : vector<16x96xbf16>, vector<96x32xbf16>, vector<16x32xf32> -> vector<16x32xf32>
    %c0_51 = arith.constant 0 : index
    %c0_52 = arith.constant 0 : index
    %114 = vector.load %arg14[%c0_51, %c0_52] : memref<1x32xf32, #tpu.memory_space<vmem>>, vector<1x32xf32>
    %115 = vector.broadcast %114 : vector<1x32xf32> to vector<16x32xf32>
    %116 = arith.addf %113, %115 : vector<16x32xf32>
    %cst_53 = arith.constant dense<0.000000e+00> : vector<32xf32>
    %117 = vector.multi_reduction <add>, %116, %cst_53 [0] : vector<16x32xf32> to vector<32xf32>
    %118 = vector.shape_cast %117 : vector<32xf32> to vector<1x32xf32>
    %cst_54 = arith.constant 1.600000e+01 : f32
    %119 = vector.broadcast %cst_54 : f32 to vector<1x32xf32>
    %120 = arith.divf %118, %119 : vector<1x32xf32>
    %121 = vector.broadcast %120 : vector<1x32xf32> to vector<16x32xf32>
    %122 = arith.subf %116, %121 : vector<16x32xf32>
    %123 = arith.mulf %122, %122 : vector<16x32xf32>
    %cst_55 = arith.constant dense<0.000000e+00> : vector<32xf32>
    %124 = vector.multi_reduction <add>, %123, %cst_55 [0] : vector<16x32xf32> to vector<32xf32>
    %125 = vector.shape_cast %124 : vector<32xf32> to vector<1x32xf32>
    %cst_56 = arith.constant 1.600000e+01 : f32
    %126 = vector.broadcast %cst_56 : f32 to vector<1x32xf32>
    %127 = arith.divf %125, %126 : vector<1x32xf32>
    %128 = vector.broadcast %120 : vector<1x32xf32> to vector<16x32xf32>
    %129 = arith.subf %116, %128 : vector<16x32xf32>
    %cst_57 = arith.constant 9.99999974E-6 : f32
    %130 = vector.broadcast %cst_57 : f32 to vector<1x32xf32>
    %131 = arith.addf %127, %130 : vector<1x32xf32>
    %132 = math.rsqrt %131 : vector<1x32xf32>
    %133 = vector.broadcast %132 : vector<1x32xf32> to vector<16x32xf32>
    %134 = arith.mulf %129, %133 : vector<16x32xf32>
    %cst_58 = arith.constant 0.000000e+00 : f32
    %135 = vector.broadcast %cst_58 : f32 to vector<16x32xf32>
    %136 = arith.maximumf %134, %135 : vector<16x32xf32>
    %137 = vector.shape_cast %136 : vector<16x32xf32> to vector<8x2x32xf32>
    %cst_59 = arith.constant dense<0xFF800000> : vector<8x32xf32>
    %138 = vector.multi_reduction <maximumf>, %137, %cst_59 [1] : vector<8x2x32xf32> to vector<8x32xf32>
    %c0_i32_60 = arith.constant 0 : i32
    %139 = vector.broadcast %c0_i32_60 : i32 to vector<8x1xi32>
    %140 = arith.cmpi eq, %1, %139 : vector<8x1xi32>
    %c1_i32_61 = arith.constant 1 : i32
    %141 = tpu.dynamic_rotate %138 by %c1_i32_61 dim 0 : vector<8x32xf32>, i32 -> vector<8x32xf32>
    %cst_62 = arith.constant 0.000000e+00 : f32
    %142 = vector.shape_cast %140 : vector<8x1xi1> to vector<8x1xi1>
    %143 = vector.broadcast %142 : vector<8x1xi1> to vector<8x32xi1>
    %144 = vector.broadcast %cst_62 : f32 to vector<8x32xf32>
    %145 = arith.select %143, %144, %141 : vector<8x32xi1>, vector<8x32xf32>
    %c7_i32 = arith.constant 7 : i32
    %146 = vector.broadcast %c7_i32 : i32 to vector<8x1xi32>
    %147 = arith.cmpi eq, %1, %146 : vector<8x1xi32>
    %c7_i32_63 = arith.constant 7 : i32
    %148 = tpu.dynamic_rotate %138 by %c7_i32_63 dim 0 : vector<8x32xf32>, i32 -> vector<8x32xf32>
    %cst_64 = arith.constant 0.000000e+00 : f32
    %149 = vector.shape_cast %147 : vector<8x1xi1> to vector<8x1xi1>
    %150 = vector.broadcast %149 : vector<8x1xi1> to vector<8x32xi1>
    %151 = vector.broadcast %cst_64 : f32 to vector<8x32xf32>
    %152 = arith.select %150, %151, %148 : vector<8x32xi1>, vector<8x32xf32>
    %153 = tpu.concatenate %145, %138, %152 in 1 : vector<8x32xf32>, vector<8x32xf32>, vector<8x32xf32> -> vector<8x96xf32>
    %154 = arith.truncf %153 : vector<8x96xf32> to vector<8x96xbf16>
    %c0_65 = arith.constant 0 : index
    %c0_66 = arith.constant 0 : index
    %155 = vector.load %arg15[%c0_65, %c0_66] : memref<96x64xbf16, #tpu.memory_space<vmem>>, vector<96x64xbf16>
    %cst_67 = arith.constant dense<0.000000e+00> : vector<8x64xf32>
    %156 = tpu.matmul %154, %155, %cst_67 {dimension_numbers = #tpu.dot_dimension_numbers<[1], [0], [0], [1], [0, 0, 1, 1], [], []>} : vector<8x96xbf16>, vector<96x64xbf16>, vector<8x64xf32> -> vector<8x64xf32>
    %c0_68 = arith.constant 0 : index
    %c0_69 = arith.constant 0 : index
    %157 = vector.load %arg16[%c0_68, %c0_69] : memref<1x64xf32, #tpu.memory_space<vmem>>, vector<1x64xf32>
    %158 = vector.broadcast %157 : vector<1x64xf32> to vector<8x64xf32>
    %159 = arith.addf %156, %158 : vector<8x64xf32>
    %cst_70 = arith.constant dense<0.000000e+00> : vector<64xf32>
    %160 = vector.multi_reduction <add>, %159, %cst_70 [0] : vector<8x64xf32> to vector<64xf32>
    %161 = vector.shape_cast %160 : vector<64xf32> to vector<1x64xf32>
    %cst_71 = arith.constant 8.000000e+00 : f32
    %162 = vector.broadcast %cst_71 : f32 to vector<1x64xf32>
    %163 = arith.divf %161, %162 : vector<1x64xf32>
    %164 = vector.broadcast %163 : vector<1x64xf32> to vector<8x64xf32>
    %165 = arith.subf %159, %164 : vector<8x64xf32>
    %166 = arith.mulf %165, %165 : vector<8x64xf32>
    %cst_72 = arith.constant dense<0.000000e+00> : vector<64xf32>
    %167 = vector.multi_reduction <add>, %166, %cst_72 [0] : vector<8x64xf32> to vector<64xf32>
    %168 = vector.shape_cast %167 : vector<64xf32> to vector<1x64xf32>
    %cst_73 = arith.constant 8.000000e+00 : f32
    %169 = vector.broadcast %cst_73 : f32 to vector<1x64xf32>
    %170 = arith.divf %168, %169 : vector<1x64xf32>
    %171 = vector.broadcast %163 : vector<1x64xf32> to vector<8x64xf32>
    %172 = arith.subf %159, %171 : vector<8x64xf32>
    %cst_74 = arith.constant 9.99999974E-6 : f32
    %173 = vector.broadcast %cst_74 : f32 to vector<1x64xf32>
    %174 = arith.addf %170, %173 : vector<1x64xf32>
    %175 = math.rsqrt %174 : vector<1x64xf32>
    %176 = vector.broadcast %175 : vector<1x64xf32> to vector<8x64xf32>
    %177 = arith.mulf %172, %176 : vector<8x64xf32>
    %cst_75 = arith.constant 0.000000e+00 : f32
    %178 = vector.broadcast %cst_75 : f32 to vector<8x64xf32>
    %179 = arith.maximumf %177, %178 : vector<8x64xf32>
    %c0_i32_76 = arith.constant 0 : i32
    %180 = vector.broadcast %c0_i32_76 : i32 to vector<8x1xi32>
    %181 = arith.cmpi eq, %1, %180 : vector<8x1xi32>
    %c1_i32_77 = arith.constant 1 : i32
    %182 = tpu.dynamic_rotate %179 by %c1_i32_77 dim 0 : vector<8x64xf32>, i32 -> vector<8x64xf32>
    %cst_78 = arith.constant 0.000000e+00 : f32
    %183 = vector.shape_cast %181 : vector<8x1xi1> to vector<8x1xi1>
    %184 = vector.broadcast %183 : vector<8x1xi1> to vector<8x64xi1>
    %185 = vector.broadcast %cst_78 : f32 to vector<8x64xf32>
    %186 = arith.select %184, %185, %182 : vector<8x64xi1>, vector<8x64xf32>
    %c7_i32_79 = arith.constant 7 : i32
    %187 = vector.broadcast %c7_i32_79 : i32 to vector<8x1xi32>
    %188 = arith.cmpi eq, %1, %187 : vector<8x1xi32>
    %c7_i32_80 = arith.constant 7 : i32
    %189 = tpu.dynamic_rotate %179 by %c7_i32_80 dim 0 : vector<8x64xf32>, i32 -> vector<8x64xf32>
    %cst_81 = arith.constant 0.000000e+00 : f32
    %190 = vector.shape_cast %188 : vector<8x1xi1> to vector<8x1xi1>
    %191 = vector.broadcast %190 : vector<8x1xi1> to vector<8x64xi1>
    %192 = vector.broadcast %cst_81 : f32 to vector<8x64xf32>
    %193 = arith.select %191, %192, %189 : vector<8x64xi1>, vector<8x64xf32>
    %194 = tpu.concatenate %186, %179, %193 in 1 : vector<8x64xf32>, vector<8x64xf32>, vector<8x64xf32> -> vector<8x192xf32>
    %195 = arith.truncf %194 : vector<8x192xf32> to vector<8x192xbf16>
    %c0_82 = arith.constant 0 : index
    %c0_83 = arith.constant 0 : index
    %196 = vector.load %arg17[%c0_82, %c0_83] : memref<192x64xbf16, #tpu.memory_space<vmem>>, vector<192x64xbf16>
    %cst_84 = arith.constant dense<0.000000e+00> : vector<8x64xf32>
    %197 = tpu.matmul %195, %196, %cst_84 {dimension_numbers = #tpu.dot_dimension_numbers<[1], [0], [0], [1], [0, 0, 1, 1], [], []>} : vector<8x192xbf16>, vector<192x64xbf16>, vector<8x64xf32> -> vector<8x64xf32>
    %c0_85 = arith.constant 0 : index
    %c0_86 = arith.constant 0 : index
    %198 = vector.load %arg18[%c0_85, %c0_86] : memref<1x64xf32, #tpu.memory_space<vmem>>, vector<1x64xf32>
    %199 = vector.broadcast %198 : vector<1x64xf32> to vector<8x64xf32>
    %200 = arith.addf %197, %199 : vector<8x64xf32>
    %cst_87 = arith.constant dense<0.000000e+00> : vector<64xf32>
    %201 = vector.multi_reduction <add>, %200, %cst_87 [0] : vector<8x64xf32> to vector<64xf32>
    %202 = vector.shape_cast %201 : vector<64xf32> to vector<1x64xf32>
    %cst_88 = arith.constant 8.000000e+00 : f32
    %203 = vector.broadcast %cst_88 : f32 to vector<1x64xf32>
    %204 = arith.divf %202, %203 : vector<1x64xf32>
    %205 = vector.broadcast %204 : vector<1x64xf32> to vector<8x64xf32>
    %206 = arith.subf %200, %205 : vector<8x64xf32>
    %207 = arith.mulf %206, %206 : vector<8x64xf32>
    %cst_89 = arith.constant dense<0.000000e+00> : vector<64xf32>
    %208 = vector.multi_reduction <add>, %207, %cst_89 [0] : vector<8x64xf32> to vector<64xf32>
    %209 = vector.shape_cast %208 : vector<64xf32> to vector<1x64xf32>
    %cst_90 = arith.constant 8.000000e+00 : f32
    %210 = vector.broadcast %cst_90 : f32 to vector<1x64xf32>
    %211 = arith.divf %209, %210 : vector<1x64xf32>
    %212 = vector.broadcast %204 : vector<1x64xf32> to vector<8x64xf32>
    %213 = arith.subf %200, %212 : vector<8x64xf32>
    %cst_91 = arith.constant 9.99999974E-6 : f32
    %214 = vector.broadcast %cst_91 : f32 to vector<1x64xf32>
    %215 = arith.addf %211, %214 : vector<1x64xf32>
    %216 = math.rsqrt %215 : vector<1x64xf32>
    %217 = vector.broadcast %216 : vector<1x64xf32> to vector<8x64xf32>
    %218 = arith.mulf %213, %217 : vector<8x64xf32>
    %cst_92 = arith.constant 0.000000e+00 : f32
    %219 = vector.broadcast %cst_92 : f32 to vector<8x64xf32>
    %220 = arith.maximumf %218, %219 : vector<8x64xf32>
    %221 = vector.shape_cast %220 : vector<8x64xf32> to vector<4x2x64xf32>
    %cst_93 = arith.constant dense<0xFF800000> : vector<4x64xf32>
    %222 = vector.multi_reduction <maximumf>, %221, %cst_93 [1] : vector<4x2x64xf32> to vector<4x64xf32>
    %c0_i32_94 = arith.constant 0 : i32
    %223 = vector.broadcast %c0_i32_94 : i32 to vector<4x1xi32>
    %224 = arith.cmpi eq, %2, %223 : vector<4x1xi32>
    %c1_i32_95 = arith.constant 1 : i32
    %225 = tpu.dynamic_rotate %222 by %c1_i32_95 dim 0 : vector<4x64xf32>, i32 -> vector<4x64xf32>
    %cst_96 = arith.constant 0.000000e+00 : f32
    %226 = vector.shape_cast %224 : vector<4x1xi1> to vector<4x1xi1>
    %227 = vector.broadcast %226 : vector<4x1xi1> to vector<4x64xi1>
    %228 = vector.broadcast %cst_96 : f32 to vector<4x64xf32>
    %229 = arith.select %227, %228, %225 : vector<4x64xi1>, vector<4x64xf32>
    %c3_i32 = arith.constant 3 : i32
    %230 = vector.broadcast %c3_i32 : i32 to vector<4x1xi32>
    %231 = arith.cmpi eq, %2, %230 : vector<4x1xi32>
    %c3_i32_97 = arith.constant 3 : i32
    %232 = tpu.dynamic_rotate %222 by %c3_i32_97 dim 0 : vector<4x64xf32>, i32 -> vector<4x64xf32>
    %cst_98 = arith.constant 0.000000e+00 : f32
    %233 = vector.shape_cast %231 : vector<4x1xi1> to vector<4x1xi1>
    %234 = vector.broadcast %233 : vector<4x1xi1> to vector<4x64xi1>
    %235 = vector.broadcast %cst_98 : f32 to vector<4x64xf32>
    %236 = arith.select %234, %235, %232 : vector<4x64xi1>, vector<4x64xf32>
    %237 = tpu.concatenate %229, %222, %236 in 1 : vector<4x64xf32>, vector<4x64xf32>, vector<4x64xf32> -> vector<4x192xf32>
    %238 = arith.truncf %237 : vector<4x192xf32> to vector<4x192xbf16>
    %c0_99 = arith.constant 0 : index
    %c0_100 = arith.constant 0 : index
    %239 = vector.load %arg19[%c0_99, %c0_100] : memref<192x128xbf16, #tpu.memory_space<vmem>>, vector<192x128xbf16>
    %cst_101 = arith.constant dense<0.000000e+00> : vector<4x128xf32>
    %240 = tpu.matmul %238, %239, %cst_101 {dimension_numbers = #tpu.dot_dimension_numbers<[1], [0], [0], [1], [0, 0, 1, 1], [], []>} : vector<4x192xbf16>, vector<192x128xbf16>, vector<4x128xf32> -> vector<4x128xf32>
    %c0_102 = arith.constant 0 : index
    %c0_103 = arith.constant 0 : index
    %241 = vector.load %arg20[%c0_102, %c0_103] : memref<1x128xf32, #tpu.memory_space<vmem>>, vector<1x128xf32>
    %242 = vector.broadcast %241 : vector<1x128xf32> to vector<4x128xf32>
    %243 = arith.addf %240, %242 : vector<4x128xf32>
    %cst_104 = arith.constant dense<0.000000e+00> : vector<128xf32>
    %244 = vector.multi_reduction <add>, %243, %cst_104 [0] : vector<4x128xf32> to vector<128xf32>
    %245 = vector.shape_cast %244 : vector<128xf32> to vector<1x128xf32>
    %cst_105 = arith.constant 4.000000e+00 : f32
    %246 = vector.broadcast %cst_105 : f32 to vector<1x128xf32>
    %247 = arith.divf %245, %246 : vector<1x128xf32>
    %248 = vector.broadcast %247 : vector<1x128xf32> to vector<4x128xf32>
    %249 = arith.subf %243, %248 : vector<4x128xf32>
    %250 = arith.mulf %249, %249 : vector<4x128xf32>
    %cst_106 = arith.constant dense<0.000000e+00> : vector<128xf32>
    %251 = vector.multi_reduction <add>, %250, %cst_106 [0] : vector<4x128xf32> to vector<128xf32>
    %252 = vector.shape_cast %251 : vector<128xf32> to vector<1x128xf32>
    %cst_107 = arith.constant 4.000000e+00 : f32
    %253 = vector.broadcast %cst_107 : f32 to vector<1x128xf32>
    %254 = arith.divf %252, %253 : vector<1x128xf32>
    %255 = vector.broadcast %247 : vector<1x128xf32> to vector<4x128xf32>
    %256 = arith.subf %243, %255 : vector<4x128xf32>
    %cst_108 = arith.constant 9.99999974E-6 : f32
    %257 = vector.broadcast %cst_108 : f32 to vector<1x128xf32>
    %258 = arith.addf %254, %257 : vector<1x128xf32>
    %259 = math.rsqrt %258 : vector<1x128xf32>
    %260 = vector.broadcast %259 : vector<1x128xf32> to vector<4x128xf32>
    %261 = arith.mulf %256, %260 : vector<4x128xf32>
    %cst_109 = arith.constant 0.000000e+00 : f32
    %262 = vector.broadcast %cst_109 : f32 to vector<4x128xf32>
    %263 = arith.maximumf %261, %262 : vector<4x128xf32>
    %c0_i32_110 = arith.constant 0 : i32
    %264 = vector.broadcast %c0_i32_110 : i32 to vector<4x1xi32>
    %265 = arith.cmpi eq, %2, %264 : vector<4x1xi32>
    %c1_i32_111 = arith.constant 1 : i32
    %266 = tpu.dynamic_rotate %263 by %c1_i32_111 dim 0 : vector<4x128xf32>, i32 -> vector<4x128xf32>
    %cst_112 = arith.constant 0.000000e+00 : f32
    %267 = vector.shape_cast %265 : vector<4x1xi1> to vector<4x1xi1>
    %268 = vector.broadcast %267 : vector<4x1xi1> to vector<4x128xi1>
    %269 = vector.broadcast %cst_112 : f32 to vector<4x128xf32>
    %270 = arith.select %268, %269, %266 : vector<4x128xi1>, vector<4x128xf32>
    %c3_i32_113 = arith.constant 3 : i32
    %271 = vector.broadcast %c3_i32_113 : i32 to vector<4x1xi32>
    %272 = arith.cmpi eq, %2, %271 : vector<4x1xi32>
    %c3_i32_114 = arith.constant 3 : i32
    %273 = tpu.dynamic_rotate %263 by %c3_i32_114 dim 0 : vector<4x128xf32>, i32 -> vector<4x128xf32>
    %cst_115 = arith.constant 0.000000e+00 : f32
    %274 = vector.shape_cast %272 : vector<4x1xi1> to vector<4x1xi1>
    %275 = vector.broadcast %274 : vector<4x1xi1> to vector<4x128xi1>
    %276 = vector.broadcast %cst_115 : f32 to vector<4x128xf32>
    %277 = arith.select %275, %276, %273 : vector<4x128xi1>, vector<4x128xf32>
    %278 = tpu.concatenate %270, %263, %277 in 1 : vector<4x128xf32>, vector<4x128xf32>, vector<4x128xf32> -> vector<4x384xf32>
    %279 = arith.truncf %278 : vector<4x384xf32> to vector<4x384xbf16>
    %c0_116 = arith.constant 0 : index
    %c0_117 = arith.constant 0 : index
    %280 = vector.load %arg21[%c0_116, %c0_117] : memref<384x128xbf16, #tpu.memory_space<vmem>>, vector<384x128xbf16>
    %cst_118 = arith.constant dense<0.000000e+00> : vector<4x128xf32>
    %281 = tpu.matmul %279, %280, %cst_118 {dimension_numbers = #tpu.dot_dimension_numbers<[1], [0], [0], [1], [0, 0, 1, 1], [], []>} : vector<4x384xbf16>, vector<384x128xbf16>, vector<4x128xf32> -> vector<4x128xf32>
    %c0_119 = arith.constant 0 : index
    %c0_120 = arith.constant 0 : index
    %282 = vector.load %arg22[%c0_119, %c0_120] : memref<1x128xf32, #tpu.memory_space<vmem>>, vector<1x128xf32>
    %283 = vector.broadcast %282 : vector<1x128xf32> to vector<4x128xf32>
    %284 = arith.addf %281, %283 : vector<4x128xf32>
    %cst_121 = arith.constant dense<0.000000e+00> : vector<128xf32>
    %285 = vector.multi_reduction <add>, %284, %cst_121 [0] : vector<4x128xf32> to vector<128xf32>
    %286 = vector.shape_cast %285 : vector<128xf32> to vector<1x128xf32>
    %cst_122 = arith.constant 4.000000e+00 : f32
    %287 = vector.broadcast %cst_122 : f32 to vector<1x128xf32>
    %288 = arith.divf %286, %287 : vector<1x128xf32>
    %289 = vector.broadcast %288 : vector<1x128xf32> to vector<4x128xf32>
    %290 = arith.subf %284, %289 : vector<4x128xf32>
    %291 = arith.mulf %290, %290 : vector<4x128xf32>
    %cst_123 = arith.constant dense<0.000000e+00> : vector<128xf32>
    %292 = vector.multi_reduction <add>, %291, %cst_123 [0] : vector<4x128xf32> to vector<128xf32>
    %293 = vector.shape_cast %292 : vector<128xf32> to vector<1x128xf32>
    %cst_124 = arith.constant 4.000000e+00 : f32
    %294 = vector.broadcast %cst_124 : f32 to vector<1x128xf32>
    %295 = arith.divf %293, %294 : vector<1x128xf32>
    %296 = vector.broadcast %288 : vector<1x128xf32> to vector<4x128xf32>
    %297 = arith.subf %284, %296 : vector<4x128xf32>
    %cst_125 = arith.constant 9.99999974E-6 : f32
    %298 = vector.broadcast %cst_125 : f32 to vector<1x128xf32>
    %299 = arith.addf %295, %298 : vector<1x128xf32>
    %300 = math.rsqrt %299 : vector<1x128xf32>
    %301 = vector.broadcast %300 : vector<1x128xf32> to vector<4x128xf32>
    %302 = arith.mulf %297, %301 : vector<4x128xf32>
    %cst_126 = arith.constant 0.000000e+00 : f32
    %303 = vector.broadcast %cst_126 : f32 to vector<4x128xf32>
    %304 = arith.maximumf %302, %303 : vector<4x128xf32>
    %305 = vector.shape_cast %304 : vector<4x128xf32> to vector<2x2x128xf32>
    %cst_127 = arith.constant dense<0xFF800000> : vector<2x128xf32>
    %306 = vector.multi_reduction <maximumf>, %305, %cst_127 [1] : vector<2x2x128xf32> to vector<2x128xf32>
    %c0_i32_128 = arith.constant 0 : i32
    %307 = vector.broadcast %c0_i32_128 : i32 to vector<2x1xi32>
    %308 = arith.cmpi eq, %3, %307 : vector<2x1xi32>
    %c1_i32_129 = arith.constant 1 : i32
    %309 = tpu.dynamic_rotate %306 by %c1_i32_129 dim 0 : vector<2x128xf32>, i32 -> vector<2x128xf32>
    %cst_130 = arith.constant 0.000000e+00 : f32
    %310 = vector.shape_cast %308 : vector<2x1xi1> to vector<2x1xi1>
    %311 = vector.broadcast %310 : vector<2x1xi1> to vector<2x128xi1>
    %312 = vector.broadcast %cst_130 : f32 to vector<2x128xf32>
    %313 = arith.select %311, %312, %309 : vector<2x128xi1>, vector<2x128xf32>
    %c1_i32_131 = arith.constant 1 : i32
    %314 = vector.broadcast %c1_i32_131 : i32 to vector<2x1xi32>
    %315 = arith.cmpi eq, %3, %314 : vector<2x1xi32>
    %c1_i32_132 = arith.constant 1 : i32
    %316 = tpu.dynamic_rotate %306 by %c1_i32_132 dim 0 : vector<2x128xf32>, i32 -> vector<2x128xf32>
    %cst_133 = arith.constant 0.000000e+00 : f32
    %317 = vector.shape_cast %315 : vector<2x1xi1> to vector<2x1xi1>
    %318 = vector.broadcast %317 : vector<2x1xi1> to vector<2x128xi1>
    %319 = vector.broadcast %cst_133 : f32 to vector<2x128xf32>
    %320 = arith.select %318, %319, %316 : vector<2x128xi1>, vector<2x128xf32>
    %321 = tpu.concatenate %313, %306, %320 in 1 : vector<2x128xf32>, vector<2x128xf32>, vector<2x128xf32> -> vector<2x384xf32>
    %322 = arith.truncf %321 : vector<2x384xf32> to vector<2x384xbf16>
    %c0_134 = arith.constant 0 : index
    %c0_135 = arith.constant 0 : index
    %323 = vector.load %arg23[%c0_134, %c0_135] : memref<384x256xbf16, #tpu.memory_space<vmem>>, vector<384x256xbf16>
    %cst_136 = arith.constant dense<0.000000e+00> : vector<2x256xf32>
    %324 = tpu.matmul %322, %323, %cst_136 {dimension_numbers = #tpu.dot_dimension_numbers<[1], [0], [0], [1], [0, 0, 1, 1], [], []>} : vector<2x384xbf16>, vector<384x256xbf16>, vector<2x256xf32> -> vector<2x256xf32>
    %c0_137 = arith.constant 0 : index
    %c0_138 = arith.constant 0 : index
    %325 = vector.load %arg24[%c0_137, %c0_138] : memref<1x256xf32, #tpu.memory_space<vmem>>, vector<1x256xf32>
    %326 = vector.broadcast %325 : vector<1x256xf32> to vector<2x256xf32>
    %327 = arith.addf %324, %326 : vector<2x256xf32>
    %cst_139 = arith.constant dense<0.000000e+00> : vector<256xf32>
    %328 = vector.multi_reduction <add>, %327, %cst_139 [0] : vector<2x256xf32> to vector<256xf32>
    %329 = vector.shape_cast %328 : vector<256xf32> to vector<1x256xf32>
    %cst_140 = arith.constant 2.000000e+00 : f32
    %330 = vector.broadcast %cst_140 : f32 to vector<1x256xf32>
    %331 = arith.divf %329, %330 : vector<1x256xf32>
    %332 = vector.broadcast %331 : vector<1x256xf32> to vector<2x256xf32>
    %333 = arith.subf %327, %332 : vector<2x256xf32>
    %334 = arith.mulf %333, %333 : vector<2x256xf32>
    %cst_141 = arith.constant dense<0.000000e+00> : vector<256xf32>
    %335 = vector.multi_reduction <add>, %334, %cst_141 [0] : vector<2x256xf32> to vector<256xf32>
    %336 = vector.shape_cast %335 : vector<256xf32> to vector<1x256xf32>
    %cst_142 = arith.constant 2.000000e+00 : f32
    %337 = vector.broadcast %cst_142 : f32 to vector<1x256xf32>
    %338 = arith.divf %336, %337 : vector<1x256xf32>
    %339 = vector.broadcast %331 : vector<1x256xf32> to vector<2x256xf32>
    %340 = arith.subf %327, %339 : vector<2x256xf32>
    %cst_143 = arith.constant 9.99999974E-6 : f32
    %341 = vector.broadcast %cst_143 : f32 to vector<1x256xf32>
    %342 = arith.addf %338, %341 : vector<1x256xf32>
    %343 = math.rsqrt %342 : vector<1x256xf32>
    %344 = vector.broadcast %343 : vector<1x256xf32> to vector<2x256xf32>
    %345 = arith.mulf %340, %344 : vector<2x256xf32>
    %cst_144 = arith.constant 0.000000e+00 : f32
    %346 = vector.broadcast %cst_144 : f32 to vector<2x256xf32>
    %347 = arith.maximumf %345, %346 : vector<2x256xf32>
    %c0_i32_145 = arith.constant 0 : i32
    %348 = vector.broadcast %c0_i32_145 : i32 to vector<2x1xi32>
    %349 = arith.cmpi eq, %3, %348 : vector<2x1xi32>
    %c1_i32_146 = arith.constant 1 : i32
    %350 = tpu.dynamic_rotate %347 by %c1_i32_146 dim 0 : vector<2x256xf32>, i32 -> vector<2x256xf32>
    %cst_147 = arith.constant 0.000000e+00 : f32
    %351 = vector.shape_cast %349 : vector<2x1xi1> to vector<2x1xi1>
    %352 = vector.broadcast %351 : vector<2x1xi1> to vector<2x256xi1>
    %353 = vector.broadcast %cst_147 : f32 to vector<2x256xf32>
    %354 = arith.select %352, %353, %350 : vector<2x256xi1>, vector<2x256xf32>
    %c1_i32_148 = arith.constant 1 : i32
    %355 = vector.broadcast %c1_i32_148 : i32 to vector<2x1xi32>
    %356 = arith.cmpi eq, %3, %355 : vector<2x1xi32>
    %c1_i32_149 = arith.constant 1 : i32
    %357 = tpu.dynamic_rotate %347 by %c1_i32_149 dim 0 : vector<2x256xf32>, i32 -> vector<2x256xf32>
    %cst_150 = arith.constant 0.000000e+00 : f32
    %358 = vector.shape_cast %356 : vector<2x1xi1> to vector<2x1xi1>
    %359 = vector.broadcast %358 : vector<2x1xi1> to vector<2x256xi1>
    %360 = vector.broadcast %cst_150 : f32 to vector<2x256xf32>
    %361 = arith.select %359, %360, %357 : vector<2x256xi1>, vector<2x256xf32>
    %362 = tpu.concatenate %354, %347, %361 in 1 : vector<2x256xf32>, vector<2x256xf32>, vector<2x256xf32> -> vector<2x768xf32>
    %363 = arith.truncf %362 : vector<2x768xf32> to vector<2x768xbf16>
    %c0_151 = arith.constant 0 : index
    %c0_152 = arith.constant 0 : index
    %364 = vector.load %arg25[%c0_151, %c0_152] : memref<768x256xbf16, #tpu.memory_space<vmem>>, vector<768x256xbf16>
    %cst_153 = arith.constant dense<0.000000e+00> : vector<2x256xf32>
    %365 = tpu.matmul %363, %364, %cst_153 {dimension_numbers = #tpu.dot_dimension_numbers<[1], [0], [0], [1], [0, 0, 1, 1], [], []>} : vector<2x768xbf16>, vector<768x256xbf16>, vector<2x256xf32> -> vector<2x256xf32>
    %c0_154 = arith.constant 0 : index
    %c0_155 = arith.constant 0 : index
    %366 = vector.load %arg26[%c0_154, %c0_155] : memref<1x256xf32, #tpu.memory_space<vmem>>, vector<1x256xf32>
    %367 = vector.broadcast %366 : vector<1x256xf32> to vector<2x256xf32>
    %368 = arith.addf %365, %367 : vector<2x256xf32>
    %cst_156 = arith.constant dense<0.000000e+00> : vector<256xf32>
    %369 = vector.multi_reduction <add>, %368, %cst_156 [0] : vector<2x256xf32> to vector<256xf32>
    %370 = vector.shape_cast %369 : vector<256xf32> to vector<1x256xf32>
    %cst_157 = arith.constant 2.000000e+00 : f32
    %371 = vector.broadcast %cst_157 : f32 to vector<1x256xf32>
    %372 = arith.divf %370, %371 : vector<1x256xf32>
    %373 = vector.broadcast %372 : vector<1x256xf32> to vector<2x256xf32>
    %374 = arith.subf %368, %373 : vector<2x256xf32>
    %375 = arith.mulf %374, %374 : vector<2x256xf32>
    %cst_158 = arith.constant dense<0.000000e+00> : vector<256xf32>
    %376 = vector.multi_reduction <add>, %375, %cst_158 [0] : vector<2x256xf32> to vector<256xf32>
    %377 = vector.shape_cast %376 : vector<256xf32> to vector<1x256xf32>
    %cst_159 = arith.constant 2.000000e+00 : f32
    %378 = vector.broadcast %cst_159 : f32 to vector<1x256xf32>
    %379 = arith.divf %377, %378 : vector<1x256xf32>
    %380 = vector.broadcast %372 : vector<1x256xf32> to vector<2x256xf32>
    %381 = arith.subf %368, %380 : vector<2x256xf32>
    %cst_160 = arith.constant 9.99999974E-6 : f32
    %382 = vector.broadcast %cst_160 : f32 to vector<1x256xf32>
    %383 = arith.addf %379, %382 : vector<1x256xf32>
    %384 = math.rsqrt %383 : vector<1x256xf32>
    %385 = vector.broadcast %384 : vector<1x256xf32> to vector<2x256xf32>
    %386 = arith.mulf %381, %385 : vector<2x256xf32>
    %cst_161 = arith.constant 0.000000e+00 : f32
    %387 = vector.broadcast %cst_161 : f32 to vector<2x256xf32>
    %388 = arith.maximumf %386, %387 : vector<2x256xf32>
    %c0_162 = arith.constant 0 : index
    %c0_163 = arith.constant 0 : index
    %389 = vector.load %arg3[%c0_162, %c0_163] : memref<4x2xbf16, #tpu.memory_space<vmem>>, vector<4x2xbf16>
    %390 = arith.truncf %388 : vector<2x256xf32> to vector<2x256xbf16>
    %cst_164 = arith.constant dense<0.000000e+00> : vector<4x256xf32>
    %391 = tpu.matmul %389, %390, %cst_164 {dimension_numbers = #tpu.dot_dimension_numbers<[1], [0], [0], [1], [0, 0, 1, 1], [], []>} : vector<4x2xbf16>, vector<2x256xbf16>, vector<4x256xf32> -> vector<4x256xf32>
    %392 = tpu.concatenate %391, %304 in 1 : vector<4x256xf32>, vector<4x128xf32> -> vector<4x384xf32>
    %c0_i32_165 = arith.constant 0 : i32
    %393 = vector.broadcast %c0_i32_165 : i32 to vector<4x1xi32>
    %394 = arith.cmpi eq, %2, %393 : vector<4x1xi32>
    %c1_i32_166 = arith.constant 1 : i32
    %395 = tpu.dynamic_rotate %392 by %c1_i32_166 dim 0 : vector<4x384xf32>, i32 -> vector<4x384xf32>
    %cst_167 = arith.constant 0.000000e+00 : f32
    %396 = vector.shape_cast %394 : vector<4x1xi1> to vector<4x1xi1>
    %397 = vector.broadcast %396 : vector<4x1xi1> to vector<4x384xi1>
    %398 = vector.broadcast %cst_167 : f32 to vector<4x384xf32>
    %399 = arith.select %397, %398, %395 : vector<4x384xi1>, vector<4x384xf32>
    %c3_i32_168 = arith.constant 3 : i32
    %400 = vector.broadcast %c3_i32_168 : i32 to vector<4x1xi32>
    %401 = arith.cmpi eq, %2, %400 : vector<4x1xi32>
    %c3_i32_169 = arith.constant 3 : i32
    %402 = tpu.dynamic_rotate %392 by %c3_i32_169 dim 0 : vector<4x384xf32>, i32 -> vector<4x384xf32>
    %cst_170 = arith.constant 0.000000e+00 : f32
    %403 = vector.shape_cast %401 : vector<4x1xi1> to vector<4x1xi1>
    %404 = vector.broadcast %403 : vector<4x1xi1> to vector<4x384xi1>
    %405 = vector.broadcast %cst_170 : f32 to vector<4x384xf32>
    %406 = arith.select %404, %405, %402 : vector<4x384xi1>, vector<4x384xf32>
    %407 = tpu.concatenate %399, %392, %406 in 1 : vector<4x384xf32>, vector<4x384xf32>, vector<4x384xf32> -> vector<4x1152xf32>
    %408 = arith.truncf %407 : vector<4x1152xf32> to vector<4x1152xbf16>
    %c0_171 = arith.constant 0 : index
    %c0_172 = arith.constant 0 : index
    %409 = vector.load %arg27[%c0_171, %c0_172] : memref<1152x128xbf16, #tpu.memory_space<vmem>>, vector<1152x128xbf16>
    %cst_173 = arith.constant dense<0.000000e+00> : vector<4x128xf32>
    %410 = tpu.matmul %408, %409, %cst_173 {dimension_numbers = #tpu.dot_dimension_numbers<[1], [0], [0], [1], [0, 0, 1, 1], [], []>} : vector<4x1152xbf16>, vector<1152x128xbf16>, vector<4x128xf32> -> vector<4x128xf32>
    %c0_174 = arith.constant 0 : index
    %c0_175 = arith.constant 0 : index
    %411 = vector.load %arg28[%c0_174, %c0_175] : memref<1x128xf32, #tpu.memory_space<vmem>>, vector<1x128xf32>
    %412 = vector.broadcast %411 : vector<1x128xf32> to vector<4x128xf32>
    %413 = arith.addf %410, %412 : vector<4x128xf32>
    %cst_176 = arith.constant dense<0.000000e+00> : vector<128xf32>
    %414 = vector.multi_reduction <add>, %413, %cst_176 [0] : vector<4x128xf32> to vector<128xf32>
    %415 = vector.shape_cast %414 : vector<128xf32> to vector<1x128xf32>
    %cst_177 = arith.constant 4.000000e+00 : f32
    %416 = vector.broadcast %cst_177 : f32 to vector<1x128xf32>
    %417 = arith.divf %415, %416 : vector<1x128xf32>
    %418 = vector.broadcast %417 : vector<1x128xf32> to vector<4x128xf32>
    %419 = arith.subf %413, %418 : vector<4x128xf32>
    %420 = arith.mulf %419, %419 : vector<4x128xf32>
    %cst_178 = arith.constant dense<0.000000e+00> : vector<128xf32>
    %421 = vector.multi_reduction <add>, %420, %cst_178 [0] : vector<4x128xf32> to vector<128xf32>
    %422 = vector.shape_cast %421 : vector<128xf32> to vector<1x128xf32>
    %cst_179 = arith.constant 4.000000e+00 : f32
    %423 = vector.broadcast %cst_179 : f32 to vector<1x128xf32>
    %424 = arith.divf %422, %423 : vector<1x128xf32>
    %425 = vector.broadcast %417 : vector<1x128xf32> to vector<4x128xf32>
    %426 = arith.subf %413, %425 : vector<4x128xf32>
    %cst_180 = arith.constant 9.99999974E-6 : f32
    %427 = vector.broadcast %cst_180 : f32 to vector<1x128xf32>
    %428 = arith.addf %424, %427 : vector<1x128xf32>
    %429 = math.rsqrt %428 : vector<1x128xf32>
    %430 = vector.broadcast %429 : vector<1x128xf32> to vector<4x128xf32>
    %431 = arith.mulf %426, %430 : vector<4x128xf32>
    %cst_181 = arith.constant 0.000000e+00 : f32
    %432 = vector.broadcast %cst_181 : f32 to vector<4x128xf32>
    %433 = arith.maximumf %431, %432 : vector<4x128xf32>
    %c0_i32_182 = arith.constant 0 : i32
    %434 = vector.broadcast %c0_i32_182 : i32 to vector<4x1xi32>
    %435 = arith.cmpi eq, %2, %434 : vector<4x1xi32>
    %c1_i32_183 = arith.constant 1 : i32
    %436 = tpu.dynamic_rotate %433 by %c1_i32_183 dim 0 : vector<4x128xf32>, i32 -> vector<4x128xf32>
    %cst_184 = arith.constant 0.000000e+00 : f32
    %437 = vector.shape_cast %435 : vector<4x1xi1> to vector<4x1xi1>
    %438 = vector.broadcast %437 : vector<4x1xi1> to vector<4x128xi1>
    %439 = vector.broadcast %cst_184 : f32 to vector<4x128xf32>
    %440 = arith.select %438, %439, %436 : vector<4x128xi1>, vector<4x128xf32>
    %c3_i32_185 = arith.constant 3 : i32
    %441 = vector.broadcast %c3_i32_185 : i32 to vector<4x1xi32>
    %442 = arith.cmpi eq, %2, %441 : vector<4x1xi32>
    %c3_i32_186 = arith.constant 3 : i32
    %443 = tpu.dynamic_rotate %433 by %c3_i32_186 dim 0 : vector<4x128xf32>, i32 -> vector<4x128xf32>
    %cst_187 = arith.constant 0.000000e+00 : f32
    %444 = vector.shape_cast %442 : vector<4x1xi1> to vector<4x1xi1>
    %445 = vector.broadcast %444 : vector<4x1xi1> to vector<4x128xi1>
    %446 = vector.broadcast %cst_187 : f32 to vector<4x128xf32>
    %447 = arith.select %445, %446, %443 : vector<4x128xi1>, vector<4x128xf32>
    %448 = tpu.concatenate %440, %433, %447 in 1 : vector<4x128xf32>, vector<4x128xf32>, vector<4x128xf32> -> vector<4x384xf32>
    %449 = arith.truncf %448 : vector<4x384xf32> to vector<4x384xbf16>
    %c0_188 = arith.constant 0 : index
    %c0_189 = arith.constant 0 : index
    %450 = vector.load %arg29[%c0_188, %c0_189] : memref<384x128xbf16, #tpu.memory_space<vmem>>, vector<384x128xbf16>
    %cst_190 = arith.constant dense<0.000000e+00> : vector<4x128xf32>
    %451 = tpu.matmul %449, %450, %cst_190 {dimension_numbers = #tpu.dot_dimension_numbers<[1], [0], [0], [1], [0, 0, 1, 1], [], []>} : vector<4x384xbf16>, vector<384x128xbf16>, vector<4x128xf32> -> vector<4x128xf32>
    %c0_191 = arith.constant 0 : index
    %c0_192 = arith.constant 0 : index
    %452 = vector.load %arg30[%c0_191, %c0_192] : memref<1x128xf32, #tpu.memory_space<vmem>>, vector<1x128xf32>
    %453 = vector.broadcast %452 : vector<1x128xf32> to vector<4x128xf32>
    %454 = arith.addf %451, %453 : vector<4x128xf32>
    %cst_193 = arith.constant dense<0.000000e+00> : vector<128xf32>
    %455 = vector.multi_reduction <add>, %454, %cst_193 [0] : vector<4x128xf32> to vector<128xf32>
    %456 = vector.shape_cast %455 : vector<128xf32> to vector<1x128xf32>
    %cst_194 = arith.constant 4.000000e+00 : f32
    %457 = vector.broadcast %cst_194 : f32 to vector<1x128xf32>
    %458 = arith.divf %456, %457 : vector<1x128xf32>
    %459 = vector.broadcast %458 : vector<1x128xf32> to vector<4x128xf32>
    %460 = arith.subf %454, %459 : vector<4x128xf32>
    %461 = arith.mulf %460, %460 : vector<4x128xf32>
    %cst_195 = arith.constant dense<0.000000e+00> : vector<128xf32>
    %462 = vector.multi_reduction <add>, %461, %cst_195 [0] : vector<4x128xf32> to vector<128xf32>
    %463 = vector.shape_cast %462 : vector<128xf32> to vector<1x128xf32>
    %cst_196 = arith.constant 4.000000e+00 : f32
    %464 = vector.broadcast %cst_196 : f32 to vector<1x128xf32>
    %465 = arith.divf %463, %464 : vector<1x128xf32>
    %466 = vector.broadcast %458 : vector<1x128xf32> to vector<4x128xf32>
    %467 = arith.subf %454, %466 : vector<4x128xf32>
    %cst_197 = arith.constant 9.99999974E-6 : f32
    %468 = vector.broadcast %cst_197 : f32 to vector<1x128xf32>
    %469 = arith.addf %465, %468 : vector<1x128xf32>
    %470 = math.rsqrt %469 : vector<1x128xf32>
    %471 = vector.broadcast %470 : vector<1x128xf32> to vector<4x128xf32>
    %472 = arith.mulf %467, %471 : vector<4x128xf32>
    %cst_198 = arith.constant 0.000000e+00 : f32
    %473 = vector.broadcast %cst_198 : f32 to vector<4x128xf32>
    %474 = arith.maximumf %472, %473 : vector<4x128xf32>
    %c0_199 = arith.constant 0 : index
    %c0_200 = arith.constant 0 : index
    %475 = vector.load %arg4[%c0_199, %c0_200] : memref<8x4xbf16, #tpu.memory_space<vmem>>, vector<8x4xbf16>
    %476 = arith.truncf %474 : vector<4x128xf32> to vector<4x128xbf16>
    %cst_201 = arith.constant dense<0.000000e+00> : vector<8x128xf32>
    %477 = tpu.matmul %475, %476, %cst_201 {dimension_numbers = #tpu.dot_dimension_numbers<[1], [0], [0], [1], [0, 0, 1, 1], [], []>} : vector<8x4xbf16>, vector<4x128xbf16>, vector<8x128xf32> -> vector<8x128xf32>
    %478 = tpu.concatenate %477, %220 in 1 : vector<8x128xf32>, vector<8x64xf32> -> vector<8x192xf32>
    %c0_i32_202 = arith.constant 0 : i32
    %479 = vector.broadcast %c0_i32_202 : i32 to vector<8x1xi32>
    %480 = arith.cmpi eq, %1, %479 : vector<8x1xi32>
    %c1_i32_203 = arith.constant 1 : i32
    %481 = tpu.dynamic_rotate %478 by %c1_i32_203 dim 0 : vector<8x192xf32>, i32 -> vector<8x192xf32>
    %cst_204 = arith.constant 0.000000e+00 : f32
    %482 = vector.shape_cast %480 : vector<8x1xi1> to vector<8x1xi1>
    %483 = vector.broadcast %482 : vector<8x1xi1> to vector<8x192xi1>
    %484 = vector.broadcast %cst_204 : f32 to vector<8x192xf32>
    %485 = arith.select %483, %484, %481 : vector<8x192xi1>, vector<8x192xf32>
    %c7_i32_205 = arith.constant 7 : i32
    %486 = vector.broadcast %c7_i32_205 : i32 to vector<8x1xi32>
    %487 = arith.cmpi eq, %1, %486 : vector<8x1xi32>
    %c7_i32_206 = arith.constant 7 : i32
    %488 = tpu.dynamic_rotate %478 by %c7_i32_206 dim 0 : vector<8x192xf32>, i32 -> vector<8x192xf32>
    %cst_207 = arith.constant 0.000000e+00 : f32
    %489 = vector.shape_cast %487 : vector<8x1xi1> to vector<8x1xi1>
    %490 = vector.broadcast %489 : vector<8x1xi1> to vector<8x192xi1>
    %491 = vector.broadcast %cst_207 : f32 to vector<8x192xf32>
    %492 = arith.select %490, %491, %488 : vector<8x192xi1>, vector<8x192xf32>
    %493 = tpu.concatenate %485, %478, %492 in 1 : vector<8x192xf32>, vector<8x192xf32>, vector<8x192xf32> -> vector<8x576xf32>
    %494 = arith.truncf %493 : vector<8x576xf32> to vector<8x576xbf16>
    %c0_208 = arith.constant 0 : index
    %c0_209 = arith.constant 0 : index
    %495 = vector.load %arg31[%c0_208, %c0_209] : memref<576x64xbf16, #tpu.memory_space<vmem>>, vector<576x64xbf16>
    %cst_210 = arith.constant dense<0.000000e+00> : vector<8x64xf32>
    %496 = tpu.matmul %494, %495, %cst_210 {dimension_numbers = #tpu.dot_dimension_numbers<[1], [0], [0], [1], [0, 0, 1, 1], [], []>} : vector<8x576xbf16>, vector<576x64xbf16>, vector<8x64xf32> -> vector<8x64xf32>
    %c0_211 = arith.constant 0 : index
    %c0_212 = arith.constant 0 : index
    %497 = vector.load %arg32[%c0_211, %c0_212] : memref<1x64xf32, #tpu.memory_space<vmem>>, vector<1x64xf32>
    %498 = vector.broadcast %497 : vector<1x64xf32> to vector<8x64xf32>
    %499 = arith.addf %496, %498 : vector<8x64xf32>
    %cst_213 = arith.constant dense<0.000000e+00> : vector<64xf32>
    %500 = vector.multi_reduction <add>, %499, %cst_213 [0] : vector<8x64xf32> to vector<64xf32>
    %501 = vector.shape_cast %500 : vector<64xf32> to vector<1x64xf32>
    %cst_214 = arith.constant 8.000000e+00 : f32
    %502 = vector.broadcast %cst_214 : f32 to vector<1x64xf32>
    %503 = arith.divf %501, %502 : vector<1x64xf32>
    %504 = vector.broadcast %503 : vector<1x64xf32> to vector<8x64xf32>
    %505 = arith.subf %499, %504 : vector<8x64xf32>
    %506 = arith.mulf %505, %505 : vector<8x64xf32>
    %cst_215 = arith.constant dense<0.000000e+00> : vector<64xf32>
    %507 = vector.multi_reduction <add>, %506, %cst_215 [0] : vector<8x64xf32> to vector<64xf32>
    %508 = vector.shape_cast %507 : vector<64xf32> to vector<1x64xf32>
    %cst_216 = arith.constant 8.000000e+00 : f32
    %509 = vector.broadcast %cst_216 : f32 to vector<1x64xf32>
    %510 = arith.divf %508, %509 : vector<1x64xf32>
    %511 = vector.broadcast %503 : vector<1x64xf32> to vector<8x64xf32>
    %512 = arith.subf %499, %511 : vector<8x64xf32>
    %cst_217 = arith.constant 9.99999974E-6 : f32
    %513 = vector.broadcast %cst_217 : f32 to vector<1x64xf32>
    %514 = arith.addf %510, %513 : vector<1x64xf32>
    %515 = math.rsqrt %514 : vector<1x64xf32>
    %516 = vector.broadcast %515 : vector<1x64xf32> to vector<8x64xf32>
    %517 = arith.mulf %512, %516 : vector<8x64xf32>
    %cst_218 = arith.constant 0.000000e+00 : f32
    %518 = vector.broadcast %cst_218 : f32 to vector<8x64xf32>
    %519 = arith.maximumf %517, %518 : vector<8x64xf32>
    %c0_i32_219 = arith.constant 0 : i32
    %520 = vector.broadcast %c0_i32_219 : i32 to vector<8x1xi32>
    %521 = arith.cmpi eq, %1, %520 : vector<8x1xi32>
    %c1_i32_220 = arith.constant 1 : i32
    %522 = tpu.dynamic_rotate %519 by %c1_i32_220 dim 0 : vector<8x64xf32>, i32 -> vector<8x64xf32>
    %cst_221 = arith.constant 0.000000e+00 : f32
    %523 = vector.shape_cast %521 : vector<8x1xi1> to vector<8x1xi1>
    %524 = vector.broadcast %523 : vector<8x1xi1> to vector<8x64xi1>
    %525 = vector.broadcast %cst_221 : f32 to vector<8x64xf32>
    %526 = arith.select %524, %525, %522 : vector<8x64xi1>, vector<8x64xf32>
    %c7_i32_222 = arith.constant 7 : i32
    %527 = vector.broadcast %c7_i32_222 : i32 to vector<8x1xi32>
    %528 = arith.cmpi eq, %1, %527 : vector<8x1xi32>
    %c7_i32_223 = arith.constant 7 : i32
    %529 = tpu.dynamic_rotate %519 by %c7_i32_223 dim 0 : vector<8x64xf32>, i32 -> vector<8x64xf32>
    %cst_224 = arith.constant 0.000000e+00 : f32
    %530 = vector.shape_cast %528 : vector<8x1xi1> to vector<8x1xi1>
    %531 = vector.broadcast %530 : vector<8x1xi1> to vector<8x64xi1>
    %532 = vector.broadcast %cst_224 : f32 to vector<8x64xf32>
    %533 = arith.select %531, %532, %529 : vector<8x64xi1>, vector<8x64xf32>
    %534 = tpu.concatenate %526, %519, %533 in 1 : vector<8x64xf32>, vector<8x64xf32>, vector<8x64xf32> -> vector<8x192xf32>
    %535 = arith.truncf %534 : vector<8x192xf32> to vector<8x192xbf16>
    %c0_225 = arith.constant 0 : index
    %c0_226 = arith.constant 0 : index
    %536 = vector.load %arg33[%c0_225, %c0_226] : memref<192x64xbf16, #tpu.memory_space<vmem>>, vector<192x64xbf16>
    %cst_227 = arith.constant dense<0.000000e+00> : vector<8x64xf32>
    %537 = tpu.matmul %535, %536, %cst_227 {dimension_numbers = #tpu.dot_dimension_numbers<[1], [0], [0], [1], [0, 0, 1, 1], [], []>} : vector<8x192xbf16>, vector<192x64xbf16>, vector<8x64xf32> -> vector<8x64xf32>
    %c0_228 = arith.constant 0 : index
    %c0_229 = arith.constant 0 : index
    %538 = vector.load %arg34[%c0_228, %c0_229] : memref<1x64xf32, #tpu.memory_space<vmem>>, vector<1x64xf32>
    %539 = vector.broadcast %538 : vector<1x64xf32> to vector<8x64xf32>
    %540 = arith.addf %537, %539 : vector<8x64xf32>
    %cst_230 = arith.constant dense<0.000000e+00> : vector<64xf32>
    %541 = vector.multi_reduction <add>, %540, %cst_230 [0] : vector<8x64xf32> to vector<64xf32>
    %542 = vector.shape_cast %541 : vector<64xf32> to vector<1x64xf32>
    %cst_231 = arith.constant 8.000000e+00 : f32
    %543 = vector.broadcast %cst_231 : f32 to vector<1x64xf32>
    %544 = arith.divf %542, %543 : vector<1x64xf32>
    %545 = vector.broadcast %544 : vector<1x64xf32> to vector<8x64xf32>
    %546 = arith.subf %540, %545 : vector<8x64xf32>
    %547 = arith.mulf %546, %546 : vector<8x64xf32>
    %cst_232 = arith.constant dense<0.000000e+00> : vector<64xf32>
    %548 = vector.multi_reduction <add>, %547, %cst_232 [0] : vector<8x64xf32> to vector<64xf32>
    %549 = vector.shape_cast %548 : vector<64xf32> to vector<1x64xf32>
    %cst_233 = arith.constant 8.000000e+00 : f32
    %550 = vector.broadcast %cst_233 : f32 to vector<1x64xf32>
    %551 = arith.divf %549, %550 : vector<1x64xf32>
    %552 = vector.broadcast %544 : vector<1x64xf32> to vector<8x64xf32>
    %553 = arith.subf %540, %552 : vector<8x64xf32>
    %cst_234 = arith.constant 9.99999974E-6 : f32
    %554 = vector.broadcast %cst_234 : f32 to vector<1x64xf32>
    %555 = arith.addf %551, %554 : vector<1x64xf32>
    %556 = math.rsqrt %555 : vector<1x64xf32>
    %557 = vector.broadcast %556 : vector<1x64xf32> to vector<8x64xf32>
    %558 = arith.mulf %553, %557 : vector<8x64xf32>
    %cst_235 = arith.constant 0.000000e+00 : f32
    %559 = vector.broadcast %cst_235 : f32 to vector<8x64xf32>
    %560 = arith.maximumf %558, %559 : vector<8x64xf32>
    %c0_236 = arith.constant 0 : index
    %c0_237 = arith.constant 0 : index
    %561 = vector.load %arg5[%c0_236, %c0_237] : memref<16x8xbf16, #tpu.memory_space<vmem>>, vector<16x8xbf16>
    %562 = arith.truncf %560 : vector<8x64xf32> to vector<8x64xbf16>
    %cst_238 = arith.constant dense<0.000000e+00> : vector<16x64xf32>
    %563 = tpu.matmul %561, %562, %cst_238 {dimension_numbers = #tpu.dot_dimension_numbers<[1], [0], [0], [1], [0, 0, 1, 1], [], []>} : vector<16x8xbf16>, vector<8x64xbf16>, vector<16x64xf32> -> vector<16x64xf32>
    %564 = tpu.concatenate %563, %136 in 1 : vector<16x64xf32>, vector<16x32xf32> -> vector<16x96xf32>
    %c0_i32_239 = arith.constant 0 : i32
    %565 = vector.broadcast %c0_i32_239 : i32 to vector<16x1xi32>
    %566 = arith.cmpi eq, %0, %565 : vector<16x1xi32>
    %c1_i32_240 = arith.constant 1 : i32
    %567 = tpu.dynamic_rotate %564 by %c1_i32_240 dim 0 : vector<16x96xf32>, i32 -> vector<16x96xf32>
    %cst_241 = arith.constant 0.000000e+00 : f32
    %568 = vector.shape_cast %566 : vector<16x1xi1> to vector<16x1xi1>
    %569 = vector.broadcast %568 : vector<16x1xi1> to vector<16x96xi1>
    %570 = vector.broadcast %cst_241 : f32 to vector<16x96xf32>
    %571 = arith.select %569, %570, %567 : vector<16x96xi1>, vector<16x96xf32>
    %c15_i32_242 = arith.constant 15 : i32
    %572 = vector.broadcast %c15_i32_242 : i32 to vector<16x1xi32>
    %573 = arith.cmpi eq, %0, %572 : vector<16x1xi32>
    %c15_i32_243 = arith.constant 15 : i32
    %574 = tpu.dynamic_rotate %564 by %c15_i32_243 dim 0 : vector<16x96xf32>, i32 -> vector<16x96xf32>
    %cst_244 = arith.constant 0.000000e+00 : f32
    %575 = vector.shape_cast %573 : vector<16x1xi1> to vector<16x1xi1>
    %576 = vector.broadcast %575 : vector<16x1xi1> to vector<16x96xi1>
    %577 = vector.broadcast %cst_244 : f32 to vector<16x96xf32>
    %578 = arith.select %576, %577, %574 : vector<16x96xi1>, vector<16x96xf32>
    %579 = tpu.concatenate %571, %564, %578 in 1 : vector<16x96xf32>, vector<16x96xf32>, vector<16x96xf32> -> vector<16x288xf32>
    %580 = arith.truncf %579 : vector<16x288xf32> to vector<16x288xbf16>
    %c0_245 = arith.constant 0 : index
    %c0_246 = arith.constant 0 : index
    %581 = vector.load %arg35[%c0_245, %c0_246] : memref<288x32xbf16, #tpu.memory_space<vmem>>, vector<288x32xbf16>
    %cst_247 = arith.constant dense<0.000000e+00> : vector<16x32xf32>
    %582 = tpu.matmul %580, %581, %cst_247 {dimension_numbers = #tpu.dot_dimension_numbers<[1], [0], [0], [1], [0, 0, 1, 1], [], []>} : vector<16x288xbf16>, vector<288x32xbf16>, vector<16x32xf32> -> vector<16x32xf32>
    %c0_248 = arith.constant 0 : index
    %c0_249 = arith.constant 0 : index
    %583 = vector.load %arg36[%c0_248, %c0_249] : memref<1x32xf32, #tpu.memory_space<vmem>>, vector<1x32xf32>
    %584 = vector.broadcast %583 : vector<1x32xf32> to vector<16x32xf32>
    %585 = arith.addf %582, %584 : vector<16x32xf32>
    %cst_250 = arith.constant dense<0.000000e+00> : vector<32xf32>
    %586 = vector.multi_reduction <add>, %585, %cst_250 [0] : vector<16x32xf32> to vector<32xf32>
    %587 = vector.shape_cast %586 : vector<32xf32> to vector<1x32xf32>
    %cst_251 = arith.constant 1.600000e+01 : f32
    %588 = vector.broadcast %cst_251 : f32 to vector<1x32xf32>
    %589 = arith.divf %587, %588 : vector<1x32xf32>
    %590 = vector.broadcast %589 : vector<1x32xf32> to vector<16x32xf32>
    %591 = arith.subf %585, %590 : vector<16x32xf32>
    %592 = arith.mulf %591, %591 : vector<16x32xf32>
    %cst_252 = arith.constant dense<0.000000e+00> : vector<32xf32>
    %593 = vector.multi_reduction <add>, %592, %cst_252 [0] : vector<16x32xf32> to vector<32xf32>
    %594 = vector.shape_cast %593 : vector<32xf32> to vector<1x32xf32>
    %cst_253 = arith.constant 1.600000e+01 : f32
    %595 = vector.broadcast %cst_253 : f32 to vector<1x32xf32>
    %596 = arith.divf %594, %595 : vector<1x32xf32>
    %597 = vector.broadcast %589 : vector<1x32xf32> to vector<16x32xf32>
    %598 = arith.subf %585, %597 : vector<16x32xf32>
    %cst_254 = arith.constant 9.99999974E-6 : f32
    %599 = vector.broadcast %cst_254 : f32 to vector<1x32xf32>
    %600 = arith.addf %596, %599 : vector<1x32xf32>
    %601 = math.rsqrt %600 : vector<1x32xf32>
    %602 = vector.broadcast %601 : vector<1x32xf32> to vector<16x32xf32>
    %603 = arith.mulf %598, %602 : vector<16x32xf32>
    %cst_255 = arith.constant 0.000000e+00 : f32
    %604 = vector.broadcast %cst_255 : f32 to vector<16x32xf32>
    %605 = arith.maximumf %603, %604 : vector<16x32xf32>
    %c0_i32_256 = arith.constant 0 : i32
    %606 = vector.broadcast %c0_i32_256 : i32 to vector<16x1xi32>
    %607 = arith.cmpi eq, %0, %606 : vector<16x1xi32>
    %c1_i32_257 = arith.constant 1 : i32
    %608 = tpu.dynamic_rotate %605 by %c1_i32_257 dim 0 : vector<16x32xf32>, i32 -> vector<16x32xf32>
    %cst_258 = arith.constant 0.000000e+00 : f32
    %609 = vector.shape_cast %607 : vector<16x1xi1> to vector<16x1xi1>
    %610 = vector.broadcast %609 : vector<16x1xi1> to vector<16x32xi1>
    %611 = vector.broadcast %cst_258 : f32 to vector<16x32xf32>
    %612 = arith.select %610, %611, %608 : vector<16x32xi1>, vector<16x32xf32>
    %c15_i32_259 = arith.constant 15 : i32
    %613 = vector.broadcast %c15_i32_259 : i32 to vector<16x1xi32>
    %614 = arith.cmpi eq, %0, %613 : vector<16x1xi32>
    %c15_i32_260 = arith.constant 15 : i32
    %615 = tpu.dynamic_rotate %605 by %c15_i32_260 dim 0 : vector<16x32xf32>, i32 -> vector<16x32xf32>
    %cst_261 = arith.constant 0.000000e+00 : f32
    %616 = vector.shape_cast %614 : vector<16x1xi1> to vector<16x1xi1>
    %617 = vector.broadcast %616 : vector<16x1xi1> to vector<16x32xi1>
    %618 = vector.broadcast %cst_261 : f32 to vector<16x32xf32>
    %619 = arith.select %617, %618, %615 : vector<16x32xi1>, vector<16x32xf32>
    %620 = tpu.concatenate %612, %605, %619 in 1 : vector<16x32xf32>, vector<16x32xf32>, vector<16x32xf32> -> vector<16x96xf32>
    %621 = arith.truncf %620 : vector<16x96xf32> to vector<16x96xbf16>
    %c0_262 = arith.constant 0 : index
    %c0_263 = arith.constant 0 : index
    %622 = vector.load %arg37[%c0_262, %c0_263] : memref<96x32xbf16, #tpu.memory_space<vmem>>, vector<96x32xbf16>
    %cst_264 = arith.constant dense<0.000000e+00> : vector<16x32xf32>
    %623 = tpu.matmul %621, %622, %cst_264 {dimension_numbers = #tpu.dot_dimension_numbers<[1], [0], [0], [1], [0, 0, 1, 1], [], []>} : vector<16x96xbf16>, vector<96x32xbf16>, vector<16x32xf32> -> vector<16x32xf32>
    %c0_265 = arith.constant 0 : index
    %c0_266 = arith.constant 0 : index
    %624 = vector.load %arg38[%c0_265, %c0_266] : memref<1x32xf32, #tpu.memory_space<vmem>>, vector<1x32xf32>
    %625 = vector.broadcast %624 : vector<1x32xf32> to vector<16x32xf32>
    %626 = arith.addf %623, %625 : vector<16x32xf32>
    %cst_267 = arith.constant dense<0.000000e+00> : vector<32xf32>
    %627 = vector.multi_reduction <add>, %626, %cst_267 [0] : vector<16x32xf32> to vector<32xf32>
    %628 = vector.shape_cast %627 : vector<32xf32> to vector<1x32xf32>
    %cst_268 = arith.constant 1.600000e+01 : f32
    %629 = vector.broadcast %cst_268 : f32 to vector<1x32xf32>
    %630 = arith.divf %628, %629 : vector<1x32xf32>
    %631 = vector.broadcast %630 : vector<1x32xf32> to vector<16x32xf32>
    %632 = arith.subf %626, %631 : vector<16x32xf32>
    %633 = arith.mulf %632, %632 : vector<16x32xf32>
    %cst_269 = arith.constant dense<0.000000e+00> : vector<32xf32>
    %634 = vector.multi_reduction <add>, %633, %cst_269 [0] : vector<16x32xf32> to vector<32xf32>
    %635 = vector.shape_cast %634 : vector<32xf32> to vector<1x32xf32>
    %cst_270 = arith.constant 1.600000e+01 : f32
    %636 = vector.broadcast %cst_270 : f32 to vector<1x32xf32>
    %637 = arith.divf %635, %636 : vector<1x32xf32>
    %638 = vector.broadcast %630 : vector<1x32xf32> to vector<16x32xf32>
    %639 = arith.subf %626, %638 : vector<16x32xf32>
    %cst_271 = arith.constant 9.99999974E-6 : f32
    %640 = vector.broadcast %cst_271 : f32 to vector<1x32xf32>
    %641 = arith.addf %637, %640 : vector<1x32xf32>
    %642 = math.rsqrt %641 : vector<1x32xf32>
    %643 = vector.broadcast %642 : vector<1x32xf32> to vector<16x32xf32>
    %644 = arith.mulf %639, %643 : vector<16x32xf32>
    %cst_272 = arith.constant 0.000000e+00 : f32
    %645 = vector.broadcast %cst_272 : f32 to vector<16x32xf32>
    %646 = arith.maximumf %644, %645 : vector<16x32xf32>
    %647 = tpu.transpose %646, [1, 0] : vector<16x32xf32> -> vector<32x16xf32>
    %648 = arith.truncf %647 : vector<32x16xf32> to vector<32x16xbf16>
    %c0_273 = arith.constant 0 : index
    %c0_274 = arith.constant 0 : index
    %649 = vector.load %arg39[%c0_273, %c0_274] : memref<1x32xbf16, #tpu.memory_space<vmem>>, vector<1x32xbf16>
    %cst_275 = arith.constant dense<0.000000e+00> : vector<1x16xf32>
    %650 = tpu.matmul %649, %648, %cst_275 {dimension_numbers = #tpu.dot_dimension_numbers<[1], [0], [0], [1], [0, 0, 1, 1], [], []>} : vector<1x32xbf16>, vector<32x16xbf16>, vector<1x16xf32> -> vector<1x16xf32>
    %c0_276 = arith.constant 0 : index
    %c0_277 = arith.constant 0 : index
    %651 = vector.load %arg40[%c0_276, %c0_277] : memref<1x1xf32, #tpu.memory_space<vmem>>, vector<1x1xf32>
    %652 = vector.broadcast %651 : vector<1x1xf32> to vector<1x16xf32>
    %653 = arith.addf %650, %652 : vector<1x16xf32>
    %c0_278 = arith.constant 0 : index
    %c0_279 = arith.constant 0 : index
    %c0_280 = arith.constant 0 : index
    %654 = vector.load %arg41[%c0_278, %c0_279, %c0_280] : memref<1x1x16xf32, #tpu.memory_space<vmem>>, vector<1x1x16xf32>
    %655 = vector.shape_cast %654 : vector<1x1x16xf32> to vector<1x16xf32>
    %656 = vector.shape_cast %653 : vector<1x16xf32> to vector<1x1x16xf32>
    tpu.vector_store %arg41[%c0_278, %c0_279, %c0_280], %656 {strides = array<i32>} : memref<1x1x16xf32, #tpu.memory_space<vmem>>, vector<1x1x16xf32>,
    return
  }
  func.func @transform_0(%arg0: i32) -> (i32, i32, i32) {
    %c0_i32 = arith.constant 0 : i32
    %c0_i32_0 = arith.constant 0 : i32
    %c0_i32_1 = arith.constant 0 : i32
    return %arg0, %c0_i32, %c0_i32_0 : i32, i32, i32
  }
  func.func @transform_1(%arg0: i32) -> (i32, i32, i32) {
    %c0_i32 = arith.constant 0 : i32
    %c0_i32_0 = arith.constant 0 : i32
    %c0_i32_1 = arith.constant 0 : i32
    return %arg0, %c0_i32, %c0_i32_0 : i32, i32, i32
  }
  func.func @transform_2(%arg0: i32) -> (i32, i32) {
    %c0_i32 = arith.constant 0 : i32
    %c0_i32_0 = arith.constant 0 : i32
    %c0_i32_1 = arith.constant 0 : i32
    return %c0_i32, %c0_i32_0 : i32, i32
  }
  func.func @transform_3(%arg0: i32) -> (i32, i32) {
    %c0_i32 = arith.constant 0 : i32
    %c0_i32_0 = arith.constant 0 : i32
    %c0_i32_1 = arith.constant 0 : i32
    return %c0_i32, %c0_i32_0 : i32, i32
  }
  func.func @transform_4(%arg0: i32) -> (i32, i32) {
    %c0_i32 = arith.constant 0 : i32
    %c0_i32_0 = arith.constant 0 : i32
    %c0_i32_1 = arith.constant 0 : i32
    return %c0_i32, %c0_i32_0 : i32, i32
  }
  func.func @transform_5(%arg0: i32) -> (i32, i32) {
    %c0_i32 = arith.constant 0 : i32
    %c0_i32_0 = arith.constant 0 : i32
    %c0_i32_1 = arith.constant 0 : i32
    return %c0_i32, %c0_i32_0 : i32, i32
  }
  func.func @transform_6(%arg0: i32) -> (i32, i32) {
    %c0_i32 = arith.constant 0 : i32
    %c0_i32_0 = arith.constant 0 : i32
    %c0_i32_1 = arith.constant 0 : i32
    return %c0_i32, %c0_i32_0 : i32, i32
  }
  func.func @transform_7(%arg0: i32) -> (i32, i32) {
    %c0_i32 = arith.constant 0 : i32
    %c0_i32_0 = arith.constant 0 : i32
    %c0_i32_1 = arith.constant 0 : i32
    return %c0_i32, %c0_i32_0 : i32, i32
  }
  func.func @transform_8(%arg0: i32) -> (i32, i32) {
    %c0_i32 = arith.constant 0 : i32
    %c0_i32_0 = arith.constant 0 : i32
    %c0_i32_1 = arith.constant 0 : i32
    return %c0_i32, %c0_i32_0 : i32, i32
  }
  func.func @transform_9(%arg0: i32) -> (i32, i32) {
    %c0_i32 = arith.constant 0 : i32
    %c0_i32_0 = arith.constant 0 : i32
    %c0_i32_1 = arith.constant 0 : i32
    return %c0_i32, %c0_i32_0 : i32, i32
  }
  func.func @transform_10(%arg0: i32) -> (i32, i32, i32) {
    %c0_i32 = arith.constant 0 : i32
    %c0_i32_0 = arith.constant 0 : i32
    %c0_i32_1 = arith.constant 0 : i32
    %c0_i32_2 = arith.constant 0 : i32
    return %c0_i32, %c0_i32_0, %c0_i32_1 : i32, i32, i32
  }
  func.func @transform_11(%arg0: i32) -> (i32, i32) {
    %c0_i32 = arith.constant 0 : i32
    %c0_i32_0 = arith.constant 0 : i32
    %c0_i32_1 = arith.constant 0 : i32
    return %c0_i32, %c0_i32_0 : i32, i32
  }
  func.func @transform_12(%arg0: i32) -> (i32, i32) {
    %c0_i32 = arith.constant 0 : i32
    %c0_i32_0 = arith.constant 0 : i32
    %c0_i32_1 = arith.constant 0 : i32
    return %c0_i32, %c0_i32_0 : i32, i32
  }
  func.func @transform_13(%arg0: i32) -> (i32, i32) {
    %c0_i32 = arith.constant 0 : i32
    %c0_i32_0 = arith.constant 0 : i32
    %c0_i32_1 = arith.constant 0 : i32
    return %c0_i32, %c0_i32_0 : i32, i32
  }
  func.func @transform_14(%arg0: i32) -> (i32, i32) {
    %c0_i32 = arith.constant 0 : i32
    %c0_i32_0 = arith.constant 0 : i32
    %c0_i32_1 = arith.constant 0 : i32
    return %c0_i32, %c0_i32_0 : i32, i32
  }
  func.func @transform_15(%arg0: i32) -> (i32, i32) {
    %c0_i32 = arith.constant 0 : i32
    %c0_i32_0 = arith.constant 0 : i32
    %c0_i32_1 = arith.constant 0 : i32
    return %c0_i32, %c0_i32_0 : i32, i32
  }
  func.func @transform_16(%arg0: i32) -> (i32, i32) {
    %c0_i32 = arith.constant 0 : i32
    %c0_i32_0 = arith.constant 0 : i32
    %c0_i32_1 = arith.constant 0 : i32
    return %c0_i32, %c0_i32_0 : i32, i32
  }
  func.func @transform_17(%arg0: i32) -> (i32, i32) {
    %c0_i32 = arith.constant 0 : i32
    %c0_i32_0 = arith.constant 0 : i32
    %c0_i32_1 = arith.constant 0 : i32
    return %c0_i32, %c0_i32_0 : i32, i32
  }
  func.func @transform_18(%arg0: i32) -> (i32, i32) {
    %c0_i32 = arith.constant 0 : i32
    %c0_i32_0 = arith.constant 0 : i32
    %c0_i32_1 = arith.constant 0 : i32
    return %c0_i32, %c0_i32_0 : i32, i32
  }
  func.func @transform_19(%arg0: i32) -> (i32, i32) {
    %c0_i32 = arith.constant 0 : i32
    %c0_i32_0 = arith.constant 0 : i32
    %c0_i32_1 = arith.constant 0 : i32
    return %c0_i32, %c0_i32_0 : i32, i32
  }
  func.func @transform_20(%arg0: i32) -> (i32, i32) {
    %c0_i32 = arith.constant 0 : i32
    %c0_i32_0 = arith.constant 0 : i32
    %c0_i32_1 = arith.constant 0 : i32
    return %c0_i32, %c0_i32_0 : i32, i32
  }
  func.func @transform_21(%arg0: i32) -> (i32, i32) {
    %c0_i32 = arith.constant 0 : i32
    %c0_i32_0 = arith.constant 0 : i32
    %c0_i32_1 = arith.constant 0 : i32
    return %c0_i32, %c0_i32_0 : i32, i32
  }
  func.func @transform_22(%arg0: i32) -> (i32, i32) {
    %c0_i32 = arith.constant 0 : i32
    %c0_i32_0 = arith.constant 0 : i32
    %c0_i32_1 = arith.constant 0 : i32
    return %c0_i32, %c0_i32_0 : i32, i32
  }
  func.func @transform_23(%arg0: i32) -> (i32, i32) {
    %c0_i32 = arith.constant 0 : i32
    %c0_i32_0 = arith.constant 0 : i32
    %c0_i32_1 = arith.constant 0 : i32
    return %c0_i32, %c0_i32_0 : i32, i32
  }
  func.func @transform_24(%arg0: i32) -> (i32, i32) {
    %c0_i32 = arith.constant 0 : i32
    %c0_i32_0 = arith.constant 0 : i32
    %c0_i32_1 = arith.constant 0 : i32
    return %c0_i32, %c0_i32_0 : i32, i32
  }
  func.func @transform_25(%arg0: i32) -> (i32, i32) {
    %c0_i32 = arith.constant 0 : i32
    %c0_i32_0 = arith.constant 0 : i32
    %c0_i32_1 = arith.constant 0 : i32
    return %c0_i32, %c0_i32_0 : i32, i32
  }
  func.func @transform_26(%arg0: i32) -> (i32, i32) {
    %c0_i32 = arith.constant 0 : i32
    %c0_i32_0 = arith.constant 0 : i32
    %c0_i32_1 = arith.constant 0 : i32
    return %c0_i32, %c0_i32_0 : i32, i32
  }
  func.func @transform_27(%arg0: i32) -> (i32, i32) {
    %c0_i32 = arith.constant 0 : i32
    %c0_i32_0 = arith.constant 0 : i32
    %c0_i32_1 = arith.constant 0 : i32
    return %c0_i32, %c0_i32_0 : i32, i32
  }
  func.func @transform_28(%arg0: i32) -> (i32, i32) {
    %c0_i32 = arith.constant 0 : i32
    %c0_i32_0 = arith.constant 0 : i32
    %c0_i32_1 = arith.constant 0 : i32
    return %c0_i32, %c0_i32_0 : i32, i32
  }
  func.func @transform_29(%arg0: i32) -> (i32, i32) {
    %c0_i32 = arith.constant 0 : i32
    %c0_i32_0 = arith.constant 0 : i32
    %c0_i32_1 = arith.constant 0 : i32
    return %c0_i32, %c0_i32_0 : i32, i32
  }
  func.func @transform_30(%arg0: i32) -> (i32, i32) {
    %c0_i32 = arith.constant 0 : i32
    %c0_i32_0 = arith.constant 0 : i32
    %c0_i32_1 = arith.constant 0 : i32
    return %c0_i32, %c0_i32_0 : i32, i32
  }
  func.func @transform_31(%arg0: i32) -> (i32, i32) {
    %c0_i32 = arith.constant 0 : i32
    %c0_i32_0 = arith.constant 0 : i32
    %c0_i32_1 = arith.constant 0 : i32
    return %c0_i32, %c0_i32_0 : i32, i32
  }
  func.func @transform_32(%arg0: i32) -> (i32, i32) {
    %c0_i32 = arith.constant 0 : i32
    %c0_i32_0 = arith.constant 0 : i32
    %c0_i32_1 = arith.constant 0 : i32
    return %c0_i32, %c0_i32_0 : i32, i32
  }
  func.func @transform_33(%arg0: i32) -> (i32, i32) {
    %c0_i32 = arith.constant 0 : i32
    %c0_i32_0 = arith.constant 0 : i32
    %c0_i32_1 = arith.constant 0 : i32
    return %c0_i32, %c0_i32_0 : i32, i32
  }
  func.func @transform_34(%arg0: i32) -> (i32, i32) {
    %c0_i32 = arith.constant 0 : i32
    %c0_i32_0 = arith.constant 0 : i32
    %c0_i32_1 = arith.constant 0 : i32
    return %c0_i32, %c0_i32_0 : i32, i32
  }
  func.func @transform_35(%arg0: i32) -> (i32, i32) {
    %c0_i32 = arith.constant 0 : i32
    %c0_i32_0 = arith.constant 0 : i32
    %c0_i32_1 = arith.constant 0 : i32
    return %c0_i32, %c0_i32_0 : i32, i32
  }
  func.func @transform_36(%arg0: i32) -> (i32, i32) {
    %c0_i32 = arith.constant 0 : i32
    %c0_i32_0 = arith.constant 0 : i32
    %c0_i32_1 = arith.constant 0 : i32
    return %c0_i32, %c0_i32_0 : i32, i32
  }
  func.func @transform_37(%arg0: i32) -> (i32, i32) {
    %c0_i32 = arith.constant 0 : i32
    %c0_i32_0 = arith.constant 0 : i32
    %c0_i32_1 = arith.constant 0 : i32
    return %c0_i32, %c0_i32_0 : i32, i32
  }
  func.func @transform_38(%arg0: i32) -> (i32, i32) {
    %c0_i32 = arith.constant 0 : i32
    %c0_i32_0 = arith.constant 0 : i32
    %c0_i32_1 = arith.constant 0 : i32
    return %c0_i32, %c0_i32_0 : i32, i32
  }
  func.func @transform_39(%arg0: i32) -> (i32, i32) {
    %c0_i32 = arith.constant 0 : i32
    %c0_i32_0 = arith.constant 0 : i32
    %c0_i32_1 = arith.constant 0 : i32
    return %c0_i32, %c0_i32_0 : i32, i32
  }
  func.func @transform_40(%arg0: i32) -> (i32, i32, i32) {
    %c0_i32 = arith.constant 0 : i32
    %c0_i32_0 = arith.constant 0 : i32
    %c0_i32_1 = arith.constant 0 : i32
    return %arg0, %c0_i32, %c0_i32_0 : i32, i32, i32
  }
}

</mosaic_0001>

<bundles_post_ra>
// kernel: forward.1
= control target key start
LH: loop header
LB: loop body
LE: loop exit
PB: predicated region body
PF: predicated region fallthrough
CT: control target
= control target key end

     0   :  { %s10049_s6 = smov 1   ;;  %s10050_s10 = smov 2   ;;  %s11514_s0 = inlined_call_operand.smem [shape: u32[41], index: -1, kind: input, shape index: {}] }
   0x1   :  { %s10136_s5 = sld [smem:[%s11514_s0]]   ;;  %s10051_s14 = smov 3  }
   0x2   :  { %s10141_s9 = sld [smem:[%s11514_s0 + %s10049_s6]]   ;;  %s10052_s18 = smov 4  }
   0x3   :  { %s10146_s13 = sld [smem:[%s11514_s0 + %s10050_s10]]   ;;  %s10053_s22 = smov 5  }
   0x4   :  { %s10151_s17 = sld [smem:[%s11514_s0 + %s10051_s14]]   ;;  %s10054_s26 = smov 6  }
   0x5   :  { %s10156_s21 = sld [smem:[%s11514_s0 + %s10052_s18]]   ;;  %s10055_s30 = smov 7  }
   0x6   :  { %s10161_s25 = sld [smem:[%s11514_s0 + %s10053_s22]]   ;;  %s10056_s4 = smov 8  }
   0x7   :  { %11562 = sst [smem:[#allocation56_spill]] %s10136_s5  ;;  %s10057_s10 = smov 9  }
   0x8   :  { %11563 = sst [smem:[#allocation57_spill]] %s10141_s9  ;;  %s10058_s15 = smov 10  }
   0x9   :  { %11564 = sst [smem:[#allocation58_spill]] %s10146_s13  ;;  %s10059_s20 = smov 11  }
   0xa   :  { %11565 = sst [smem:[#allocation59_spill]] %s10151_s17  ;;  %s10061_s1 = smov 13  }
   0xb   :  { %11566 = sst [smem:[#allocation60_spill]] %s10156_s21  ;;  %s10062_s7 = smov 14  }
   0xc   :  { %s10166_s29 = sld [smem:[%s11514_s0 + %s10054_s26]]   ;;  %s10060_s26 = smov 12  }
   0xd   :  { %s10171_s3 = sld [smem:[%s11514_s0 + %s10055_s30]]   ;;  %s10064_s22 = smov 16  }
   0xe   :  { %s10176_s8 = sld [smem:[%s11514_s0 + %s10056_s4]]   ;;  %s10065_s28 = smov 17  }
   0xf   :  { %s10181_s14 = sld [smem:[%s11514_s0 + %s10057_s10]]   ;;  %s10088_s23 = smov 40  }
  0x10   :  { %s10186_s19 = sld [smem:[%s11514_s0 + %s10058_s15]]   ;;  %s10063_s15 = smov 15  }
  0x11   :  { %s10191_s24 = sld [smem:[%s11514_s0 + %s10059_s20]]  }
  0x12   :  { %11567 = sst [smem:[#allocation61_spill]] %s10166_s29 }
  0x13   :  { %11568 = sst [smem:[#allocation62_spill]] %s10171_s3 }
  0x14   :  { %11569 = sst [smem:[#allocation63_spill]] %s10176_s8 }
  0x15   :  { %11570 = sst [smem:[#allocation64_spill]] %s10181_s14 }
  0x16   :  { %11571 = sst [smem:[#allocation65_spill]] %s10186_s19 }
  0x17   :  { %s10196_s30 = sld [smem:[%s11514_s0 + %s10060_s26]]  }
  0x18   :  { %s10201_s6 = sld [smem:[%s11514_s0 + %s10061_s1]]  }
  0x19   :  { %s10206_s12 = sld [smem:[%s11514_s0 + %s10062_s7]]   ;;  %s10066_s7 = smov 18  }
  0x1a   :  { %s10211_s20 = sld [smem:[%s11514_s0 + %s10063_s15]]   ;;  %s10067_s15 = smov 19  }
  0x1b   :  { %s10216_s27 = sld [smem:[%s11514_s0 + %s10064_s22]]   ;;  %s10068_s22 = smov 20  }
  0x1c   :  { %s10221_s4 = sld [smem:[%s11514_s0 + %s10065_s28]]   ;;  %s10069_s28 = smov 21  }
  0x1d   :  { %11572 = sst [smem:[#allocation66_spill]] %s10196_s30 }
  0x1e   :  { %11573 = sst [smem:[#allocation67_spill]] %s10201_s6 }
  0x1f   :  { %11574 = sst [smem:[#allocation68_spill]] %s10206_s12 }
  0x20   :  { %11575 = sst [smem:[#allocation69_spill]] %s10211_s20 }
  0x21   :  { %11576 = sst [smem:[#allocation70_spill]] %s10216_s27 }
  0x22   :  { %11577 = sst [smem:[#allocation71_spill]] %s10221_s4 }
  0x23   :  { %s10226_s21 = sld [smem:[%s11514_s0 + %s10066_s7]]   ;;  %s10070_s7 = smov 22  }
  0x24   :  { %s10231_s17 = sld [smem:[%s11514_s0 + %s10067_s15]]   ;;  %s10071_s15 = smov 23  }
  0x25   :  { %s10236_s13 = sld [smem:[%s11514_s0 + %s10068_s22]]   ;;  %s10072_s22 = smov 24  }
  0x26   :  { %s10241_s27 = sld [smem:[%s11514_s0 + %s10069_s28]]   ;;  %s10073_s28 = smov 25  }
  0x27   :  { %s10246_s12 = sld [smem:[%s11514_s0 + %s10070_s7]]   ;;  %s10074_s7 = smov 26  }
  0x28   :  { %s10251_s30 = sld [smem:[%s11514_s0 + %s10071_s15]]   ;;  %s10075_s15 = smov 27  }
  0x29   :  { %s10256_s19 = sld [smem:[%s11514_s0 + %s10072_s22]]   ;;  %s10076_s22 = smov 28  }
  0x2a   :  { %11578 = sst [smem:[#allocation72_spill]] %s10231_s17 }
  0x2b   :  { %11579 = sst [smem:[#allocation73_spill]] %s10236_s13 }
  0x2c   :  { %11580 = sst [smem:[#allocation74_spill]] %s10241_s27 }
  0x2d   :  { %11581 = sst [smem:[#allocation75_spill]] %s10246_s12 }
  0x2e   :  { %s10261_s5 = sld [smem:[%s11514_s0 + %s10073_s28]]   ;;  %s10077_s28 = smov 29  }
  0x2f   :  { %11582 = sst [smem:[#allocation76_spill]] %s10256_s19 }
  0x30   :  { %s10266_s12 = sld [smem:[%s11514_s0 + %s10074_s7]]   ;;  %s10078_s7 = smov 30  }
  0x31   :  { %s10271_s9 = sld [smem:[%s11514_s0 + %s10075_s15]]   ;;  %s10079_s15 = smov 31  }
  0x32   :  { %s10276_s19 = sld [smem:[%s11514_s0 + %s10076_s22]]   ;;  %s10080_s22 = smov 32  }
  0x33   :  { %s10286_s27 = sld [smem:[%s11514_s0 + %s10078_s7]]   ;;  %s10082_s7 = smov 34  }
  0x34   :  { %11583 = sst [smem:[#allocation77_spill]] %s10261_s5 }
  0x35   :  { %s10281_s5 = sld [smem:[%s11514_s0 + %s10077_s28]]   ;;  %s10081_s28 = smov 33  }
  0x36   :  { %11584 = sst [smem:[#allocation78_spill]] %s10266_s12 }
  0x37   :  { %11585 = sst [smem:[#allocation79_spill]] %s10271_s9 }
  0x38   :  { %s10291_s9 = sld [smem:[%s11514_s0 + %s10079_s15]]   ;;  %s10083_s15 = smov 35  }
  0x39   :  { %11587 = sst [smem:[#allocation81_spill]] %s10286_s27 }
  0x3a   :  { %s10296_s17 = sld [smem:[%s11514_s0 + %s10080_s22]]   ;;  %s10084_s22 = smov 36  }
  0x3b   :  { %11586 = sst [smem:[#allocation80_spill]] %s10281_s5 }
  0x3c   :  { %s10301_s5 = sld [smem:[%s11514_s0 + %s10081_s28]]   ;;  %s10085_s28 = smov 37  }
  0x3d   :  { %s10306_s27 = sld [smem:[%s11514_s0 + %s10082_s7]]   ;;  %s10086_s7 = smov 38  }
  0x3e   :  { %11588 = sst [smem:[#allocation82_spill]] %s10291_s9 }
  0x3f   :  { %s10311_s4 = sld [smem:[%s11514_s0 + %s10083_s15]]   ;;  %s10087_s15 = smov 39  }
  0x40   :  { %11589 = sst [smem:[#allocation83_spill]] %s10296_s17 }
  0x41   :  { %s10316_s17 = sld [smem:[%s11514_s0 + %s10084_s22]]  }
  0x42   :  { %11590 = sst [smem:[#allocation84_spill]] %s10301_s5 }
  0x43   :  { %11591 = sst [smem:[#allocation85_spill]] %s10306_s27 }
  0x44   :  { %s10321_s5 = sld [smem:[%s11514_s0 + %s10085_s28]]  }
  0x45   :  { %11592 = sst [smem:[#allocation86_spill]] %s10311_s4 }
  0x46   :  { %s10326_s27 = sld [smem:[%s11514_s0 + %s10086_s7]]  }
  0x47   :  { %11593 = sst [smem:[#allocation87_spill]] %s10316_s17 }
  0x48   :  { %s7314_s6 = sld [smem:[%s11514_s0 + %s10087_s15]]  }
  0x49   :  { %s10334_s17 = sld [smem:[%s11514_s0 + %s10088_s23]]  }
  0x4a   :  { %11594 = sst [smem:[#allocation88_spill]] %s10321_s5 }
  0x4e   :  { %v86_v0 = vstv %s7314_s6 }
  0x4f   :  { %87 = vst [vmem:[#allocation2] sm:$0x1] %v86_v0 }
  0x50   :  { %88 = vsyncpa [#allocation4], 0 }
  0x51   :  { %89 = vsyncpa [#allocation7], 0 }
  0x52   :  { %90 = vsyncpa [#allocation10], 0 }
  0x53   :  { %91 = vsyncpa [#allocation13], 0 }
  0x54   :  { %92 = vsyncpa [#allocation16], 0 }
  0x55   :  { %93 = vsyncpa [#allocation19], 0 }
  0x56   :  { %94 = vsyncpa [#allocation22], 0 }
  0x57   :  { %95 = vsyncpa [#allocation25], 0 }
  0x58   :  { %96 = vsyncpa [#allocation28], 0 }
  0x59   :  { %97 = vsyncpa [#allocation31], 0 }
  0x5a   :  { %98 = vsyncpa [#allocation34], 0 }
  0x5b   :  { %99 = vsyncpa [#allocation37], 0 }
  0x5c   :  { %100 = vsyncpa [#allocation40], 0 }
  0x5d   :  { %101 = vsyncpa [#allocation5], 0 }
  0x5e   :  { %103 = vsyncpa [#allocation5 + $0x1], 0  ;;  %s10336_s28 = smov 0   ;;  %s10338_s0 = smov 0  }
  0x5f   :  { %s10340_s6 = smov 0   ;;  %s10342_s1 = smov 0  }
  0x60 LB: > { %s11595_s5 = sld [smem:[#allocation88_spill]]  ;;  %s11597_s13 = sld [smem:[#allocation73_spill]]  ;;  %s10039_s0 = sphi %s10338_s0, %s11699_s0   ;;  %s10035_s28 = sphi %s10336_s28, %s11698_s28   ;;  %s10047_s1 = sphi %s10342_s1, %s11695_s1   ;;  %s10043_s6 = sphi %s10340_s6, %s11697_s6  }
  0x61   : > { %s11596_s14 = sld [smem:[#allocation64_spill]]  ;;  %s11598_s12 = sld [smem:[#allocation78_spill]] }
  0x62   : > { %s11599_s9 = sld [smem:[#allocation82_spill]]  ;;  %s11600_s4 = sld [smem:[#allocation86_spill]] }
  0x63   : > { %s11601_s3 = sld [smem:[#allocation62_spill]]  ;;  %s11602_s20 = sld [smem:[#allocation69_spill]] }
  0x64   : > { %s11603_s29 = sld [smem:[#allocation61_spill]]  ;;  %s11604_s8 = sld [smem:[#allocation63_spill]] }
  0x65   : > { %11605 = sst [smem:[#allocation89_spill]] %s10043_s6  ;;  %s10357_s2 = sadd.s32 4294967295, %s10047_s1  }
  0x66   : > { %s7317_s7 = sadd.s32 4294967294, %s10047_s1   ;;  %s10361_s10 = sadd.s32 1, %s10047_s1  }
  0x67   : > { %11606 = sst [smem:[#allocation90_spill]] %s10361_s10  ;;  %s966_s11 = sadd.s32 1, %s10043_s6 }
  0x68   : > { %s963_s15 = ssub.s32 %s10047_s1, %s10361_s10  ;;  %p976_p0 = scmp.ne.s32.totalorder %s10043_s6, %s10039_s0 }
  0x69   : > { %p964_p1 = scmp.eq.s32.totalorder %s963_s15, 0  ;;  %p977_p2 = scmp.eq.s32.totalorder %s10357_s2, 1 }
  0x6a   : > { %p982_p3 = scmp.ne.s32.totalorder %s10039_s0, %s10035_s28  ;;  %p983_p4 = scmp.eq.s32.totalorder %s7317_s7, 1 }
  0x6b   : > { %s10372_s16 = scalar_select %p964_p1, %s10043_s6, %s966_s11  }
  0x6c   : > { %p10374_p5 = por %p977_p2, %p976_p0  ;;  %p10378_p6 = por %p983_p4, %p982_p3 }
  0x6d   : > { %11607 = sst [smem:[#allocation91_spill]] %s10372_s16  ;;  %p7318_p7 = scmp.ge.s32.totalorder %s10047_s1, 1 }
  0x6e   : > { %s11608_s18 = scalar_select %p10374_p5, 1, 0 }
  0x6f   : > { %s11609_s23 = scalar_select %p10378_p6, 1, 0 }
  0x70   : > { %p990_p8 = scmp.lt.s32.totalorder %s10047_s1, 3  ;;  %p11537_p9 = scmp.eq.s32.totalorder %s10357_s2, 0 }
  0x71   : > { %11610 = sst [smem:[#allocation92_spill]] %s11609_s23  ;;  %s10089_s26 = smov [#allocation6]  }
  0x72   : > { %p10385_p10 = pnand %p7318_p7, %p990_p8  ;;  %s1023_s7 = sshll.u32 %s10089_s26, 4  ;;  %s1024_s7 = int_to_ptr.vmem [resolvable:$true] %s1023_s7 }
  0x73   : > { %s10090_s11 = smov [#allocation9]   ;;  %s10091_s6 = smov [#allocation12]  }
  0x74   : > { %s11611_s22 = scalar_select %p10385_p10, 1, 0 }
  0x75   : > { %p8496_p11 = pneg %p10385_p10  ;;  %s1047_s15 = sshll.u32 %s10090_s11, 4  ;;  %s10397_s15 = int_to_ptr.vmem [resolvable:$true] %s1047_s15 }
  0x76   : > { %s1072_s10 = sshll.u32 %s10091_s6, 4  ;;  %s9261_s23 = scalar_lea.hbm %s11603_s29, 16  ;;  %s10399_s10 = int_to_ptr.vmem [resolvable:$true] %s1072_s10 }
  0x77   : > { %p10393_p12 = pnand %p11537_p9, %p8496_p11  ;;  %p9262_p13 = scmp.ne.s32.totalorder %s11603_s29, %s9261_s23 }
  0x78   : > { %p9268_p3 = scmp.lt.u32.totalorder %s9261_s23, %s11603_s29 }
  0x79   : > { %p10405_p0 = pneg %p10393_p12 }
  0x7b   : > { %p9264_p1 = pnand %p10405_p0, %p9262_p13 }
  0x7d   : > { %p9265_p2 = pneg %p9264_p1 }
  0x7f   : > { %p9270_p4 = pnand %p9268_p3, %p9265_p2 }
  0x81   : > { %9273 = shalt.err (!%p9270_p4)
}
  0x82   : > { %s9274_s11 = scalar_lea.vmem %s1024_s7, 16  ;;  %s9281_s6 = scalar_lea.vmem %s1024_s7, 32 }
  0x83   : > { %p9275_p7 = scmp.ne.s32.totalorder %s1024_s7, %s9274_s11  ;;  %p9282_p9 = scmp.lt.s32.totalorder %s1024_s7, %s1024_s7 }
  0x84   : > { %p9283_p6 = scmp.lt.s32.totalorder %s9281_s6, %s9274_s11 }
  0x85   : > { %p9277_p8 = pnand %p9275_p7, %p10405_p0 }
  0x86   : > { %p9284_p5 = por %p9283_p6, %p9282_p9 }
  0x87   : > { %p9278_p11 = pneg %p9277_p8 }
  0x89   : > { %p9285_p10 = pnand %p9284_p5, %p9278_p11 }
  0x8b   : > { %9288 = shalt.err (!%p9285_p10)
}
  0x8c   : > { %8502 = dma.hbm_to_vmem [thread:$0]  (!%p10393_p12), %s11603_s29, 16, %s1024_s7, [#allocation7]  }
  0x8d   : > { %s9289_s23 = scalar_lea.hbm %s11604_s8, 16 }
  0x8e   : > { %p9290_p13 = scmp.ne.s32.totalorder %s11604_s8, %s9289_s23  ;;  %p9296_p3 = scmp.lt.u32.totalorder %s9289_s23, %s11604_s8 }
  0x90   : > { %p9292_p1 = pnand %p9290_p13, %p10405_p0 }
  0x92   : > { %p9293_p2 = pneg %p9292_p1 }
  0x94   : > { %p9298_p4 = pnand %p9296_p3, %p9293_p2 }
  0x96   : > { %9301 = shalt.err (!%p9298_p4)
}
  0x97   : > { %s9302_s11 = scalar_lea.vmem %s10397_s15, 16  ;;  %s9309_s6 = scalar_lea.vmem %s10397_s15, 32 }
  0x98   : > { %p9303_p5 = scmp.ne.s32.totalorder %s10397_s15, %s9302_s11  ;;  %p9310_p10 = scmp.lt.s32.totalorder %s10397_s15, %s10397_s15 }
  0x99   : > { %p9311_p7 = scmp.lt.s32.totalorder %s9309_s6, %s9302_s11 }
  0x9a   : > { %p9305_p6 = pnand %p9303_p5, %p10405_p0 }
  0x9b   : > { %p9312_p8 = por %p9311_p7, %p9310_p10 }
  0x9c   : > { %p9306_p9 = pneg %p9305_p6 }
  0x9e   : > { %p9313_p11 = pnand %p9312_p8, %p9306_p9 }
  0xa0   : > { %9316 = shalt.err (!%p9313_p11)
}
  0xa1   : > { %8508 = dma.hbm_to_vmem [thread:$0]  (!%p10393_p12), %s11604_s8, 16, %s10397_s15, [#allocation10]  }
  0xa2   : > { %s9317_s7 = scalar_lea.hbm %s10191_s24, 16 }
  0xa3   : > { %p9318_p13 = scmp.ne.s32.totalorder %s10191_s24, %s9317_s7  ;;  %p9324_p3 = scmp.lt.u32.totalorder %s9317_s7, %s10191_s24 }
  0xa5   : > { %p9320_p1 = pnand %p9318_p13, %p10405_p0 }
  0xa7   : > { %p9321_p2 = pneg %p9320_p1 }
  0xa9   : > { %p9326_p4 = pnand %p9324_p3, %p9321_p2 }
  0xab   : > { %9329 = shalt.err (!%p9326_p4)
}
  0xac   : > { %s9330_s23 = scalar_lea.vmem %s10399_s10, 16  ;;  %s9337_s11 = scalar_lea.vmem %s10399_s10, 32 }
  0xad   : > { %p9331_p5 = scmp.ne.s32.totalorder %s10399_s10, %s9330_s23  ;;  %p9338_p10 = scmp.lt.s32.totalorder %s10399_s10, %s10399_s10 }
  0xae   : > { %p9339_p7 = scmp.lt.s32.totalorder %s9337_s11, %s9330_s23 }
  0xaf   : > { %p9333_p6 = pnand %p9331_p5, %p10405_p0 }
  0xb0   : > { %p9340_p8 = por %p9339_p7, %p9338_p10 }
  0xb1   : > { %p9334_p9 = pneg %p9333_p6 }
  0xb3   : > { %p9341_p11 = pnand %p9340_p8, %p9334_p9 }
  0xb5   : > { %9344 = shalt.err (!%p9341_p11)
}
  0xb6   : > { %8514 = dma.hbm_to_vmem [thread:$0]  (!%p10393_p12), %s10191_s24, 16, %s10399_s10, [#allocation13]  }
  0xb7   : > { %s10092_s15 = smov [#allocation15]   ;;  %s10093_s7 = smov [#allocation18]  }
  0xb8   : > { %s1100_s6 = sshll.u32 %s10092_s15, 4  ;;  %s1124_s8 = sshll.u32 %s10093_s7, 4  ;;  %s1101_s6 = int_to_ptr.vmem [resolvable:$true] %s1100_s6  ;;  %s1125_s8 = int_to_ptr.vmem [resolvable:$true] %s1124_s8 }
  0xb9   : > { %s9345_s29 = scalar_lea.hbm %s11602_s20, 16 }
  0xba   : > { %p9346_p13 = scmp.ne.s32.totalorder %s11602_s20, %s9345_s29  ;;  %p9352_p3 = scmp.lt.u32.totalorder %s9345_s29, %s11602_s20 }
  0xbc   : > { %p9348_p1 = pnand %p9346_p13, %p10405_p0 }
  0xbe   : > { %p9349_p2 = pneg %p9348_p1 }
  0xc0   : > { %p9354_p4 = pnand %p9352_p3, %p9349_p2 }
  0xc2   : > { %9357 = shalt.err (!%p9354_p4)
}
  0xc3   : > { %s9358_s23 = scalar_lea.vmem %s1101_s6, 16  ;;  %s9365_s10 = scalar_lea.vmem %s1101_s6, 32 }
  0xc4   : > { %p9359_p5 = scmp.ne.s32.totalorder %s1101_s6, %s9358_s23  ;;  %p9366_p10 = scmp.lt.s32.totalorder %s1101_s6, %s1101_s6 }
  0xc5   : > { %p9367_p7 = scmp.lt.s32.totalorder %s9365_s10, %s9358_s23 }
  0xc6   : > { %p9361_p6 = pnand %p9359_p5, %p10405_p0 }
  0xc7   : > { %p9368_p8 = por %p9367_p7, %p9366_p10 }
  0xc8   : > { %p9362_p9 = pneg %p9361_p6 }
  0xca   : > { %p9369_p11 = pnand %p9368_p8, %p9362_p9 }
  0xcc   : > { %9372 = shalt.err (!%p9369_p11)
}
  0xcd   : > { %8520 = dma.hbm_to_vmem [thread:$0]  (!%p10393_p12), %s11602_s20, 16, %s1101_s6, [#allocation16]  }
  0xce   : > { %s9373_s29 = scalar_lea.hbm %s10226_s21, 1536 }
  0xcf   : > { %p9374_p13 = scmp.ne.s32.totalorder %s10226_s21, %s9373_s29  ;;  %p9380_p3 = scmp.lt.u32.totalorder %s9373_s29, %s10226_s21 }
  0xd1   : > { %p9376_p1 = pnand %p9374_p13, %p10405_p0 }
  0xd3   : > { %p9377_p2 = pneg %p9376_p1 }
  0xd5   : > { %p9382_p4 = pnand %p9380_p3, %p9377_p2 }
  0xd7   : > { %9385 = shalt.err (!%p9382_p4)
}
  0xd8   : > { %s9386_s11 = scalar_lea.vmem %s1125_s8, 1536  ;;  %p9394_p10 = scmp.lt.s32.totalorder %s1125_s8, %s1125_s8 }
  0xd9   : > { %p9387_p5 = scmp.ne.s32.totalorder %s1125_s8, %s9386_s11  ;;  %p9395_p7 = scmp.lt.s32.totalorder %s9386_s11, %s9386_s11 }
  0xdb   : > { %p9389_p6 = pnand %p9387_p5, %p10405_p0  ;;  %p9396_p8 = por %p9395_p7, %p9394_p10 }
  0xdd   : > { %p9390_p9 = pneg %p9389_p6 }
  0xdf   : > { %p9397_p11 = pnand %p9396_p8, %p9390_p9 }
  0xe1   : > { %9400 = shalt.err (!%p9397_p11)
}
  0xe2   : > { %s10094_s15 = smov 64   ;;  %s10095_s6 = smov 4  }
  0xe3   : > { %8526 = dma.hbm_to_vmem [thread:$0]  (!%p10393_p12), %s10226_s21, 1536, %s1125_s8, [#allocation19], %s10094_s15, %s10094_s15, %s10095_s6  }
  0xe4   : > { %s10096_s7 = smov [#allocation21]   ;;  %s10097_s10 = smov [#allocation24]  }
  0xe5   : > { %s1148_s23 = sshll.u32 %s10096_s7, 4  ;;  %s1176_s29 = sshll.u32 %s10097_s10, 4  ;;  %s1149_s23 = int_to_ptr.vmem [resolvable:$true] %s1148_s23  ;;  %s1177_s29 = int_to_ptr.vmem [resolvable:$true] %s1176_s29 }
  0xe6   : > { %s9401_s11 = scalar_lea.hbm %s11597_s13, 3072 }
  0xe7   : > { %p9402_p13 = scmp.ne.s32.totalorder %s11597_s13, %s9401_s11  ;;  %p9408_p3 = scmp.lt.u32.totalorder %s9401_s11, %s11597_s13 }
  0xe9   : > { %p9404_p1 = pnand %p9402_p13, %p10405_p0 }
  0xeb   : > { %p9405_p2 = pneg %p9404_p1 }
  0xed   : > { %p9410_p4 = pnand %p9408_p3, %p9405_p2 }
  0xef   : > { %9413 = shalt.err (!%p9410_p4)
}
  0xf0   : > { %s9414_s20 = scalar_lea.vmem %s1149_s23, 3072  ;;  %p9422_p10 = scmp.lt.s32.totalorder %s1149_s23, %s1149_s23 }
  0xf1   : > { %p9415_p5 = scmp.ne.s32.totalorder %s1149_s23, %s9414_s20  ;;  %p9423_p7 = scmp.lt.s32.totalorder %s9414_s20, %s9414_s20 }
  0xf3   : > { %p9417_p6 = pnand %p9415_p5, %p10405_p0  ;;  %p9424_p8 = por %p9423_p7, %p9422_p10 }
  0xf5   : > { %p9418_p9 = pneg %p9417_p6 }
  0xf7   : > { %p9425_p11 = pnand %p9424_p8, %p9418_p9 }
  0xf9   : > { %9428 = shalt.err (!%p9425_p11)
}
  0xfa   : > { %8532 = dma.hbm_to_vmem [thread:$0]  (!%p10393_p12), %s11597_s13, 3072, %s1149_s23, [#allocation22], %s10094_s15, %s10094_s15, %s10095_s6  }
  0xfb   : > { %s9429_s8 = scalar_lea.hbm %s10251_s30, 32 }
  0xfc   : > { %p9430_p13 = scmp.ne.s32.totalorder %s10251_s30, %s9429_s8  ;;  %p9436_p3 = scmp.lt.u32.totalorder %s9429_s8, %s10251_s30 }
  0xfe   : > { %p9432_p1 = pnand %p9430_p13, %p10405_p0 }
 0x100   : > { %p9433_p2 = pneg %p9432_p1 }
 0x102   : > { %p9438_p4 = pnand %p9436_p3, %p9433_p2 }
 0x104   : > { %9441 = shalt.err (!%p9438_p4)
}
 0x105   : > { %s9442_s20 = scalar_lea.vmem %s1177_s29, 32  ;;  %p9450_p10 = scmp.lt.s32.totalorder %s1177_s29, %s1177_s29 }
 0x106   : > { %p9443_p5 = scmp.ne.s32.totalorder %s1177_s29, %s9442_s20  ;;  %p9451_p7 = scmp.lt.s32.totalorder %s9442_s20, %s9442_s20 }
 0x108   : > { %p9445_p6 = pnand %p9443_p5, %p10405_p0  ;;  %p9452_p8 = por %p9451_p7, %p9450_p10 }
 0x10a   : > { %p9446_p9 = pneg %p9445_p6 }
 0x10c   : > { %p9453_p11 = pnand %p9452_p8, %p9446_p9 }
 0x10e   : > { %9456 = shalt.err (!%p9453_p11)
}
 0x10f   : > { %8538 = dma.hbm_to_vmem [thread:$0]  (!%p10393_p12), %s10251_s30, 32, %s1177_s29, [#allocation25]  }
 0x110   : > { %s10098_s7 = smov [#allocation27]   ;;  %s10099_s10 = smov [#allocation30]  }
 0x111   : > { %s1200_s23 = sshll.u32 %s10098_s7, 4  ;;  %s1224_s11 = sshll.u32 %s10099_s10, 4  ;;  %s1201_s23 = int_to_ptr.vmem [resolvable:$true] %s1200_s23  ;;  %s1225_s11 = int_to_ptr.vmem [resolvable:$true] %s1224_s11 }
 0x112   : > { %s9457_s8 = scalar_lea.hbm %s11598_s12, 9216 }
 0x113   : > { %p9458_p13 = scmp.ne.s32.totalorder %s11598_s12, %s9457_s8  ;;  %p9464_p3 = scmp.lt.u32.totalorder %s9457_s8, %s11598_s12 }
 0x115   : > { %p9460_p1 = pnand %p9458_p13, %p10405_p0 }
 0x117   : > { %p9461_p2 = pneg %p9460_p1 }
 0x119   : > { %p9466_p4 = pnand %p9464_p3, %p9461_p2 }
 0x11b   : > { %9469 = shalt.err (!%p9466_p4)
}
 0x11c   : > { %s9470_s20 = scalar_lea.vmem %s1201_s23, 9216  ;;  %p9478_p10 = scmp.lt.s32.totalorder %s1201_s23, %s1201_s23 }
 0x11d   : > { %p9471_p5 = scmp.ne.s32.totalorder %s1201_s23, %s9470_s20  ;;  %p9479_p7 = scmp.lt.s32.totalorder %s9470_s20, %s9470_s20 }
 0x11f   : > { %p9473_p6 = pnand %p9471_p5, %p10405_p0  ;;  %p9480_p8 = por %p9479_p7, %p9478_p10 }
 0x121   : > { %p9474_p9 = pneg %p9473_p6 }
 0x123   : > { %p9481_p11 = pnand %p9480_p8, %p9474_p9 }
 0x125   : > { %9484 = shalt.err (!%p9481_p11)
}
 0x126   : > { %8544 = dma.hbm_to_vmem [thread:$0]  (!%p10393_p12), %s11598_s12, 9216, %s1201_s23, [#allocation28], %s10094_s15, %s10094_s15, %s10095_s6  }
 0x127   : > { %s9485_s29 = scalar_lea.hbm %s10276_s19, 3072 }
 0x128   : > { %p9486_p13 = scmp.ne.s32.totalorder %s10276_s19, %s9485_s29  ;;  %p9492_p3 = scmp.lt.u32.totalorder %s9485_s29, %s10276_s19 }
 0x12a   : > { %p9488_p1 = pnand %p9486_p13, %p10405_p0 }
 0x12c   : > { %p9489_p2 = pneg %p9488_p1 }
 0x12e   : > { %p9494_p4 = pnand %p9492_p3, %p9489_p2 }
 0x130   : > { %9497 = shalt.err (!%p9494_p4)
}
 0x131   : > { %s9498_s7 = scalar_lea.vmem %s1225_s11, 3072  ;;  %p9506_p10 = scmp.lt.s32.totalorder %s1225_s11, %s1225_s11 }
 0x132   : > { %p9499_p5 = scmp.ne.s32.totalorder %s1225_s11, %s9498_s7  ;;  %p9507_p7 = scmp.lt.s32.totalorder %s9498_s7, %s9498_s7 }
 0x134   : > { %p9501_p6 = pnand %p9499_p5, %p10405_p0  ;;  %p9508_p8 = por %p9507_p7, %p9506_p10 }
 0x136   : > { %p9502_p9 = pneg %p9501_p6 }
 0x138   : > { %p9509_p11 = pnand %p9508_p8, %p9502_p9 }
 0x13a   : > { %9512 = shalt.err (!%p9509_p11)
}
 0x13b   : > { %8550 = dma.hbm_to_vmem [thread:$0]  (!%p10393_p12), %s10276_s19, 3072, %s1225_s11, [#allocation31], %s10094_s15, %s10094_s15, %s10095_s6  }
 0x13c   : > { %s10100_s23 = smov [#allocation33]   ;;  %s10101_s8 = smov [#allocation36]  }
 0x13d   : > { %s1252_s10 = sshll.u32 %s10100_s23, 4  ;;  %s1280_s20 = sshll.u32 %s10101_s8, 4  ;;  %s1253_s10 = int_to_ptr.vmem [resolvable:$true] %s1252_s10  ;;  %s1281_s20 = int_to_ptr.vmem [resolvable:$true] %s1280_s20 }
 0x13e   : > { %s9513_s29 = scalar_lea.hbm %s11599_s9, 16 }
 0x13f   : > { %p9514_p13 = scmp.ne.s32.totalorder %s11599_s9, %s9513_s29  ;;  %p9520_p3 = scmp.lt.u32.totalorder %s9513_s29, %s11599_s9 }
 0x141   : > { %p9516_p1 = pnand %p9514_p13, %p10405_p0 }
 0x143   : > { %p9517_p2 = pneg %p9516_p1 }
 0x145   : > { %p9522_p4 = pnand %p9520_p3, %p9517_p2 }
 0x147   : > { %9525 = shalt.err (!%p9522_p4)
}
 0x148   : > { %s9526_s7 = scalar_lea.vmem %s1253_s10, 16  ;;  %s9533_s15 = scalar_lea.vmem %s1253_s10, 32 }
 0x149   : > { %p9527_p5 = scmp.ne.s32.totalorder %s1253_s10, %s9526_s7  ;;  %p9534_p10 = scmp.lt.s32.totalorder %s1253_s10, %s1253_s10 }
 0x14a   : > { %p9535_p7 = scmp.lt.s32.totalorder %s9533_s15, %s9526_s7 }
 0x14b   : > { %p9529_p6 = pnand %p9527_p5, %p10405_p0 }
 0x14c   : > { %p9536_p8 = por %p9535_p7, %p9534_p10 }
 0x14d   : > { %p9530_p9 = pneg %p9529_p6 }
 0x14f   : > { %p9537_p11 = pnand %p9536_p8, %p9530_p9 }
 0x151   : > { %9540 = shalt.err (!%p9537_p11)
}
 0x152   : > { %8556 = dma.hbm_to_vmem [thread:$0]  (!%p10393_p12), %s11599_s9, 16, %s1253_s10, [#allocation34]  }
 0x153   : > { %s9541_s6 = scalar_lea.hbm %s11600_s4, 16 }
 0x154   : > { %p9542_p13 = scmp.ne.s32.totalorder %s11600_s4, %s9541_s6  ;;  %p9548_p3 = scmp.lt.u32.totalorder %s9541_s6, %s11600_s4 }
 0x156   : > { %p9544_p1 = pnand %p9542_p13, %p10405_p0 }
 0x158   : > { %p9545_p2 = pneg %p9544_p1 }
 0x15a   : > { %p9550_p4 = pnand %p9548_p3, %p9545_p2 }
 0x15c   : > { %9553 = shalt.err (!%p9550_p4)
}
 0x15d   : > { %s9554_s11 = scalar_lea.vmem %s1281_s20, 16  ;;  %s9561_s23 = scalar_lea.vmem %s1281_s20, 32 }
 0x15e   : > { %p9555_p5 = scmp.ne.s32.totalorder %s1281_s20, %s9554_s11  ;;  %p9562_p10 = scmp.lt.s32.totalorder %s1281_s20, %s1281_s20 }
 0x15f   : > { %p9563_p7 = scmp.lt.s32.totalorder %s9561_s23, %s9554_s11 }
 0x160   : > { %p9557_p6 = pnand %p9555_p5, %p10405_p0 }
 0x161   : > { %p9564_p8 = por %p9563_p7, %p9562_p10 }
 0x162   : > { %p9558_p9 = pneg %p9557_p6 }
 0x164   : > { %p9565_p11 = pnand %p9564_p8, %p9558_p9 }
 0x166   : > { %9568 = shalt.err (!%p9565_p11)
}
 0x167   : > { %8562 = dma.hbm_to_vmem [thread:$0]  (!%p10393_p12), %s11600_s4, 16, %s1281_s20, [#allocation37]  }
 0x168   : > { %s10102_s10 = smov [#allocation3]   ;;  %s10103_s29 = smov [#allocation8]  }
 0x169   : > { %s1012_s8 = sshll.u32 %s10102_s10, 4  ;;  %s1033_s7 = sshll.u32 %s10103_s29, 4  ;;  %s1013_s8 = int_to_ptr.vmem [resolvable:$true] %s1012_s8  ;;  %s1034_s7 = int_to_ptr.vmem [resolvable:$true] %s1033_s7 }
 0x16a   : > { %s9569_s15 = scalar_lea.hbm %s10161_s25, 16 }
 0x16b   : > { %p9570_p13 = scmp.ne.s32.totalorder %s10161_s25, %s9569_s15  ;;  %p9576_p3 = scmp.lt.u32.totalorder %s9569_s15, %s10161_s25 }
 0x16d   : > { %p9572_p1 = pnand %p9570_p13, %p10405_p0 }
 0x16f   : > { %p9573_p2 = pneg %p9572_p1 }
 0x171   : > { %p9578_p4 = pnand %p9576_p3, %p9573_p2 }
 0x173   : > { %9581 = shalt.err (!%p9578_p4)
}
 0x174   : > { %s9582_s6 = scalar_lea.vmem %s1013_s8, 16  ;;  %s9589_s20 = scalar_lea.vmem %s1013_s8, 32 }
 0x175   : > { %p9583_p5 = scmp.ne.s32.totalorder %s1013_s8, %s9582_s6  ;;  %p9590_p10 = scmp.lt.s32.totalorder %s1013_s8, %s1013_s8 }
 0x176   : > { %p9591_p7 = scmp.lt.s32.totalorder %s9589_s20, %s9582_s6 }
 0x177   : > { %p9585_p6 = pnand %p9583_p5, %p10405_p0 }
 0x178   : > { %p9592_p8 = por %p9591_p7, %p9590_p10 }
 0x179   : > { %p9586_p9 = pneg %p9585_p6 }
 0x17b   : > { %p9593_p11 = pnand %p9592_p8, %p9586_p9 }
 0x17d   : > { %9596 = shalt.err (!%p9593_p11)
}
 0x17e   : > { %8499 = dma.hbm_to_vmem [thread:$0]  (!%p10393_p12), %s10161_s25, 16, %s1013_s8, [#allocation4]  }
 0x17f   : > { %s9597_s11 = scalar_lea.hbm %s11601_s3, 512 }
 0x180   : > { %p9598_p13 = scmp.ne.s32.totalorder %s11601_s3, %s9597_s11  ;;  %p9604_p3 = scmp.lt.u32.totalorder %s9597_s11, %s11601_s3 }
 0x182   : > { %p9600_p1 = pnand %p9598_p13, %p10405_p0 }
 0x184   : > { %p9601_p2 = pneg %p9600_p1 }
 0x186   : > { %p9606_p4 = pnand %p9604_p3, %p9601_p2 }
 0x188   : > { %9609 = shalt.err (!%p9606_p4)
}
 0x189   : > { %s9610_s23 = scalar_lea.vmem %s1034_s7, 512  ;;  %p9618_p10 = scmp.lt.s32.totalorder %s1034_s7, %s1034_s7 }
 0x18a   : > { %p9611_p5 = scmp.ne.s32.totalorder %s1034_s7, %s9610_s23  ;;  %p9619_p7 = scmp.lt.s32.totalorder %s9610_s23, %s9610_s23 }
 0x18c   : > { %p9613_p6 = pnand %p9611_p5, %p10405_p0  ;;  %p9620_p8 = por %p9619_p7, %p9618_p10 }
 0x18e   : > { %p9614_p9 = pneg %p9613_p6 }
 0x190   : > { %p9621_p11 = pnand %p9620_p8, %p9614_p9 }
 0x192   : > { %9624 = shalt.err (!%p9621_p11)
}
 0x193   : > { %s10104_s10 = smov 128   ;;  %s10105_s8 = smov 8  }
 0x194   : > { %8505 = dma.hbm_to_vmem [thread:$0]  (!%p10393_p12), %s11601_s3, 512, %s1034_s7, [#allocation7], %s10104_s10, %s10104_s10, %s10105_s8  }
 0x195   : > { %s10106_s29 = smov [#allocation11]   ;;  %s10107_s6 = smov [#allocation14]  }
 0x196   : > { %s1058_s15 = sshll.u32 %s10106_s29, 4  ;;  %s1086_s20 = sshll.u32 %s10107_s6, 4  ;;  %s1059_s15 = int_to_ptr.vmem [resolvable:$true] %s1058_s15  ;;  %s1087_s20 = int_to_ptr.vmem [resolvable:$true] %s1086_s20 }
 0x197   : > { %s9625_s11 = scalar_lea.hbm %s11596_s14, 64 }
 0x198   : > { %p9626_p13 = scmp.ne.s32.totalorder %s11596_s14, %s9625_s11  ;;  %p9632_p3 = scmp.lt.u32.totalorder %s9625_s11, %s11596_s14 }
 0x19a   : > { %p9628_p1 = pnand %p9626_p13, %p10405_p0 }
 0x19c   : > { %p9629_p2 = pneg %p9628_p1 }
 0x19e   : > { %p9634_p4 = pnand %p9632_p3, %p9629_p2 }
 0x1a0   : > { %9637 = shalt.err (!%p9634_p4)
}
 0x1a1   : > { %s9638_s23 = scalar_lea.vmem %s1059_s15, 64  ;;  %p9646_p10 = scmp.lt.s32.totalorder %s1059_s15, %s1059_s15 }
 0x1a2   : > { %p9639_p5 = scmp.ne.s32.totalorder %s1059_s15, %s9638_s23  ;;  %p9647_p7 = scmp.lt.s32.totalorder %s9638_s23, %s9638_s23 }
 0x1a4   : > { %p9641_p6 = pnand %p9639_p5, %p10405_p0  ;;  %p9648_p8 = por %p9647_p7, %p9646_p10 }
 0x1a6   : > { %p9642_p9 = pneg %p9641_p6 }
 0x1a8   : > { %p9649_p11 = pnand %p9648_p8, %p9642_p9 }
 0x1aa   : > { %9652 = shalt.err (!%p9649_p11)
}
 0x1ab   : > { %s11614_s7 = sld [smem:[#allocation67_spill]] }
 0x1ac   : > { %8511 = dma.hbm_to_vmem [thread:$0]  (!%p10393_p12), %s11596_s14, 64, %s1059_s15, [#allocation10]  }
 0x1b1   : > { %s9653_s10 = scalar_lea.hbm %s11614_s7, 16 }
 0x1b2   : > { %p9654_p13 = scmp.ne.s32.totalorder %s11614_s7, %s9653_s10  ;;  %p9660_p3 = scmp.lt.u32.totalorder %s9653_s10, %s11614_s7 }
 0x1b4   : > { %p9656_p1 = pnand %p9654_p13, %p10405_p0 }
 0x1b6   : > { %p9657_p2 = pneg %p9656_p1 }
 0x1b8   : > { %p9662_p4 = pnand %p9660_p3, %p9657_p2 }
 0x1ba   : > { %9665 = shalt.err (!%p9662_p4)
}
 0x1bb   : > { %s9666_s8 = scalar_lea.vmem %s1087_s20, 16  ;;  %s9673_s29 = scalar_lea.vmem %s1087_s20, 32 }
 0x1bc   : > { %p9667_p5 = scmp.ne.s32.totalorder %s1087_s20, %s9666_s8  ;;  %p9674_p10 = scmp.lt.s32.totalorder %s1087_s20, %s1087_s20 }
 0x1bd   : > { %p9675_p7 = scmp.lt.s32.totalorder %s9673_s29, %s9666_s8 }
 0x1be   : > { %p9669_p6 = pnand %p9667_p5, %p10405_p0 }
 0x1bf   : > { %p9676_p8 = por %p9675_p7, %p9674_p10 }
 0x1c0   : > { %p9670_p9 = pneg %p9669_p6 }
 0x1c2   : > { %p9677_p11 = pnand %p9676_p8, %p9670_p9 }
 0x1c4   : > { %9680 = shalt.err (!%p9677_p11)
}
 0x1c5   : > { %s11615_s15 = sld [smem:[#allocation71_spill]]  ;;  %s10108_s6 = smov [#allocation17]  }
 0x1c6   : > { %8517 = dma.hbm_to_vmem [thread:$0]  (!%p10393_p12), %s11614_s7, 16, %s1087_s20, [#allocation13]  }
 0x1c7   : > { %s1114_s11 = sshll.u32 %s10108_s6, 4  ;;  %s10109_s23 = smov [#allocation20]   ;;  %s1115_s11 = int_to_ptr.vmem [resolvable:$true] %s1114_s11 }
 0x1c8   : > { %s1138_s10 = sshll.u32 %s10109_s23, 4  ;;  %s1139_s10 = int_to_ptr.vmem [resolvable:$true] %s1138_s10 }
 0x1cb   : > { %s9681_s3 = scalar_lea.hbm %s11615_s15, 16 }
 0x1cc   : > { %p9682_p13 = scmp.ne.s32.totalorder %s11615_s15, %s9681_s3  ;;  %p9688_p3 = scmp.lt.u32.totalorder %s9681_s3, %s11615_s15 }
 0x1ce   : > { %p9684_p1 = pnand %p9682_p13, %p10405_p0 }
 0x1d0   : > { %p9685_p2 = pneg %p9684_p1 }
 0x1d2   : > { %p9690_p4 = pnand %p9688_p3, %p9685_p2 }
 0x1d4   : > { %9693 = shalt.err (!%p9690_p4)
}
 0x1d5   : > { %s9694_s8 = scalar_lea.vmem %s1115_s11, 16  ;;  %s9701_s20 = scalar_lea.vmem %s1115_s11, 32 }
 0x1d6   : > { %p9695_p5 = scmp.ne.s32.totalorder %s1115_s11, %s9694_s8  ;;  %p9702_p10 = scmp.lt.s32.totalorder %s1115_s11, %s1115_s11 }
 0x1d7   : > { %p9703_p7 = scmp.lt.s32.totalorder %s9701_s20, %s9694_s8 }
 0x1d8   : > { %p9697_p6 = pnand %p9695_p5, %p10405_p0 }
 0x1d9   : > { %p9704_p8 = por %p9703_p7, %p9702_p10 }
 0x1da   : > { %p9698_p9 = pneg %p9697_p6 }
 0x1dc   : > { %p9705_p11 = pnand %p9704_p8, %p9698_p9 }
 0x1de   : > { %9708 = shalt.err (!%p9705_p11)
}
 0x1df   : > { %s11616_s29 = sld [smem:[#allocation72_spill]] }
 0x1e0   : > { %8523 = dma.hbm_to_vmem [thread:$0]  (!%p10393_p12), %s11615_s15, 16, %s1115_s11, [#allocation16]  }
 0x1e5   : > { %s9709_s3 = scalar_lea.hbm %s11616_s29, 16 }
 0x1e6   : > { %p9710_p13 = scmp.ne.s32.totalorder %s11616_s29, %s9709_s3  ;;  %p9716_p3 = scmp.lt.u32.totalorder %s9709_s3, %s11616_s29 }
 0x1e8   : > { %p9712_p1 = pnand %p9710_p13, %p10405_p0 }
 0x1ea   : > { %p9713_p2 = pneg %p9712_p1 }
 0x1ec   : > { %p9718_p4 = pnand %p9716_p3, %p9713_p2 }
 0x1ee   : > { %9721 = shalt.err (!%p9718_p4)
}
 0x1ef   : > { %s9722_s6 = scalar_lea.vmem %s1139_s10, 16  ;;  %s9729_s23 = scalar_lea.vmem %s1139_s10, 32 }
 0x1f0   : > { %p9723_p5 = scmp.ne.s32.totalorder %s1139_s10, %s9722_s6  ;;  %p9730_p10 = scmp.lt.s32.totalorder %s1139_s10, %s1139_s10 }
 0x1f1   : > { %p9731_p7 = scmp.lt.s32.totalorder %s9729_s23, %s9722_s6 }
 0x1f2   : > { %p9725_p6 = pnand %p9723_p5, %p10405_p0 }
 0x1f3   : > { %p9732_p8 = por %p9731_p7, %p9730_p10 }
 0x1f4   : > { %p9726_p9 = pneg %p9725_p6 }
 0x1f6   : > { %p9733_p11 = pnand %p9732_p8, %p9726_p9 }
 0x1f8   : > { %9736 = shalt.err (!%p9733_p11)
}
 0x1f9   : > { %s11617_s11 = sld [smem:[#allocation74_spill]]  ;;  %s10110_s8 = smov [#allocation23]  }
 0x1fa   : > { %8529 = dma.hbm_to_vmem [thread:$0]  (!%p10393_p12), %s11616_s29, 16, %s1139_s10, [#allocation19]  }
 0x1fb   : > { %s1162_s20 = sshll.u32 %s10110_s8, 4  ;;  %s10111_s3 = smov [#allocation26]   ;;  %s1163_s20 = int_to_ptr.vmem [resolvable:$true] %s1162_s20 }
 0x1fc   : > { %s1190_s4 = sshll.u32 %s10111_s3, 4  ;;  %s1191_s4 = int_to_ptr.vmem [resolvable:$true] %s1190_s4 }
 0x1ff   : > { %s9737_s7 = scalar_lea.hbm %s11617_s11, 16 }
 0x200   : > { %p9738_p13 = scmp.ne.s32.totalorder %s11617_s11, %s9737_s7  ;;  %p9744_p3 = scmp.lt.u32.totalorder %s9737_s7, %s11617_s11 }
 0x202   : > { %p9740_p1 = pnand %p9738_p13, %p10405_p0 }
 0x204   : > { %p9741_p2 = pneg %p9740_p1 }
 0x206   : > { %p9746_p4 = pnand %p9744_p3, %p9741_p2 }
 0x208   : > { %9749 = shalt.err (!%p9746_p4)
}
 0x209   : > { %s9750_s6 = scalar_lea.vmem %s1163_s20, 16  ;;  %s9757_s10 = scalar_lea.vmem %s1163_s20, 32 }
 0x20a   : > { %p9751_p5 = scmp.ne.s32.totalorder %s1163_s20, %s9750_s6  ;;  %p9758_p10 = scmp.lt.s32.totalorder %s1163_s20, %s1163_s20 }
 0x20b   : > { %p9759_p7 = scmp.lt.s32.totalorder %s9757_s10, %s9750_s6 }
 0x20c   : > { %p9753_p6 = pnand %p9751_p5, %p10405_p0 }
 0x20d   : > { %p9760_p8 = por %p9759_p7, %p9758_p10 }
 0x20e   : > { %p9754_p9 = pneg %p9753_p6 }
 0x210   : > { %p9761_p11 = pnand %p9760_p8, %p9754_p9 }
 0x212   : > { %9764 = shalt.err (!%p9761_p11)
}
 0x213   : > { %s11618_s23 = sld [smem:[#allocation77_spill]] }
 0x214   : > { %8535 = dma.hbm_to_vmem [thread:$0]  (!%p10393_p12), %s11617_s11, 16, %s1163_s20, [#allocation22]  }
 0x219   : > { %s9765_s7 = scalar_lea.hbm %s11618_s23, 32 }
 0x21a   : > { %p9766_p13 = scmp.ne.s32.totalorder %s11618_s23, %s9765_s7  ;;  %p9772_p3 = scmp.lt.u32.totalorder %s9765_s7, %s11618_s23 }
 0x21c   : > { %p9768_p1 = pnand %p9766_p13, %p10405_p0 }
 0x21e   : > { %p9769_p2 = pneg %p9768_p1 }
 0x220   : > { %p9774_p4 = pnand %p9772_p3, %p9769_p2 }
 0x222   : > { %9777 = shalt.err (!%p9774_p4)
}
 0x223   : > { %s9778_s8 = scalar_lea.vmem %s1191_s4, 32  ;;  %p9786_p10 = scmp.lt.s32.totalorder %s1191_s4, %s1191_s4 }
 0x224   : > { %p9779_p5 = scmp.ne.s32.totalorder %s1191_s4, %s9778_s8  ;;  %p9787_p7 = scmp.lt.s32.totalorder %s9778_s8, %s9778_s8 }
 0x226   : > { %p9781_p6 = pnand %p9779_p5, %p10405_p0  ;;  %p9788_p8 = por %p9787_p7, %p9786_p10 }
 0x228   : > { %p9782_p9 = pneg %p9781_p6 }
 0x22a   : > { %p9789_p11 = pnand %p9788_p8, %p9782_p9 }
 0x22c   : > { %9792 = shalt.err (!%p9789_p11)
}
 0x22d   : > { %s11619_s20 = sld [smem:[#allocation79_spill]]  ;;  %s10112_s3 = smov [#allocation29]  }
 0x22e   : > { %8541 = dma.hbm_to_vmem [thread:$0]  (!%p10393_p12), %s11618_s23, 32, %s1191_s4, [#allocation25]  }
 0x22f   : > { %s1214_s6 = sshll.u32 %s10112_s3, 4  ;;  %s10113_s10 = smov [#allocation32]   ;;  %s1215_s6 = int_to_ptr.vmem [resolvable:$true] %s1214_s6 }
 0x230   : > { %s1238_s7 = sshll.u32 %s10113_s10, 4  ;;  %s1239_s7 = int_to_ptr.vmem [resolvable:$true] %s1238_s7 }
 0x233   : > { %s9793_s9 = scalar_lea.hbm %s11619_s20, 16 }
 0x234   : > { %p9794_p13 = scmp.ne.s32.totalorder %s11619_s20, %s9793_s9  ;;  %p9800_p3 = scmp.lt.u32.totalorder %s9793_s9, %s11619_s20 }
 0x236   : > { %p9796_p1 = pnand %p9794_p13, %p10405_p0 }
 0x238   : > { %p9797_p2 = pneg %p9796_p1 }
 0x23a   : > { %p9802_p4 = pnand %p9800_p3, %p9797_p2 }
 0x23c   : > { %9805 = shalt.err (!%p9802_p4)
}
 0x23d   : > { %s9806_s8 = scalar_lea.vmem %s1215_s6, 16  ;;  %s9813_s4 = scalar_lea.vmem %s1215_s6, 32 }
 0x23e   : > { %p9807_p5 = scmp.ne.s32.totalorder %s1215_s6, %s9806_s8  ;;  %p9814_p10 = scmp.lt.s32.totalorder %s1215_s6, %s1215_s6 }
 0x23f   : > { %p9815_p7 = scmp.lt.s32.totalorder %s9813_s4, %s9806_s8 }
 0x240   : > { %p9809_p6 = pnand %p9807_p5, %p10405_p0 }
 0x241   : > { %p9816_p8 = por %p9815_p7, %p9814_p10 }
 0x242   : > { %p9810_p9 = pneg %p9809_p6 }
 0x244   : > { %p9817_p11 = pnand %p9816_p8, %p9810_p9 }
 0x246   : > { %9820 = shalt.err (!%p9817_p11)
}
 0x247   : > { %s11620_s3 = sld [smem:[#allocation80_spill]] }
 0x248   : > { %8547 = dma.hbm_to_vmem [thread:$0]  (!%p10393_p12), %s11619_s20, 16, %s1215_s6, [#allocation28]  }
 0x24d   : > { %s9821_s9 = scalar_lea.hbm %s11620_s3, 16 }
 0x24e   : > { %p9822_p13 = scmp.ne.s32.totalorder %s11620_s3, %s9821_s9  ;;  %p9828_p3 = scmp.lt.u32.totalorder %s9821_s9, %s11620_s3 }
 0x250   : > { %p9824_p1 = pnand %p9822_p13, %p10405_p0 }
 0x252   : > { %p9825_p2 = pneg %p9824_p1 }
 0x254   : > { %p9830_p4 = pnand %p9828_p3, %p9825_p2 }
 0x256   : > { %9833 = shalt.err (!%p9830_p4)
}
 0x257   : > { %s9834_s10 = scalar_lea.vmem %s1239_s7, 16  ;;  %s9841_s8 = scalar_lea.vmem %s1239_s7, 32 }
 0x258   : > { %p9835_p5 = scmp.ne.s32.totalorder %s1239_s7, %s9834_s10  ;;  %p9842_p10 = scmp.lt.s32.totalorder %s1239_s7, %s1239_s7 }
 0x259   : > { %p9843_p7 = scmp.lt.s32.totalorder %s9841_s8, %s9834_s10 }
 0x25a   : > { %p9837_p6 = pnand %p9835_p5, %p10405_p0 }
 0x25b   : > { %p9844_p8 = por %p9843_p7, %p9842_p10 }
 0x25c   : > { %p9838_p9 = pneg %p9837_p6 }
 0x25e   : > { %p9845_p11 = pnand %p9844_p8, %p9838_p9 }
 0x260   : > { %9848 = shalt.err (!%p9845_p11)
}
 0x261   : > { %s11621_s6 = sld [smem:[#allocation84_spill]]  ;;  %s10114_s9 = smov [#allocation35]  }
 0x262   : > { %8553 = dma.hbm_to_vmem [thread:$0]  (!%p10393_p12), %s11620_s3, 16, %s1239_s7, [#allocation31]  }
 0x263   : > { %s1266_s11 = sshll.u32 %s10114_s9, 4  ;;  %s10115_s12 = smov [#allocation38]   ;;  %s1267_s11 = int_to_ptr.vmem [resolvable:$true] %s1266_s11 }
 0x264   : > { %s1294_s13 = sshll.u32 %s10115_s12, 4  ;;  %s1295_s13 = int_to_ptr.vmem [resolvable:$true] %s1294_s13 }
 0x267   : > { %s11622_s4 = smov %s11621_s6  ;;  %s9849_s14 = scalar_lea.hbm %s11621_s6, 16 }
 0x268   : > { %p9850_p13 = scmp.ne.s32.totalorder %s11622_s4, %s9849_s14  ;;  %p9856_p3 = scmp.lt.u32.totalorder %s9849_s14, %s11622_s4 }
 0x26a   : > { %p9852_p1 = pnand %p9850_p13, %p10405_p0 }
 0x26c   : > { %p9853_p2 = pneg %p9852_p1 }
 0x26e   : > { %p9858_p4 = pnand %p9856_p3, %p9853_p2 }
 0x270   : > { %9861 = shalt.err (!%p9858_p4)
}
 0x271   : > { %s9862_s10 = scalar_lea.vmem %s1267_s11, 16  ;;  %s9869_s7 = scalar_lea.vmem %s1267_s11, 32 }
 0x272   : > { %p9863_p5 = scmp.ne.s32.totalorder %s1267_s11, %s9862_s10  ;;  %p9870_p10 = scmp.lt.s32.totalorder %s1267_s11, %s1267_s11 }
 0x273   : > { %p9871_p7 = scmp.lt.s32.totalorder %s9869_s7, %s9862_s10 }
 0x274   : > { %p9865_p6 = pnand %p9863_p5, %p10405_p0 }
 0x275   : > { %p9872_p8 = por %p9871_p7, %p9870_p10 }
 0x276   : > { %p9866_p9 = pneg %p9865_p6 }
 0x278   : > { %p9873_p11 = pnand %p9872_p8, %p9866_p9 }
 0x27a   : > { %9876 = shalt.err (!%p9873_p11)
}
 0x27b   : > { %8559 = dma.hbm_to_vmem [thread:$0]  (!%p10393_p12), %s11622_s4, 16, %s1267_s11, [#allocation34]  }
 0x27c   : > { %s9877_s14 = scalar_lea.hbm %s11595_s5, 16 }
 0x27d   : > { %p9878_p13 = scmp.ne.s32.totalorder %s11595_s5, %s9877_s14  ;;  %p9884_p3 = scmp.lt.u32.totalorder %s9877_s14, %s11595_s5 }
 0x27f   : > { %p9880_p1 = pnand %p9878_p13, %p10405_p0 }
 0x281   : > { %p9881_p2 = pneg %p9880_p1 }
 0x283   : > { %p9886_p4 = pnand %p9884_p3, %p9881_p2 }
 0x285   : > { %9889 = shalt.err (!%p9886_p4)
}
 0x286   : > { %s9890_s12 = scalar_lea.vmem %s1295_s13, 16  ;;  %s9897_s8 = scalar_lea.vmem %s1295_s13, 32 }
 0x287   : > { %p9891_p5 = scmp.ne.s32.totalorder %s1295_s13, %s9890_s12  ;;  %p9898_p10 = scmp.lt.s32.totalorder %s1295_s13, %s1295_s13 }
 0x288   : > { %p9899_p7 = scmp.lt.s32.totalorder %s9897_s8, %s9890_s12 }
 0x289   : > { %p9893_p6 = pnand %p9891_p5, %p10405_p0 }
 0x28a   : > { %p9900_p8 = por %p9899_p7, %p9898_p10 }
 0x28b   : > { %p9894_p9 = pneg %p9893_p6 }
 0x28d   : > { %p9901_p11 = pnand %p9900_p8, %p9894_p9 }
 0x28f   : > { %9904 = shalt.err (!%p9901_p11)
}
 0x290   : > { %8565 = dma.hbm_to_vmem [thread:$0]  (!%p10393_p12), %s11595_s5, 16, %s1295_s13, [#allocation37]  }
 0x291   : > { %s10116_s11 = smov [#allocation39]   ;;  %s9905_s9 = scalar_lea.hbm %s10326_s27, 16 }
 0x292   : > { %s1305_s6 = sshll.u32 %s10116_s11, 4  ;;  %p9906_p13 = scmp.ne.s32.totalorder %s10326_s27, %s9905_s9  ;;  %s1306_s6 = int_to_ptr.vmem [resolvable:$true] %s1305_s6 }
 0x293   : > { %p9912_p3 = scmp.lt.u32.totalorder %s9905_s9, %s10326_s27 }
 0x294   : > { %p9908_p1 = pnand %p9906_p13, %p10405_p0 }
 0x296   : > { %p9909_p2 = pneg %p9908_p1 }
 0x298   : > { %p9914_p4 = pnand %p9912_p3, %p9909_p2 }
 0x29a   : > { %9917 = shalt.err (!%p9914_p4)
}
 0x29b   : > { %s9918_s10 = scalar_lea.vmem %s1306_s6, 16  ;;  %s9925_s7 = scalar_lea.vmem %s1306_s6, 32 }
 0x29c   : > { %p9919_p5 = scmp.ne.s32.totalorder %s1306_s6, %s9918_s10  ;;  %p9926_p10 = scmp.lt.s32.totalorder %s1306_s6, %s1306_s6 }
 0x29d   : > { %p9927_p7 = scmp.lt.s32.totalorder %s9925_s7, %s9918_s10 }
 0x29e   : > { %p9921_p6 = pnand %p9919_p5, %p10405_p0 }
 0x29f   : > { %p9928_p8 = por %p9927_p7, %p9926_p10 }
 0x2a0   : > { %p9922_p9 = pneg %p9921_p6 }
 0x2a2   : > { %p9929_p11 = pnand %p9928_p8, %p9922_p9 }
 0x2a4   : > { %9932 = shalt.err (!%p9929_p11)
}
 0x2a5   : > { %8568 = dma.hbm_to_vmem [thread:$0]  (!%p10393_p12), %s10326_s27, 16, %s1306_s6, [#allocation40]  }
 0x2a6   : > { %p11623_p13 = scmp.ne.s32.totalorder %s11611_s22, 0 }
 0x2a7   : > { %p11624_p1 = scmp.eq.s32.totalorder (!%p11623_p13), %s10357_s2, 0 }
 0x2a8   : > { %1335 = sbr.rel (%p11623_p13) target bundleno = 7266 (0x1c62), region = 180 }
 0x2af   : > { %9978 = dma.done.wait (%p11624_p1), [#allocation4], 16   ;;  %p11625_p2 = pmov %p11624_p1 }
 0x2b0   : > { %p11626_p0 = pmov %p11624_p1 }
 0x2b1   : > { %9980 = vsyncadd (%p11625_p2), [#allocation4], 4294967280 }
 0x2b2   : > { %9982 = dma.done.wait (%p11626_p0), [#allocation7], 528   ;;  %p11627_p3 = pmov %p11626_p0 }
 0x2b3   : > { %p11628_p4 = pmov %p11626_p0 }
 0x2b4   : > { %9984 = vsyncadd (%p11627_p3), [#allocation7], 4294966768 }
 0x2b5   : > { %9986 = dma.done.wait (%p11628_p4), [#allocation10], 80   ;;  %p11629_p12 = pmov %p11626_p0 }
 0x2b6   : > { %p11630_p5 = pmov %p11626_p0 }
 0x2b7   : > { %9988 = vsyncadd (%p11629_p12), [#allocation10], 4294967216 }
 0x2b8   : > { %9990 = dma.done.wait (%p11630_p5), [#allocation13], 32   ;;  %p11631_p6 = pmov %p11626_p0 }
 0x2b9   : > { %p11632_p9 = pmov %p11626_p0 }
 0x2ba   : > { %9992 = vsyncadd (%p11631_p6), [#allocation13], 4294967264 }
 0x2bb   : > { %9994 = dma.done.wait (%p11632_p9), [#allocation16], 32   ;;  %p11633_p10 = pmov %p11626_p0 }
 0x2bc   : > { %p11634_p7 = pmov %p11626_p0 }
 0x2bd   : > { %9996 = vsyncadd (%p11633_p10), [#allocation16], 4294967264 }
 0x2be   : > { %9998 = dma.done.wait (%p11634_p7), [#allocation19], 1552   ;;  %p11635_p8 = pmov %p11626_p0 }
 0x2bf   : > { %p11636_p11 = pmov %p11626_p0 }
 0x2c0   : > { %10000 = vsyncadd (%p11635_p8), [#allocation19], 4294965744 }
 0x2c1   : > { %10002 = dma.done.wait (%p11636_p11), [#allocation22], 3088   ;;  %p11637_p13 = pmov %p11626_p0 }
 0x2c2   : > { %p11638_p1 = pmov %p11626_p0 }
 0x2c3   : > { %10004 = vsyncadd (%p11637_p13), [#allocation22], 4294964208 }
 0x2c4   : > { %10006 = dma.done.wait (%p11638_p1), [#allocation25], 64   ;;  %p11639_p2 = pmov %p11626_p0 }
 0x2c6   : > { %10008 = vsyncadd (%p11639_p2), [#allocation25], 4294967232 }
 0x2c7   : > { %10010 = dma.done.wait (%p11626_p0), [#allocation28], 9232   ;;  %p11640_p3 = pmov %p11626_p0 }
 0x2c8   : > { %p11641_p4 = pmov %p11626_p0 }
 0x2c9   : > { %10012 = vsyncadd (%p11640_p3), [#allocation28], 4294958064 }
 0x2ca   : > { %10014 = dma.done.wait (%p11641_p4), [#allocation31], 3088   ;;  %p11642_p12 = pmov %p11626_p0 }
 0x2cb   : > { %p11643_p5 = pmov %p11626_p0 }
 0x2cc   : > { %10016 = vsyncadd (%p11642_p12), [#allocation31], 4294964208 }
 0x2cd   : > { %10018 = dma.done.wait (%p11643_p5), [#allocation34], 32   ;;  %p11644_p6 = pmov %p11626_p0 }
 0x2ce   : > { %p11645_p9 = pmov %p11626_p0 }
 0x2cf   : > { %10020 = vsyncadd (%p11644_p6), [#allocation34], 4294967264 }
 0x2d0   : > { %10022 = dma.done.wait (%p11645_p9), [#allocation37], 32   ;;  %p11646_p10 = pmov %p11626_p0 }
 0x2d1   : > { %p11647_p7 = pmov %p11626_p0 }
 0x2d2   : > { %10024 = vsyncadd (%p11646_p10), [#allocation37], 4294967264 }
 0x2d3   : > { %10026 = dma.done.wait (%p11647_p7), [#allocation40], 16   ;;  %p11648_p8 = pmov %p11626_p0 }
 0x2d4   : > { %s11649_s13 = sld [smem:[#allocation57_spill]]  ;;  %p1527_p11 = scmp.lt.s32.totalorder %s10357_s2, 1  ;;  %v10117_v1 = vmov 0   ;;  %v1562_v3 = vld [vmem:[#allocation8] sm:$0xff]  ;;  %v1563_v4 = vld [vmem:[#allocation8 + $0x8] sm:$0xff]  ;;  %v10118_v6 = vmov 0.0|0.0   ;;  %v1536_v7 = vlaneseq }
 0x2d5   : > { %10028 = vsyncadd (%p11648_p8), [#allocation40], 4294967280  ;;  %8732 = vset.pattern.permute.xlu0 %v10117_v1  ;;  %s11650_s26 = sld [smem:[#allocation56_spill]]  ;;  %v8359_v5 = vpack.c.bf16 %v1563_v4, %v1562_v3  ;;  %8358 = vmatprep.subr.bf16.mxu0 %v10118_v6  ;;  %v1564_v8 = vld [vmem:[#allocation8 + $0x10] sm:$0xff]  ;;  %v1565_v9 = vld [vmem:[#allocation8 + $0x18] sm:$0xff]  ;;  %s11651_s12 = sld [smem:[#allocation65_spill]] }
 0x2d6   : > { %s1528_s16 = scalar_select %p1527_p11, %s10357_s2, 1  ;;  %8376 = vmatprep.subr.bf16.mxu1 %v10118_v6  ;;  %v8362_v10 = vpack.c.bf16 %v1565_v9, %v1564_v8  ;;  %v10735_v11 = vshrl.u32 %v1536_v7, 7  ;;  %vm10119_vm0 = vmmov 0   ;;  %v10120_v12 = vmov 0.0   ;;  %v1542_v27 = vld [vmem:[#allocation3] sm:$0x1] }
 0x2d7   : > { %8360 = vmatpush3.bf16.msra.mxu0 %v8359_v5  ;;  %8168 = vmatprep.mubr.msk.f32.mxu0 %vm10119_vm0, %v10120_v12  ;;  %s10121_s11 = smov 2   ;;  %s10122_s6 = smov 4   ;;  %v1553_v28 = vld [vmem:[#allocation6] sm:$0x1]  ;;  %vm11553_vm3 = vcmask 261120   ;;  %vm1928_vm6 = vcmask 15360  }
 0x2d8   : > { %s7875_s14 = sshll.u32 %s1528_s16, 4  ;;  %8361 = vmatprep.subr.bf16.mxu0 %v10118_v6  ;;  %8201 = vmatprep.mubr.msk.f32.mxu1 %vm10119_vm0, %v10120_v12  ;;  %v10745_v15 = vadd.s32 8, %v10735_v11  ;;  %vm11552_vm1 = vcmp.lt.s32.totalorder %v10735_v11, 7  ;;  %v10759_v26 = vsub.s32 0, %v10735_v11  ;;  %vm1798_vm4 = vcmp.eq.s32.totalorder %v10735_v11, 0  ;;  %s11652_s9 = sld [smem:[#allocation66_spill]] }
 0x2d9   : > { %vm1900_vm5 = vcmp.lt.s32.totalorder %v10735_v11, 1  ;;  %vm1931_vm7 = vcmask 31744   ;;  %v1566_v5 = vld [vmem:[#allocation9] sm:$0x1]  ;;  %vm1947_vm8 = vcmask 1042432   ;;  %vm1943_vm9 = vcmask 48128  }
 0x2da   : > { %s1534_s22 = scalar_lea.vmem %s11649_s13, %s1528_s16  ;;  %vm11551_vm2 = vcmp.eq.s32.totalorder %v10745_v15, 15  ;;  %s11554_s10 = smov 32   ;;  %vm2055_vm10 = vcmask 523264   ;;  %vm2114_vm11 = vcmask 785408   ;;  %vm2233_vm12 = vcmask 254976  }
 0x2db   : > { %v1541_v2 = vld [vmem:[%s1534_s22] sm:$0x1]  ;;  %s10733_s8 = scalar_lea.vmem %s11650_s26, %s7875_s14  ;;  %8363 = vmatpush3.bf16.msra.mxu0 %v8362_v10  ;;  %v1642_v20 = vld [vmem:[%s11651_s12 + $0x8] sm:$0xff]  ;;  %v7374_v39 = vld [vmem:[%s11651_s12 + $0x30] sm:$0xff]  ;;  %s10124_s7 = smov 64   ;;  %vm2298_vm13 = vcmask 1041409  }
 0x2dc   : > { %1545 = vperm.xlu0 %8732, %v1541_v2   ;;  %8364 = vmatprep.subr.bf16.mxu0 %v10118_v6  ;;  %v1539_v13 = vld [vmem:[%s10733_s8] sm:$0xff]  ;;  %v1540_v14 = vld [vmem:[%s10733_s8 + $0x8] sm:$0xff]  ;;  %v7375_v40 = vld [vmem:[%s11651_s12 + $0x38] sm:$0xff]  ;;  %s11653_s13 = sld [smem:[#allocation68_spill]]  ;;  %vm2300_vm14 = vcmask 1042434   ;;  %vm2302_vm15 = vcmask 1043459  }
 0x2dd   : > { %v8733_v16 = vpack.i.bf16 %v1540_v14, %v1539_v13  ;;  %v1905_v17 = vrot.slane %v1539_v13, 1  ;;  %v1641_v18 = vld [vmem:[%s11651_s12] sm:$0xff]  ;;  %v1906_v19 = vrot.slane %v1540_v14, 1  ;;  %v7373_v38 = vld [vmem:[%s11651_s12 + $0x28] sm:$0xff]  ;;  %v8368_v44 = vpack.c.bf16 %v7375_v40, %v7374_v39  ;;  %v1643_v45 = vld [vmem:[%s11651_s12 + $0x10] sm:$0xff]  ;;  %s11654_s16 = sld [smem:[#allocation70_spill]] }
 0x2de   : > { %v8377_v21 = vpack.c.bf16 %v1642_v20, %v1641_v18  ;;  %v7372_v37 = vld [vmem:[%s11651_s12 + $0x20] sm:$0xff]  ;;  %v1644_v46 = vld [vmem:[%s11651_s12 + $0x18] sm:$0xff]  ;;  %v9259_v48 = vld [vmem:[%s10733_s8 + $0x8] sm:$0xff]  ;;  %s11655_s22 = sld [smem:[#allocation75_spill]]  ;;  %s11660_s26 = sld [smem:[#allocation76_spill]] }
 0x2df   : > { %v1908_v22 = vsel %vm11552_vm1, %v1905_v17, %v1906_v19  ;;  %v1909_v23 = vsel %vm11552_vm1, %v1906_v19, %v1905_v17  ;;  %v8365_v42 = vpack.c.bf16 %v7373_v38, %v7372_v37  ;;  %v8380_v47 = vpack.c.bf16 %v1644_v46, %v1643_v45  ;;  %v9260_v50 = vld [vmem:[%s10733_s8] sm:$0xff]  ;;  %v7378_v4 = vld [vmem:[%s11651_s12 + $0x48] sm:$0xff]  ;;  %v7379_v13 = vld [vmem:[%s11651_s12 + $0x50] sm:$0xff]  ;;  %s11663_s14 = sld [smem:[#allocation58_spill]]  ;;  %s11664_s8 = sld [smem:[#allocation59_spill]] }
 0x2e0   : > { %8734 = vrot.lane.b32.xlu0 %v8733_v16, %s10121_s11  ;;  %v1911_v24 = vsel %vm11551_vm2, 0.0, %v1909_v23  ;;  %8378 = vmatpush3.bf16.msra.mxu1 %v8377_v21  ;;  %v1899_v49 = vrot.slane %v9259_v48, 7  ;;  %v1898_v51 = vrot.slane %v9260_v50, 7  ;;  %v7377_v3 = vld [vmem:[%s11651_s12 + $0x40] sm:$0xff]  ;;  %v7380_v14 = vld [vmem:[%s11651_s12 + $0x58] sm:$0xff]  ;;  %v8779_v19 = vld [vmem:[%s11652_s9 + $0x8] sm:$0xff]  }
 0x2e1   : > { %v8738_v25 = vpack.i.bf16 %v1911_v24, %v1908_v22  ;;  %8379 = vmatprep.subr.bf16.mxu1 %v10118_v6  ;;  %v8371_v8 = vpack.c.bf16 %v7378_v4, %v7377_v3  ;;  %v8374_v16 = vpack.c.bf16 %v7380_v14, %v7379_v13  ;;  %v1935_v17 = vld [vmem:[#allocation11] sm:$0x7]  ;;  %v8780_v20 = vld [vmem:[%s11652_s9 + $0x10] sm:$0xff]   ;;  %v8781_v21 = vld [vmem:[%s11652_s9 + $0x18] sm:$0xff]   ;;  %s11665_s11 = sld [smem:[#allocation81_spill]]  ;;  %p11692_p1 = scmp.ne.s32.totalorder %s11608_s18, 0 }
 0x2e2   : > { %v1901_v56 = vsel %vm1900_vm5, %v1898_v51, %v1899_v49  ;;  %v1902_v57 = vsel %vm1900_vm5, %v1899_v49, %v1898_v51  ;;  %v1949_v18 = vsel %vm1947_vm8, %v1935_v17, 0  ;;  %vm2304_vm8 = vcmask 1044484  }
 0x2e3   : > { %8739 = vrot.lane.b32.xlu1 %v8738_v25, %s10122_s6  ;;  %v1903_v58 = vsel %vm1798_vm4, 0.0, %v1902_v57  ;;  %s11666_s6 = sld [smem:[#allocation83_spill]] }
 0x2e4   : > { %8381 = vmatpush3.bf16.msra.mxu1 %v8380_v47 }
 0x2e5   : > { %8210 = vmatprep.subr.bf16.mxu1 %v10120_v12 }
 0x355   : > { %v8740_v53 = vpop.permute.xlu1 %8739 }
 0x356   : > { %v8742_v59 = vunpack.i.h.bf16 %v8740_v53  ;;  %v8741_v60 = vunpack.i.l.bf16 %v8740_v53 }
 0x35b   : > { %v1546_v29 = vpop.permute.xlu0 %1545 }
 0x35c   : > { %v1551_v30 = vrot.slane %v1546_v29, %v10759_v26 }
 0x35e   : > { %v1552_v31 = vmul.f32 %v1551_v30, %v1542_v27 }
 0x35f   : > { %v8735_v52 = vpop.permute.xlu0 %8734 }
 0x360   : > { %v1554_v32 = vadd.f32 %v1553_v28, %v1552_v31  ;;  %v8737_v54 = vunpack.i.h.bf16 %v8735_v52  ;;  %v8736_v55 = vunpack.i.l.bf16 %v8735_v52 }
 0x362   : > { %v1555_v33 = vsub.f32 0.0, %v1554_v32  ;;  %v1929_v61 = vsel %vm1928_vm6, %v1903_v58, %v8736_v55  ;;  %v1930_v62 = vsel %vm1928_vm6, %v1901_v56, %v8737_v54 }
 0x363   : > { %v1932_v63 = vsel %vm1931_vm7, %v1929_v61, %v8741_v60  ;;  %v1933_v0 = vsel %vm1931_vm7, %v1930_v62, %v8742_v59 }
 0x364   : > { %v1556_v34 = vmul.f32 1.442695, %v1555_v33  ;;  %v1934_v2 = vpack.c.bf16 %v1933_v0, %v1932_v63 }
 0x366   : > { %9223 = vpow2.f32 %v1556_v34 }
 0x370   : > { %v9224_v35 = vpop.eup %9223 }
 0x371   : > { %v1558_v36 = vadd.f32 1.0, %v9224_v35 }
 0x373   : > { %9225 = vrcp.f32 %v1558_v36 }
 0x37d   : > { %v9226_v41 = vpop.eup %9225 }
 0x37e   : > { %v1561_v43 = vmul.f32 %v9226_v41, %v1554_v32  ;;  %v7383_v32 = vld [vmem:[#allocation12] ss:$0 sm:$0xff] }
 0x380   : > { %8169 = vmatmul.mubr.msk.f32.vlgmr.msra.gmra.mrb[0].mxu0 %vm11553_vm3, %v1561_v43 }
 0x381   : > { %8366 = vmatpush3.bf16.msra.mxu0 %v8365_v42  ;;  %8179 = vmatprep.mubr.msk.f32.mxu0 %vm10119_vm0, %v10120_v12 }
 0x382   : > { %8367 = vmatprep.subr.bf16.mxu0 %v10118_v6 }
 0x385   : > { %8369 = vmatpush3.bf16.msra.mxu0 %v8368_v44 }
 0x386   : > { %8370 = vmatprep.subr.bf16.mxu0 %v10118_v6 }
 0x453   : > { %v1637_v7 = vpop.f32.mrb[0].mxu0 }
 0x454   : > { %v1638_v9 = vadd.f32 %v1637_v7, %v1566_v5  ;;  %v8170_v10 = vpop.f32.mrb[1].mxu0 }
 0x455   : > { %v8783_v10 = vld [vmem:[%s11652_s9 + $0x28] sm:$0xff]  }
 0x456   : > { %8180 = vmatmul.mubr.msk.f32.vlgmr.msra.gmra.mrb[2].mxu0 %vm11553_vm3, %v1638_v9  ;;  %8202 = vmatmul.mubr.msk.f32.vlgmr.msra.gmra.mrb[0].mxu1 %vm11553_vm3, %v1638_v9 }
 0x457   : > { %8372 = vmatpush3.bf16.msra.mxu0 %v8371_v8  ;;  %8190 = vmatprep.mubr.msk.f32.mxu0 %vm10119_vm0, %v10120_v12 }
 0x458   : > { %8373 = vmatprep.subr.bf16.mxu0 %v10118_v6  ;;  %8222 = vmatprep.mubr.msk.bf16.mxu1 %vm10119_vm0, %v10120_v12  ;;  %v8778_v6 = vld [vmem:[%s11652_s9] sm:$0xff]  }
 0x459   : > { %8211 = vmatpush3.bf16.msra.mxu1 %v8778_v6 }
 0x45a   : > { %8212 = vmatprep.subr.bf16.mxu1 %v10120_v12 }
 0x45b   : > { %8375 = vmatpush3.bf16.msra.mxu0 %v8374_v16 }
 0x45c   : > { %8204 = vmatprep.subr.bf16.mxu0 %v10120_v12 }
 0x45d   : > { %8213 = vmatpush3.bf16.msra.mxu1 %v8779_v19 }
 0x45e   : > { %8191 = vmatmul.mubr.msk.f32.vlgmr.msra.gmra.mrb[4].mxu0 %vm11553_vm3, %v1638_v9  ;;  %8214 = vmatprep.subr.bf16.mxu1 %v10120_v12  ;;  %v8782_v9 = vld [vmem:[%s11652_s9 + $0x20] sm:$0xff]   ;;  %s10127_s9 = smov [#allocation41]  }
 0x45f   : > { %8205 = vmatpush3.bf16.msra.mxu0 %v1949_v18  ;;  %8206 = vmatprep.mubr.msk.bf16.mxu0 %vm10119_vm0, %v10120_v12 }
 0x460   : > { %8226 = vmatprep.subr.bf16.mxu0 %v10120_v12 }
 0x461   : > { %8215 = vmatpush3.bf16.msra.mxu1 %v8780_v20 }
 0x462   : > { %8207 = vmatmul.mubr.msk.bf16.vlgmr.msra.gmra.mrb[8].mxu0 %vm1943_vm9, %v1934_v2  ;;  %8216 = vmatprep.subr.bf16.mxu1 %v10120_v12  ;;  %vm2306_vm9 = vcmask 1045509  }
 0x463   : > { %8238 = vmatprep.mubr.msk.bf16.mxu0 %vm10119_vm0, %v10120_v12 }
 0x465   : > { %8217 = vmatpush3.bf16.msra.mxu1 %v8781_v21 }
 0x466   : > { %8218 = vmatprep.subr.bf16.mxu1 %v10120_v12 }
 0x469   : > { %8219 = vmatpush3.bf16.msra.mxu1 %v8782_v9 }
 0x46a   : > { %8220 = vmatprep.subr.bf16.mxu1 %v10120_v12 }
 0x46d   : > { %8221 = vmatpush3.bf16.msra.mxu1 %v8783_v10 }
 0x46e   : > { %2568 = vmatprep.subr.bf16.mxu1 %v10117_v1 }
 0x529   : > { %v1719_v22 = vpop.f32.mrb[2].mxu0  ;;  %v1869_v23 = vpop.f32.mrb[0].mxu1 }
 0x52a   : > { %v1870_v24 = vadd.f32 %v1869_v23, %v1719_v22  ;;  %v8181_v25 = vpop.f32.mrb[3].mxu0  ;;  %v8203_v27 = vpop.f32.mrb[1].mxu1 }
 0x52c   : > { %v1881_v33 = vrot.slane %v1870_v24, %v10759_v26 }
 0x531   : > { %v1794_v28 = vpop.f32.mrb[4].mxu0 }
 0x532   : > { %v1800_v29 = vadd.f32 %v1794_v28, %v1719_v22  ;;  %v1873_v30 = vadd.f32 %v1870_v24, %v1794_v28  ;;  %v8192_v31 = vpop.f32.mrb[5].mxu0 }
 0x534   : > { %v1885_v34 = vrot.slane %v1873_v30, %v10759_v26  ;;  %v1895_v35 = vrot.slane %v1800_v29, %v10759_v26 }
 0x535   : > { %v1985_v36 = vpop.f32.mrb[8].mxu0 }
 0x536   : > { %v1896_v37 = vsel %vm1798_vm4, %v1895_v35, %v1885_v34  ;;  %v1986_v38 = vadd.f32 %v7383_v32, %v1985_v36  ;;  %v8208_v39 = vpop.f32.mrb[9].mxu0  ;;  %v1887_v40 = vsel %vm11551_vm2, %v1881_v33, %v1885_v34 }
 0x537   : > { %v1988_v41 = vpop.f32.mrb[10].mxu0 }
 0x538   : > { %v1992_v42 = vadd.f32 %v1986_v38, %v1896_v37  ;;  %v1989_v43 = vadd.f32 %v7383_v32, %v1988_v41  ;;  %v8209_v44 = vpop.f32.mrb[11].mxu0 }
 0x539   : > { %v8786_v44 = vld [vmem:[%s11653_s13 + $0x10] sm:$0xff]  }
 0x53a   : > { %v1993_v45 = vadd.f32 %v1989_v43, %v1887_v40  ;;  %v1994_v46 = vsel %vm11553_vm3, %v1992_v42, 0.0  ;;  %v8785_v43 = vld [vmem:[%s11653_s13 + $0x8] sm:$0xff]  }
 0x53c   : > { %v1995_v47 = vsel %vm11553_vm3, %v1993_v45, 0.0 }
 0x53d   : > { %v1996_v48 = vadd.f32 %v1995_v47, %v1994_v46  ;;  %v8788_v46 = vld [vmem:[%s11653_s13 + $0x20] sm:$0xff]   ;;  %v7385_v47 = vld [vmem:[#allocation14] ss:$0 sm:$0xff] }
 0x53f   : > { %v1997_v49 = vrot.slane %v1996_v48, 4 }
 0x541   : > { %v1998_v50 = vadd.f32 %v1997_v49, %v1996_v48 }
 0x543   : > { %v1999_v51 = vrot.slane %v1998_v50, 2 }
 0x545   : > { %v2000_v52 = vadd.f32 %v1999_v51, %v1998_v50 }
 0x547   : > { %v2001_v53 = vrot.slane %v2000_v52, 1 }
 0x549   : > { %v2002_v54 = vadd.f32 %v2001_v53, %v2000_v52 }
 0x54b   : > { %v2004_v55 = vmul.f32 0.0625, %v2002_v54 }
 0x54d   : > { %v2005_v56 = vsub.f32 %v1992_v42, %v2004_v55  ;;  %v2006_v57 = vsub.f32 %v1993_v45, %v2004_v55  ;;  %v8784_v42 = vld [vmem:[%s11653_s13] sm:$0xff]   ;;  %v8787_v45 = vld [vmem:[%s11653_s13 + $0x18] sm:$0xff]  }
 0x54e   : > { %8227 = vmatpush3.bf16.msra.mxu0 %v8784_v42 }
 0x54f   : > { %v2007_v58 = vmul.f32 %v2005_v56, %v2005_v56  ;;  %v2008_v59 = vmul.f32 %v2006_v57, %v2006_v57  ;;  %8228 = vmatprep.subr.bf16.mxu0 %v10120_v12 }
 0x551   : > { %v2009_v60 = vsel %vm11553_vm3, %v2007_v58, 0.0  ;;  %v2010_v61 = vsel %vm11553_vm3, %v2008_v59, 0.0 }
 0x552   : > { %v2011_v62 = vadd.f32 %v2010_v61, %v2009_v60  ;;  %8229 = vmatpush3.bf16.msra.mxu0 %v8785_v43 }
 0x553   : > { %8230 = vmatprep.subr.bf16.mxu0 %v10120_v12 }
 0x554   : > { %v2012_v63 = vrot.slane %v2011_v62, 4 }
 0x556   : > { %v2013_v0 = vadd.f32 %v2012_v63, %v2011_v62  ;;  %8231 = vmatpush3.bf16.msra.mxu0 %v8786_v44 }
 0x557   : > { %8232 = vmatprep.subr.bf16.mxu0 %v10120_v12 }
 0x558   : > { %v2014_v2 = vrot.slane %v2013_v0, 2 }
 0x55a   : > { %v2015_v3 = vadd.f32 %v2014_v2, %v2013_v0  ;;  %8233 = vmatpush3.bf16.msra.mxu0 %v8787_v45 }
 0x55b   : > { %8234 = vmatprep.subr.bf16.mxu0 %v10120_v12 }
 0x55c   : > { %v2016_v4 = vrot.slane %v2015_v3, 1 }
 0x55e   : > { %v2017_v5 = vadd.f32 %v2016_v4, %v2015_v3  ;;  %8235 = vmatpush3.bf16.msra.mxu0 %v8788_v46 }
 0x55f   : > { %8236 = vmatprep.subr.bf16.mxu0 %v10120_v12 }
 0x560   : > { %v2018_v7 = vmul.f32 0.0625, %v2017_v5 }
 0x562   : > { %v2019_v8 = vadd.f32 1e-05, %v2018_v7 }
 0x564   : > { %9227 = vrsqrt.f32 %v2019_v8 }
 0x56e   : > { %v9228_v13 = vpop.eup %9227 }
 0x56f   : > { %v2022_v14 = vmul.f32 %v9228_v13, %v2006_v57  ;;  %v2021_v16 = vmul.f32 %v9228_v13, %v2005_v56 }
 0x571   : > { %v2024_v17 = vmax.f32 %v2022_v14, 0.0  ;;  %v2023_v18 = vmax.f32 %v2021_v16, 0.0 }
 0x573   : > { %v2026_v6 = vrot.slane %v2024_v17, 7  ;;  %v8743_v19 = vpack.i.bf16 %v2024_v17, %v2023_v18  ;;  %v2031_v20 = vrot.slane %v2023_v18, 1  ;;  %v2032_v21 = vrot.slane %v2024_v17, 1 }
 0x574   : > { %v2025_v22 = vrot.slane %v2023_v18, 7 }
 0x575   : > { %8744 = vrot.lane.b32.xlu1 %v8743_v19, %s11554_s10  ;;  %v2033_v23 = vsel %vm11552_vm1, %v2031_v20, %v2032_v21  ;;  %v2034_v24 = vsel %vm11552_vm1, %v2032_v21, %v2031_v20  ;;  %v10125_v19 = vmov 1983009808   ;;  %vm2315_vm1 = vcmp.eq.s32.totalorder %v10735_v11, 7 }
 0x576   : > { %v2036_v25 = vsel %vm11551_vm2, 0.0, %v2034_v24  ;;  %v2027_v27 = vsel %vm1900_vm5, %v2025_v22, %v2026_v6  ;;  %v2028_v28 = vsel %vm1900_vm5, %v2026_v6, %v2025_v22  ;;  %v2193_v20 = vunpack.c.l.s4 %v10125_v19 }
 0x577   : > { %v8748_v29 = vpack.i.bf16 %v2036_v25, %v2033_v23  ;;  %v2029_v34 = vsel %vm1798_vm4, 0.0, %v2028_v28  ;;  %vm2310_vm2 = vcmask 1047559  }
 0x578   : > { %v2194_v21 = vunpack.c.0.s8 %v2193_v20 }
 0x579   : > { %8749 = vrot.lane.b32.xlu0 %v8748_v29, %s10124_s7 }
 0x57a   : > { %v10863_v25 = vsub.s32 %v2194_v21, %v10735_v11 }
 0x5e7   : > { %v8745_v30 = vpop.permute.xlu1 %8744 }
 0x5e8   : > { %v8747_v31 = vunpack.i.h.bf16 %v8745_v30  ;;  %v8746_v32 = vunpack.i.l.bf16 %v8745_v30 }
 0x5ea   : > { %v2053_v37 = vsel %vm11553_vm3, %v2029_v34, %v8746_v32  ;;  %v2054_v38 = vsel %vm11553_vm3, %v2027_v27, %v8747_v31 }
 0x5eb   : > { %v8750_v33 = vpop.permute.xlu0 %8749 }
 0x5ec   : > { %v8752_v35 = vunpack.i.h.bf16 %v8750_v33  ;;  %v8751_v36 = vunpack.i.l.bf16 %v8750_v33 }
 0x5ee   : > { %v2056_v39 = vsel %vm2055_vm10, %v2053_v37, %v8751_v36  ;;  %v2057_v40 = vsel %vm2055_vm10, %v2054_v38, %v8752_v35 }
 0x5ef   : > { %v2058_v41 = vpack.c.bf16 %v2057_v40, %v2056_v39 }
 0x5f1   : > { %8223 = vmatmul.mubr.msk.bf16.vlgmr.msra.gmra.mrb[4].mxu1 %vm2114_vm11, %v2058_v41 }
 0x6c4   : > { %v2152_v48 = vpop.f32.mrb[4].mxu1 }
 0x6c5   : > { %v2153_v49 = vadd.f32 %v7385_v47, %v2152_v48  ;;  %v8224_v50 = vpop.f32.mrb[5].mxu1 }
 0x6c6   : > { %v2155_v51 = vpop.f32.mrb[6].mxu1 }
 0x6c7   : > { %v2156_v52 = vadd.f32 %v7385_v47, %v2155_v51  ;;  %v8225_v53 = vpop.f32.mrb[7].mxu1  ;;  %v2159_v54 = vsel %vm11553_vm3, %v2153_v49, 0.0 }
 0x6c9   : > { %v2160_v55 = vsel %vm11553_vm3, %v2156_v52, 0.0 }
 0x6ca   : > { %v2161_v56 = vadd.f32 %v2160_v55, %v2159_v54 }
 0x6cc   : > { %v2162_v57 = vrot.slane %v2161_v56, 4 }
 0x6ce   : > { %v2163_v58 = vadd.f32 %v2162_v57, %v2161_v56 }
 0x6d0   : > { %v2164_v59 = vrot.slane %v2163_v58, 2 }
 0x6d2   : > { %v2165_v60 = vadd.f32 %v2164_v59, %v2163_v58 }
 0x6d4   : > { %v2166_v61 = vrot.slane %v2165_v60, 1 }
 0x6d6   : > { %v2167_v62 = vadd.f32 %v2166_v61, %v2165_v60 }
 0x6d8   : > { %v2168_v63 = vmul.f32 0.0625, %v2167_v62 }
 0x6da   : > { %v2169_v0 = vsub.f32 %v2153_v49, %v2168_v63  ;;  %v2170_v2 = vsub.f32 %v2156_v52, %v2168_v63 }
 0x6dc   : > { %v2171_v3 = vmul.f32 %v2169_v0, %v2169_v0  ;;  %v2172_v4 = vmul.f32 %v2170_v2, %v2170_v2 }
 0x6de   : > { %v2173_v5 = vsel %vm11553_vm3, %v2171_v3, 0.0  ;;  %v2174_v7 = vsel %vm11553_vm3, %v2172_v4, 0.0 }
 0x6df   : > { %v2175_v8 = vadd.f32 %v2174_v7, %v2173_v5 }
 0x6e1   : > { %v2176_v9 = vrot.slane %v2175_v8, 4 }
 0x6e3   : > { %v2177_v10 = vadd.f32 %v2176_v9, %v2175_v8 }
 0x6e5   : > { %v2178_v13 = vrot.slane %v2177_v10, 2 }
 0x6e7   : > { %v2179_v14 = vadd.f32 %v2178_v13, %v2177_v10 }
 0x6e9   : > { %v2180_v16 = vrot.slane %v2179_v14, 1 }
 0x6eb   : > { %v2181_v17 = vadd.f32 %v2180_v16, %v2179_v14 }
 0x6ed   : > { %v2182_v18 = vmul.f32 0.0625, %v2181_v17 }
 0x6ef   : > { %v2183_v6 = vadd.f32 1e-05, %v2182_v18 }
 0x6f1   : > { %9229 = vrsqrt.f32 %v2183_v6 }
 0x6fb   : > { %v9230_v22 = vpop.eup %9229 }
 0x6fc   : > { %v2185_v23 = vmul.f32 %v9230_v22, %v2169_v0  ;;  %v2186_v24 = vmul.f32 %v9230_v22, %v2170_v2 }
 0x6fe   : > { %v10865_v27 = vmax.f32 %v2185_v23, 0.0  ;;  %v10867_v28 = vmax.f32 %v2186_v24, 0.0 }
 0x700   : > { %v2191_v29 = vcombine.high %v10865_v27, %v10865_v27  ;;  %v2198_v30 = vrot.slane %v10865_v27, %v10863_v25  ;;  %v2208_v31 = vcombine.high %v10867_v28, %v10867_v28  ;;  %v2215_v32 = vrot.slane %v10867_v28, %v10863_v25 }
 0x701   : > { %v8753_v33 = vpack.i.bf16 %v10867_v28, %v10865_v27  ;;  %v8814_v27 = vld [vmem:[#allocation21 + $0x40] sm:$0xff]  }
 0x702   : > { %v2205_v34 = vrot.slane %v2191_v29, %v10863_v25  ;;  %v2206_v35 = vcombine.high %v2198_v30, %v2198_v30  ;;  %v2222_v36 = vrot.slane %v2208_v31, %v10863_v25  ;;  %v2223_v37 = vcombine.high %v2215_v32, %v2215_v32  ;;  %v8789_v31 = vld [vmem:[%s11653_s13 + $0x28] sm:$0xff]   ;;  %v8815_v28 = vld [vmem:[#allocation21] sm:$0xff]  }
 0x703   : > { %v2234_v38 = vsel %vm2233_vm12, %v2198_v30, -inf  ;;  %v2262_v39 = vsel %vm2233_vm12, %v2215_v32, -inf  ;;  %8237 = vmatpush3.bf16.msra.mxu0 %v8789_v31 }
 0x704   : > { %v2207_v40 = vcombine.high %v2205_v34, %v2205_v34  ;;  %v2235_v41 = vrot.slane %v2234_v38, 4  ;;  %v2241_v42 = vsel %vm2233_vm12, %v2206_v35, -inf  ;;  %v2248_v43 = vsel %vm2233_vm12, %v2205_v34, -inf  ;;  %2816 = vmatprep.subr.bf16.mxu0 %v10117_v1 }
 0x705   : > { %v2242_v44 = vrot.slane %v2241_v42, 4  ;;  %v2249_v45 = vrot.slane %v2248_v43, 4  ;;  %v2263_v46 = vrot.slane %v2262_v39, 4  ;;  %v2269_v47 = vsel %vm2233_vm12, %v2223_v37, -inf }
 0x706   : > { %v2236_v48 = vmax.f32 %v2234_v38, %v2235_v41  ;;  %v2255_v49 = vsel %vm2233_vm12, %v2207_v40, -inf  ;;  %v2270_v50 = vrot.slane %v2269_v47, 4  ;;  %v2224_v51 = vcombine.high %v2222_v36, %v2222_v36 }
 0x707   : > { %v2243_v52 = vmax.f32 %v2241_v42, %v2242_v44  ;;  %v2250_v53 = vmax.f32 %v2248_v43, %v2249_v45  ;;  %v2256_v54 = vrot.slane %v2255_v49, 4  ;;  %v2264_v55 = vmax.f32 %v2262_v39, %v2263_v46 }
 0x708   : > { %v2237_v56 = vrot.slane %v2236_v48, 2  ;;  %v2271_v57 = vmax.f32 %v2269_v47, %v2270_v50  ;;  %v2276_v58 = vsel %vm2233_vm12, %v2222_v36, -inf  ;;  %v2283_v59 = vsel %vm2233_vm12, %v2224_v51, -inf }
 0x709   : > { %v2244_v60 = vrot.slane %v2243_v52, 2  ;;  %v2251_v61 = vrot.slane %v2250_v53, 2  ;;  %v2265_v62 = vrot.slane %v2264_v55, 2  ;;  %v2257_v63 = vmax.f32 %v2255_v49, %v2256_v54 }
 0x70a   : > { %v2238_v0 = vmax.f32 %v2236_v48, %v2237_v56  ;;  %v2272_v2 = vrot.slane %v2271_v57, 2  ;;  %v2277_v3 = vrot.slane %v2276_v58, 4  ;;  %v2284_v4 = vrot.slane %v2283_v59, 4 }
 0x70b   : > { %v2245_v5 = vmax.f32 %v2243_v52, %v2244_v60  ;;  %v2266_v7 = vmax.f32 %v2264_v55, %v2265_v62  ;;  %v2252_v8 = vmax.f32 %v2250_v53, %v2251_v61  ;;  %v2258_v9 = vrot.slane %v2257_v63, 2  ;;  %v8792_v60 = vld [vmem:[%s11654_s16 + $0x10] sm:$0xff]   ;;  %v8793_v61 = vld [vmem:[%s11654_s16 + $0x18] sm:$0xff]   ;;  %v8794_v62 = vld [vmem:[%s11654_s16 + $0x20] sm:$0xff]  }
 0x70c   : > { %v2239_v10 = vrot.slane %v2238_v0, 1  ;;  %v2273_v13 = vmax.f32 %v2271_v57, %v2272_v2  ;;  %v2278_v14 = vmax.f32 %v2276_v58, %v2277_v3  ;;  %v2285_v16 = vmax.f32 %v2283_v59, %v2284_v4  ;;  %v8790_v58 = vld [vmem:[%s11654_s16] sm:$0xff]   ;;  %v8791_v59 = vld [vmem:[%s11654_s16 + $0x8] sm:$0xff]   ;;  %v8797_v2 = vld [vmem:[%s11654_s16 + $0x38] sm:$0xff]  }
 0x70d   : > { %v2246_v17 = vrot.slane %v2245_v5, 1  ;;  %v2253_v18 = vrot.slane %v2252_v8, 1  ;;  %v2259_v6 = vmax.f32 %v2257_v63, %v2258_v9  ;;  %v2267_v20 = vrot.slane %v2266_v7, 1  ;;  %2569 = vmatpush1.bf16.msra.mxu1 %v8790_v58  ;;  %v8795_v63 = vld [vmem:[%s11654_s16 + $0x28] sm:$0xff]   ;;  %v8798_v3 = vld [vmem:[%s11654_s16 + $0x40] sm:$0xff]  }
 0x70e   : > { %v2240_v19 = vmax.f32 %v2238_v0, %v2239_v10  ;;  %v2279_v21 = vrot.slane %v2278_v14, 2  ;;  %v2286_v22 = vrot.slane %v2285_v16, 2  ;;  %v2274_v30 = vrot.slane %v2273_v13, 1  ;;  %2570 = vmatprep.subr.bf16.mxu1 %v10117_v1  ;;  %v8796_v0 = vld [vmem:[%s11654_s16 + $0x30] sm:$0xff]   ;;  %v8799_v4 = vld [vmem:[%s11654_s16 + $0x48] sm:$0xff]  }
 0x70f   : > { %v2247_v23 = vmax.f32 %v2245_v5, %v2246_v17  ;;  %v2254_v24 = vmax.f32 %v2252_v8, %v2253_v18  ;;  %v2260_v29 = vrot.slane %v2259_v6, 1  ;;  %v2268_v37 = vmax.f32 %v2266_v7, %v2267_v20  ;;  %v8800_v5 = vld [vmem:[%s11654_s16 + $0x50] sm:$0xff]   ;;  %v7393_v7 = vld [vmem:[#allocation15] ss:$0 sm:$0xff] }
 0x710   : > { %v2280_v32 = vmax.f32 %v2278_v14, %v2279_v21  ;;  %v2287_v34 = vmax.f32 %v2285_v16, %v2286_v22  ;;  %v2275_v41 = vmax.f32 %v2273_v13, %v2274_v30  ;;  %vm2308_vm12 = vcmask 1046534   ;;  %v8809_v58 = vld [vmem:[#allocation18 + $0x38] sm:$0xff]  }
 0x711   : > { %v2261_v35 = vmax.f32 %v2259_v6, %v2260_v29  ;;  %v2299_v36 = vsel %vm2298_vm13, %v2247_v23, %v2240_v19  ;;  %2571 = vmatpush1.bf16.msra.mxu1 %v8791_v59  ;;  %v8810_v59 = vld [vmem:[#allocation18 + $0x40] sm:$0xff]  }
 0x712   : > { %v2281_v38 = vrot.slane %v2280_v32, 1  ;;  %v2288_v39 = vrot.slane %v2287_v34, 1  ;;  %v2301_v40 = vsel %vm2300_vm14, %v2254_v24, %v2299_v36  ;;  %2572 = vmatprep.subr.bf16.mxu1 %v10117_v1 }
 0x713   : > { %v2303_v42 = vsel %vm2302_vm15, %v2261_v35, %v2301_v40 }
 0x714   : > { %v2282_v43 = vmax.f32 %v2280_v32, %v2281_v38  ;;  %v2305_v44 = vsel %vm2304_vm8, %v2268_v37, %v2303_v42  ;;  %v2289_v45 = vmax.f32 %v2287_v34, %v2288_v39  ;;  %v8801_v39 = vld [vmem:[%s11654_s16 + $0x58] sm:$0xff]   ;;  %vm2689_vm8 = vcmask 1047556  }
 0x715   : > { %v2307_v46 = vsel %vm2306_vm9, %v2275_v41, %v2305_v44  ;;  %2573 = vmatpush1.bf16.msra.mxu1 %v8792_v60  ;;  %v8811_v60 = vld [vmem:[#allocation18 + $0x48] sm:$0xff]   ;;  %vm2698_vm9 = vcmp.eq.s32.totalorder %v10735_v11, 3 }
 0x716   : > { %v2309_v47 = vsel %vm2308_vm12, %v2282_v43, %v2307_v46  ;;  %2574 = vmatprep.subr.bf16.mxu1 %v10117_v1  ;;  %vm7459_vm12 = vmneg %vm2698_vm9 }
 0x717   : > { %v2311_v48 = vsel %vm2310_vm2, %v2289_v45, %v2309_v47  ;;  %vm2652_vm2 = vcmask 517120  }
 0x718   : > { %2320 = vrot.lane.b32.xlu1 %v2311_v48, %s11554_s10  ;;  %v2316_v49 = vrot.slane %v2311_v48, 1  ;;  %v2313_v51 = vrot.slane %v2311_v48, 7 }
 0x719   : > { %2575 = vmatpush1.bf16.msra.mxu1 %v8793_v61  ;;  %v8812_v61 = vld [vmem:[#allocation18 + $0x50] sm:$0xff]  }
 0x71a   : > { %v2319_v50 = vsel %vm2315_vm1, 0.0, %v2316_v49  ;;  %v2314_v53 = vsel %vm1798_vm4, 0.0, %v2313_v51  ;;  %2576 = vmatprep.subr.bf16.mxu1 %v10117_v1  ;;  %v8802_v51 = vld [vmem:[#allocation18] sm:$0xff]  }
 0x71b   : > { %2324 = vrot.lane.b32.xlu0 %v2319_v50, %s10124_s7 }
 0x71d   : > { %2577 = vmatpush1.bf16.msra.mxu1 %v8794_v62  ;;  %v7401_v62 = vld [vmem:[#allocation17] ss:$0 sm:$0xff] }
 0x71e   : > { %2578 = vmatprep.subr.bf16.mxu1 %v10117_v1 }
 0x721   : > { %2579 = vmatpush1.bf16.msra.mxu1 %v8795_v63 }
 0x722   : > { %2580 = vmatprep.subr.bf16.mxu1 %v10117_v1 }
 0x725   : > { %2581 = vmatpush1.bf16.msra.mxu1 %v8796_v0 }
 0x726   : > { %2582 = vmatprep.subr.bf16.mxu1 %v10117_v1 }
 0x729   : > { %2583 = vmatpush1.bf16.msra.mxu1 %v8797_v2 }
 0x72a   : > { %2584 = vmatprep.subr.bf16.mxu1 %v10117_v1 }
 0x72d   : > { %2585 = vmatpush1.bf16.msra.mxu1 %v8798_v3 }
 0x72e   : > { %2586 = vmatprep.subr.bf16.mxu1 %v10117_v1 }
 0x731   : > { %2587 = vmatpush1.bf16.msra.mxu1 %v8799_v4 }
 0x732   : > { %2588 = vmatprep.subr.bf16.mxu1 %v10117_v1 }
 0x735   : > { %2589 = vmatpush1.bf16.msra.mxu1 %v8800_v5 }
 0x736   : > { %2590 = vmatprep.subr.bf16.mxu1 %v10117_v1 }
 0x739   : > { %2591 = vmatpush1.bf16.msra.mxu1 %v8801_v39 }
 0x73a   : > { %7913 = vmatprep.subr.bf16.mxu1 %v8814_v27 }
 0x78a   : > { %v2321_v52 = vpop.permute.xlu1 %2320 }
 0x78b   : > { %v2327_v54 = vsel %vm11553_vm3, %v2314_v53, %v2321_v52  ;;  %v8803_v52 = vld [vmem:[#allocation18 + $0x8] sm:$0xff]   ;;  %v8804_v53 = vld [vmem:[#allocation18 + $0x10] sm:$0xff]   ;;  %vm10997_vm3 = vmpackc.low %vm7459_vm12, %vm7459_vm12 }
 0x78d   : > { %v2325_v55 = vpop.permute.xlu0 %2324 }
 0x78e   : > { %v2328_v56 = vsel %vm2055_vm10, %v2327_v54, %v2325_v55  ;;  %v8805_v54 = vld [vmem:[#allocation18 + $0x18] sm:$0xff]   ;;  %v8806_v55 = vld [vmem:[#allocation18 + $0x20] sm:$0xff]  }
 0x78f   : > { %v2329_v57 = vpack.c.bf16 %v2328_v56, %v2328_v56  ;;  %v8807_v56 = vld [vmem:[#allocation18 + $0x28] sm:$0xff]  }
 0x791   : > { %8239 = vmatmul.mubr.msk.bf16.vlgmr.msra.gmra.mrb[12].mxu0 %vm2114_vm11, %v2329_v57  ;;  %v8808_v57 = vld [vmem:[#allocation18 + $0x30] sm:$0xff]  }
 0x792   : > { %2817 = vmatpush1.bf16.msra.mxu0 %v8802_v51 }
 0x793   : > { %2818 = vmatprep.subr.bf16.mxu0 %v10117_v1 }
 0x796   : > { %2819 = vmatpush1.bf16.msra.mxu0 %v8803_v52  ;;  %v8813_v52 = vld [vmem:[#allocation18 + $0x58] sm:$0xff]  }
 0x797   : > { %2820 = vmatprep.subr.bf16.mxu0 %v10117_v1 }
 0x79a   : > { %2821 = vmatpush1.bf16.msra.mxu0 %v8804_v53 }
 0x79b   : > { %2822 = vmatprep.subr.bf16.mxu0 %v10117_v1 }
 0x79e   : > { %2823 = vmatpush1.bf16.msra.mxu0 %v8805_v54 }
 0x79f   : > { %2824 = vmatprep.subr.bf16.mxu0 %v10117_v1 }
 0x7a2   : > { %2825 = vmatpush1.bf16.msra.mxu0 %v8806_v55 }
 0x7a3   : > { %2826 = vmatprep.subr.bf16.mxu0 %v10117_v1 }
 0x7a6   : > { %2827 = vmatpush1.bf16.msra.mxu0 %v8807_v56 }
 0x7a7   : > { %2828 = vmatprep.subr.bf16.mxu0 %v10117_v1 }
 0x7aa   : > { %2829 = vmatpush1.bf16.msra.mxu0 %v8808_v57 }
 0x7ab   : > { %2830 = vmatprep.subr.bf16.mxu0 %v10117_v1 }
 0x7ae   : > { %2831 = vmatpush1.bf16.msra.mxu0 %v8809_v58 }
 0x7af   : > { %2832 = vmatprep.subr.bf16.mxu0 %v10117_v1 }
 0x7b2   : > { %2833 = vmatpush1.bf16.msra.mxu0 %v8810_v59 }
 0x7b3   : > { %2834 = vmatprep.subr.bf16.mxu0 %v10117_v1 }
 0x7b6   : > { %2835 = vmatpush1.bf16.msra.mxu0 %v8811_v60 }
 0x7b7   : > { %2836 = vmatprep.subr.bf16.mxu0 %v10117_v1 }
 0x7ba   : > { %2837 = vmatpush1.bf16.msra.mxu0 %v8812_v61 }
 0x7bb   : > { %2838 = vmatprep.subr.bf16.mxu0 %v10117_v1 }
 0x7be   : > { %2839 = vmatpush1.bf16.msra.mxu0 %v8813_v52 }
 0x7bf   : > { %8242 = vmatprep.subr.bf16.mxu0 %v10120_v12 }
 0x864   : > { %v2422_v8 = vpop.f32.mrb[12].mxu0 }
 0x865   : > { %v2423_v9 = vadd.f32 %v7393_v7, %v2422_v8  ;;  %v8240_v10 = vpop.f32.mrb[13].mxu0 }
 0x866   : > { %v2425_v13 = vpop.f32.mrb[14].mxu0 }
 0x867   : > { %v2428_v14 = vsel %vm2055_vm10, %v2423_v9, 0.0  ;;  %v8241_v16 = vpop.f32.mrb[15].mxu0 }
 0x868   : > { %v2429_v17 = vrot.slane %v2428_v14, 4 }
 0x86a   : > { %v2430_v18 = vadd.f32 %v2429_v17, %v2428_v14 }
 0x86c   : > { %v2431_v6 = vrot.slane %v2430_v18, 2 }
 0x86e   : > { %v2432_v19 = vadd.f32 %v2431_v6, %v2430_v18 }
 0x870   : > { %v2433_v20 = vrot.slane %v2432_v19, 1 }
 0x872   : > { %v2434_v21 = vadd.f32 %v2433_v20, %v2432_v19 }
 0x874   : > { %v2436_v22 = vmul.f32 0.125, %v2434_v21 }
 0x876   : > { %v2437_v23 = vsub.f32 %v2423_v9, %v2436_v22 }
 0x878   : > { %v2438_v24 = vmul.f32 %v2437_v23, %v2437_v23 }
 0x87a   : > { %v2439_v29 = vsel %vm2055_vm10, %v2438_v24, 0.0 }
 0x87b   : > { %v2440_v30 = vrot.slane %v2439_v29, 4 }
 0x87d   : > { %v2441_v31 = vadd.f32 %v2440_v30, %v2439_v29 }
 0x87f   : > { %v2442_v32 = vrot.slane %v2441_v31, 2 }
 0x881   : > { %v2443_v34 = vadd.f32 %v2442_v32, %v2441_v31 }
 0x883   : > { %v2444_v35 = vrot.slane %v2443_v34, 1 }
 0x885   : > { %v2445_v36 = vadd.f32 %v2444_v35, %v2443_v34 }
 0x887   : > { %v2446_v37 = vmul.f32 0.125, %v2445_v36 }
 0x889   : > { %v2447_v38 = vadd.f32 1e-05, %v2446_v37 }
 0x88b   : > { %9231 = vrsqrt.f32 %v2447_v38 }
 0x895   : > { %v9232_v40 = vpop.eup %9231 }
 0x896   : > { %v2449_v41 = vmul.f32 %v9232_v40, %v2437_v23 }
 0x898   : > { %v2450_v42 = vmax.f32 %v2449_v41, 0.0 }
 0x89a   : > { %2456 = vrot.lane.b32.xlu1 %v2450_v42, %s10124_s7  ;;  %v2453_v43 = vrot.slane %v2450_v42, 1  ;;  %v2451_v46 = vrot.slane %v2450_v42, 7 }
 0x89c   : > { %v2454_v44 = vsel %vm2315_vm1, 0.0, %v2453_v43  ;;  %v2452_v48 = vsel %vm1798_vm4, 0.0, %v2451_v46 }
 0x89d   : > { %v2461_v45 = vpack.c.bf16 %v2454_v44, %v2454_v44 }
 0x89f   : > { %7414 = vmatprep.mubr.msk.bf16.mxu1 %vm2055_vm10, %v2461_v45 }
 0x90c   : > { %v2457_v47 = vpop.permute.xlu1 %2456 }
 0x90d   : > { %v2459_v49 = vsel %vm2055_vm10, %v2452_v48, %v2457_v47 }
 0x90e   : > { %v2460_v50 = vpack.c.bf16 %v2459_v49, %v2459_v49 }
 0x910   : > { %2601 = vmatmul.mubr.bf16.vlgmr.msra.gmra.mrb[8].mxu1 %v2460_v50 }
 0x911   : > { %7914 = vmatpush3.bf16.msra.mxu1 %v8815_v28 }
 0x9e3   : > { %v2602_v63 = vpop.f32.mrb[8].mxu1 }
 0x9e4   : > { %v2603_v0 = vadd.f32 %v7401_v62, %v2602_v63  ;;  %v2604_v2 = vpop.f32.mrb[9].mxu1 }
 0x9e5   : > { %v2605_v3 = vpop.f32.mrb[10].mxu1 }
 0x9e6   : > { %v2608_v4 = vsel %vm2055_vm10, %v2603_v0, 0.0  ;;  %v2606_v5 = vpop.f32.mrb[11].mxu1 }
 0x9e7   : > { %v2609_v7 = vrot.slane %v2608_v4, 4 }
 0x9e9   : > { %v2610_v8 = vadd.f32 %v2609_v7, %v2608_v4 }
 0x9eb   : > { %v2611_v9 = vrot.slane %v2610_v8, 2 }
 0x9ed   : > { %v2612_v10 = vadd.f32 %v2611_v9, %v2610_v8 }
 0x9ef   : > { %v2613_v13 = vrot.slane %v2612_v10, 1 }
 0x9f1   : > { %v2614_v14 = vadd.f32 %v2613_v13, %v2612_v10 }
 0x9f3   : > { %v2615_v16 = vmul.f32 0.125, %v2614_v14 }
 0x9f5   : > { %v2616_v17 = vsub.f32 %v2603_v0, %v2615_v16 }
 0x9f7   : > { %v2617_v18 = vmul.f32 %v2616_v17, %v2616_v17 }
 0x9f9   : > { %v2618_v6 = vsel %vm2055_vm10, %v2617_v18, 0.0 }
 0x9fa   : > { %v2619_v19 = vrot.slane %v2618_v6, 4 }
 0x9fc   : > { %v2620_v20 = vadd.f32 %v2619_v19, %v2618_v6 }
 0x9fe   : > { %v2621_v21 = vrot.slane %v2620_v20, 2 }
 0xa00   : > { %v2622_v22 = vadd.f32 %v2621_v21, %v2620_v20 }
 0xa02   : > { %v2623_v23 = vrot.slane %v2622_v22, 1 }
 0xa04   : > { %v2624_v24 = vadd.f32 %v2623_v23, %v2622_v22 }
 0xa06   : > { %v2625_v29 = vmul.f32 0.125, %v2624_v24  ;;  %v8817_v24 = vld [vmem:[#allocation21 + $0x48] sm:$0xff]  }
 0xa07   : > { %7915 = vmatprep.subr.bf16.mxu1 %v8817_v24 }
 0xa08   : > { %v2626_v30 = vadd.f32 1e-05, %v2625_v29  ;;  %v8818_v29 = vld [vmem:[#allocation21 + $0x8] sm:$0xff]  }
 0xa09   : > { %7916 = vmatpush3.bf16.msra.mxu1 %v8818_v29 }
 0xa0a   : > { %9233 = vrsqrt.f32 %v2626_v30  ;;  %v8819_v30 = vld [vmem:[#allocation21 + $0x88] sm:$0xff]  }
 0xa14   : > { %v9234_v31 = vpop.eup %9233 }
 0xa15   : > { %v2628_v32 = vmul.f32 %v9234_v31, %v2616_v17  ;;  %v8820_v31 = vld [vmem:[#allocation21 + $0x50] sm:$0xff]  }
 0xa16   : > { %7917 = vmatprep.subr.bf16.mxu1 %v8820_v31  ;;  %v8840_v31 = vld [vmem:[%s11655_s22 + $0x4] ss:$8 sps:$4 sm:$0xff]  }
 0xa17   : > { %v10949_v34 = vmax.f32 %v2628_v32, 0.0  ;;  %v8821_v32 = vld [vmem:[#allocation21 + $0x10] sm:$0xff]  }
 0xa18   : > { %7918 = vmatpush3.bf16.msra.mxu1 %v8821_v32  ;;  %v8838_v32 = vld [vmem:[%s11655_s22] ss:$8 sps:$4 sm:$0xff]  }
 0xa19   : > { %v2631_v35 = vcombine.high %v10949_v34, %v10949_v34  ;;  %v2638_v36 = vrot.slane %v10949_v34, %v10863_v25 }
 0xa1b   : > { %v2645_v37 = vrot.slane %v2631_v35, %v10863_v25  ;;  %v2646_v38 = vcombine.high %v2638_v36, %v2638_v36  ;;  %v2653_v39 = vsel %vm2652_vm2, %v2638_v36, -inf  ;;  %v8822_v35 = vld [vmem:[#allocation21 + $0x90] sm:$0xff]   ;;  %v8823_v36 = vld [vmem:[#allocation21 + $0x58] sm:$0xff]  }
 0xa1c   : > { %v2654_v40 = vrot.slane %v2653_v39, 4  ;;  %7919 = vmatprep.subr.bf16.mxu1 %v8823_v36  ;;  %v8841_v36 = vld [vmem:[%s11655_s22 + $0x10] ss:$8 sps:$4 sm:$0xff]  }
 0xa1d   : > { %v2647_v41 = vcombine.high %v2645_v37, %v2645_v37  ;;  %v2660_v42 = vsel %vm2652_vm2, %v2646_v38, -inf  ;;  %v2667_v43 = vsel %vm2652_vm2, %v2645_v37, -inf  ;;  %v8824_v37 = vld [vmem:[#allocation21 + $0x18] sm:$0xff]  }
 0xa1e   : > { %v2655_v44 = vmax.f32 %v2653_v39, %v2654_v40  ;;  %v2661_v45 = vrot.slane %v2660_v42, 4  ;;  %v2668_v46 = vrot.slane %v2667_v43, 4  ;;  %v8825_v38 = vld [vmem:[#allocation21 + $0x98] sm:$0xff]   ;;  %7920 = vmatpush3.bf16.msra.mxu1 %v8824_v37  ;;  %v8826_v39 = vld [vmem:[#allocation21 + $0x60] sm:$0xff]  }
 0xa1f   : > { %v2674_v47 = vsel %vm2652_vm2, %v2647_v41, -inf  ;;  %v8827_v40 = vld [vmem:[#allocation21 + $0x20] sm:$0xff]   ;;  %7921 = vmatprep.subr.bf16.mxu1 %v8826_v39  ;;  %v8846_v37 = vld [vmem:[%s11655_s22 + $0x24] ss:$8 sps:$4 sm:$0xff]  }
 0xa20   : > { %v2656_v48 = vrot.slane %v2655_v44, 2  ;;  %v2662_v49 = vmax.f32 %v2660_v42, %v2661_v45  ;;  %v2669_v50 = vmax.f32 %v2667_v43, %v2668_v46  ;;  %v2675_v51 = vrot.slane %v2674_v47, 4  ;;  %v8828_v41 = vld [vmem:[#allocation21 + $0xa0] sm:$0xff]   ;;  %v8829_v42 = vld [vmem:[#allocation21 + $0x68] sm:$0xff]   ;;  %v8832_v45 = vld [vmem:[#allocation21 + $0x70] sm:$0xff]  }
 0xa21   : > { %v8830_v43 = vld [vmem:[#allocation21 + $0x28] sm:$0xff]   ;;  %v8833_v46 = vld [vmem:[#allocation21 + $0x30] sm:$0xff]  }
 0xa22   : > { %v2657_v53 = vmax.f32 %v2655_v44, %v2656_v48  ;;  %v2663_v54 = vrot.slane %v2662_v49, 2  ;;  %v2670_v55 = vrot.slane %v2669_v50, 2  ;;  %v2676_v56 = vmax.f32 %v2674_v47, %v2675_v51  ;;  %7922 = vmatpush3.bf16.msra.mxu1 %v8827_v40  ;;  %v8831_v44 = vld [vmem:[#allocation21 + $0xa8] sm:$0xff]   ;;  %v8834_v47 = vld [vmem:[#allocation21 + $0xb0] sm:$0xff]   ;;  %v8835_v48 = vld [vmem:[#allocation21 + $0x78] sm:$0xff]  }
 0xa23   : > { %7923 = vmatprep.subr.bf16.mxu1 %v8829_v42  ;;  %v7415_v51 = vld [vmem:[#allocation20] ss:$0 sm:$0xff]  ;;  %v8849_v39 = vld [vmem:[%s11655_s22 + $0x34] ss:$8 sps:$4 sm:$0xff]   ;;  %v8850_v42 = vld [vmem:[%s11655_s22 + $0x40] ss:$8 sps:$4 sm:$0xff]  }
 0xa24   : > { %v2658_v57 = vrot.slane %v2657_v53, 1  ;;  %v2664_v58 = vmax.f32 %v2662_v49, %v2663_v54  ;;  %v2671_v59 = vmax.f32 %v2669_v50, %v2670_v55  ;;  %v2677_v60 = vrot.slane %v2676_v56, 2  ;;  %v8836_v49 = vld [vmem:[#allocation21 + $0x38] sm:$0xff]  }
 0xa25   : > { %v8837_v50 = vld [vmem:[#allocation21 + $0xb8] sm:$0xff]  }
 0xa26   : > { %v2665_v61 = vrot.slane %v2664_v58, 1  ;;  %v2672_v62 = vrot.slane %v2671_v59, 1  ;;  %v2678_v63 = vmax.f32 %v2676_v56, %v2677_v60  ;;  %v2659_v0 = vmax.f32 %v2657_v53, %v2658_v57  ;;  %7924 = vmatpush3.bf16.msra.mxu1 %v8830_v43  ;;  %v8847_v40 = vld [vmem:[%s11655_s22 + $0x30] ss:$8 sps:$4 sm:$0xff]   ;;  %v8855_v43 = vld [vmem:[%s11655_s22 + $0x54] ss:$8 sps:$4 sm:$0xff]  }
 0xa27   : > { %7925 = vmatprep.subr.bf16.mxu1 %v8832_v45  ;;  %v8858_v45 = vld [vmem:[%s11655_s22 + $0x64] ss:$8 sps:$4 sm:$0xff]  }
 0xa28   : > { %v2666_v2 = vmax.f32 %v2664_v58, %v2665_v61  ;;  %v2673_v3 = vmax.f32 %v2671_v59, %v2672_v62  ;;  %v2679_v4 = vrot.slane %v2678_v63, 1 }
 0xa2a   : > { %v2680_v5 = vmax.f32 %v2678_v63, %v2679_v4  ;;  %v2685_v7 = vsel %vm2298_vm13, %v2666_v2, %v2659_v0  ;;  %7926 = vmatpush3.bf16.msra.mxu1 %v8833_v46  ;;  %v8856_v46 = vld [vmem:[%s11655_s22 + $0x60] ss:$8 sps:$4 sm:$0xff]  }
 0xa2b   : > { %v2686_v8 = vsel %vm2300_vm14, %v2673_v3, %v2685_v7  ;;  %7927 = vmatprep.subr.bf16.mxu1 %v8835_v48  ;;  %vm2856_vm14 = vcmask 1043456   ;;  %v8859_v48 = vld [vmem:[%s11655_s22 + $0x70] ss:$8 sps:$4 sm:$0xff]  }
 0xa2c   : > { %v2687_v9 = vsel %vm2302_vm15, %v2680_v5, %v2686_v8  ;;  %vm7454_vm15 = vmneg %vm1798_vm4 }
 0xa2d   : > { %2704 = vrot.lane.b32.xlu0 %v2687_v9, %s10124_s7  ;;  %v2690_v10 = vrot.slane %v2687_v9, 4  ;;  %vm10993_vm2 = vmpackc.low %vm7454_vm15, %vm7454_vm15  ;;  %vm3225_vm15 = vcmask 1047554  }
 0xa2e   : > { %7928 = vmatpush3.bf16.msra.mxu1 %v8836_v49  ;;  %v8864_v49 = vld [vmem:[%s11655_s22 + $0x84] ss:$8 sps:$4 sm:$0xff]  }
 0xa2f   : > { %v2691_v13 = vsel %vm2689_vm8, %v2690_v10, %v2687_v9  ;;  %3541 = vmatprep.subr.bf16.mxu1 %v8840_v31 }
 0xa30   : > { %v2692_v14 = vrot.slane %v2691_v13, 4 }
 0xa31   : > { %5722 = vrot.lane.b32.xlu0 %v10949_v34, %s10124_s7 }
 0xa32   : > { %v2693_v16 = vsel %vm2689_vm8, %v2692_v14, %v2687_v9 }
 0xa33   : > { %v2701_v17 = vrot.slane %v2693_v16, 1  ;;  %v2695_v19 = vrot.slane %v2693_v16, 3 }
 0xa35   : > { %8754 = vrot.lane.b32.xlu0 %v8753_v33, %s10124_s7  ;;  %v2703_v18 = vsel %vm2698_vm9, 0.0, %v2701_v17  ;;  %v2697_v21 = vsel %vm1798_vm4, 0.0, %v2695_v19  ;;  %v8816_v33 = vld [vmem:[#allocation21 + $0x80] sm:$0xff]   ;;  %vm3206_vm9 = vcmask 1041408  }
 0xa36   : > { %v2709_v6 = vpack.c.bf16 %v2703_v18, %v2703_v18 }
 0xa38   : > { %7428 = vmatprep.mubr.msk.bf16.mxu0 %vm2055_vm10, %v2709_v6 }
 0xa9f   : > { %v2705_v20 = vpop.permute.xlu0 %2704 }
 0xaa0   : > { %v2707_v22 = vsel %vm2055_vm10, %v2697_v21, %v2705_v20 }
 0xaa1   : > { %v2708_v23 = vpack.c.bf16 %v2707_v22, %v2707_v22 }
 0xaa3   : > { %2849 = vmatmul.mubr.bf16.vlgmr.msra.gmra.mrb[16].mxu0 %v2708_v23 }
 0xaa4   : > { %8258 = vmatprep.mubr.msk.bf16.mxu0 %vm10119_vm0, %v10120_v12  ;;  %8243 = vmatpush3.bf16.msra.mxu0 %v8816_v33 }
 0xaa5   : > { %8244 = vmatprep.subr.bf16.mxu0 %v10120_v12 }
 0xaa8   : > { %8245 = vmatpush3.bf16.msra.mxu0 %v8819_v30 }
 0xaa9   : > { %8246 = vmatprep.subr.bf16.mxu0 %v10120_v12 }
 0xaac   : > { %8247 = vmatpush3.bf16.msra.mxu0 %v8822_v35  ;;  %v8843_v35 = vld [vmem:[%s11655_s22 + $0x14] ss:$8 sps:$4 sm:$0xff]  }
 0xaad   : > { %8248 = vmatprep.subr.bf16.mxu0 %v10120_v12 }
 0xab0   : > { %8249 = vmatpush3.bf16.msra.mxu0 %v8825_v38  ;;  %v8844_v38 = vld [vmem:[%s11655_s22 + $0x20] ss:$8 sps:$4 sm:$0xff]  }
 0xab1   : > { %8250 = vmatprep.subr.bf16.mxu0 %v10120_v12 }
 0xab4   : > { %8251 = vmatpush3.bf16.msra.mxu0 %v8828_v41  ;;  %v8852_v41 = vld [vmem:[%s11655_s22 + $0x44] ss:$8 sps:$4 sm:$0xff]  }
 0xab5   : > { %8252 = vmatprep.subr.bf16.mxu0 %v10120_v12 }
 0xab8   : > { %8253 = vmatpush3.bf16.msra.mxu0 %v8831_v44  ;;  %v8853_v44 = vld [vmem:[%s11655_s22 + $0x50] ss:$8 sps:$4 sm:$0xff]  }
 0xab9   : > { %8254 = vmatprep.subr.bf16.mxu0 %v10120_v12 }
 0xabc   : > { %8255 = vmatpush3.bf16.msra.mxu0 %v8834_v47  ;;  %v8861_v47 = vld [vmem:[%s11655_s22 + $0x74] ss:$8 sps:$4 sm:$0xff]  }
 0xabd   : > { %8256 = vmatprep.subr.bf16.mxu0 %v10120_v12 }
 0xac0   : > { %8257 = vmatpush3.bf16.msra.mxu0 %v8837_v50  ;;  %v8862_v50 = vld [vmem:[%s11655_s22 + $0x80] ss:$8 sps:$4 sm:$0xff]  }
 0xb76   : > { %v2850_v52 = vpop.f32.mrb[16].mxu0 }
 0xb77   : > { %v2851_v53 = vadd.f32 %v7415_v51, %v2850_v52  ;;  %v2852_v54 = vpop.f32.mrb[17].mxu0  ;;  %v8867_v51 = vld [vmem:[%s11655_s22 + $0x94] ss:$8 sps:$4 sm:$0xff]   ;;  %v8865_v52 = vld [vmem:[%s11655_s22 + $0x90] ss:$8 sps:$4 sm:$0xff]  }
 0xb78   : > { %v2853_v55 = vpop.f32.mrb[18].mxu0  ;;  %v8868_v54 = vld [vmem:[%s11655_s22 + $0xa0] ss:$8 sps:$4 sm:$0xff]  }
 0xb79   : > { %v2857_v56 = vsel %vm2856_vm14, %v2851_v53, 0.0  ;;  %v2854_v57 = vpop.f32.mrb[19].mxu0  ;;  %v8873_v55 = vld [vmem:[%s11655_s22 + $0xb4] ss:$8 sps:$4 sm:$0xff]  }
 0xb7a   : > { %v2858_v58 = vrot.slane %v2857_v56, 4  ;;  %v8876_v57 = vld [vmem:[%s11655_s22 + $0xc4] ss:$8 sps:$4 sm:$0xff]  }
 0xb7c   : > { %v2859_v59 = vadd.f32 %v2858_v58, %v2857_v56  ;;  %v8871_v56 = vld [vmem:[%s11655_s22 + $0xb0] ss:$8 sps:$4 sm:$0xff]   ;;  %v8874_v58 = vld [vmem:[%s11655_s22 + $0xc0] ss:$8 sps:$4 sm:$0xff]  }
 0xb7e   : > { %v2860_v60 = vrot.slane %v2859_v59, 2 }
 0xb80   : > { %v2861_v61 = vadd.f32 %v2860_v60, %v2859_v59  ;;  %v8879_v59 = vld [vmem:[%s11655_s22 + $0xd4] ss:$8 sps:$4 sm:$0xff]   ;;  %v8877_v60 = vld [vmem:[%s11655_s22 + $0xd0] ss:$8 sps:$4 sm:$0xff]  }
 0xb82   : > { %v2862_v62 = vrot.slane %v2861_v61, 1 }
 0xb84   : > { %v2863_v63 = vadd.f32 %v2862_v62, %v2861_v61  ;;  %v8882_v61 = vld [vmem:[%s11655_s22 + $0xe4] ss:$8 sps:$4 sm:$0xff]   ;;  %v8880_v62 = vld [vmem:[%s11655_s22 + $0xe0] ss:$8 sps:$4 sm:$0xff]  }
 0xb86   : > { %v2865_v0 = vmul.f32 0.25, %v2863_v63  ;;  %v8885_v63 = vld [vmem:[%s11655_s22 + $0xf4] ss:$8 sps:$4 sm:$0xff]  }
 0xb88   : > { %v2866_v2 = vsub.f32 %v2851_v53, %v2865_v0  ;;  %v8870_v53 = vld [vmem:[%s11655_s22 + $0xa4] ss:$8 sps:$4 sm:$0xff]   ;;  %v8883_v0 = vld [vmem:[%s11655_s22 + $0xf0] ss:$8 sps:$4 sm:$0xff]  }
 0xb8a   : > { %v2867_v3 = vmul.f32 %v2866_v2, %v2866_v2 }
 0xb8c   : > { %v2868_v4 = vsel %vm2856_vm14, %v2867_v3, 0.0 }
 0xb8d   : > { %v2869_v5 = vrot.slane %v2868_v4, 4 }
 0xb8f   : > { %v2870_v7 = vadd.f32 %v2869_v5, %v2868_v4  ;;  %v7429_v5 = vld [vmem:[#allocation23] ss:$0 sm:$0xff] }
 0xb91   : > { %v2871_v8 = vrot.slane %v2870_v7, 2 }
 0xb93   : > { %v2872_v9 = vadd.f32 %v2871_v8, %v2870_v7 }
 0xb95   : > { %v2873_v10 = vrot.slane %v2872_v9, 1 }
 0xb97   : > { %v2874_v13 = vadd.f32 %v2873_v10, %v2872_v9 }
 0xb99   : > { %v2875_v14 = vmul.f32 0.25, %v2874_v13 }
 0xb9b   : > { %v2876_v16 = vadd.f32 1e-05, %v2875_v14 }
 0xb9d   : > { %9235 = vrsqrt.f32 %v2876_v16 }
 0xba7   : > { %v9236_v17 = vpop.eup %9235 }
 0xba8   : > { %v2878_v18 = vmul.f32 %v9236_v17, %v2866_v2  ;;  %v8888_v2 = vld [vmem:[%s11655_s22 + $0x104] ss:$8 sps:$4 sm:$0xff]  }
 0xbaa   : > { %v2879_v6 = vmax.f32 %v2878_v18, 0.0 }
 0xbac   : > { %v2880_v19 = vrot.slane %v2879_v6, 4  ;;  %v2892_v20 = vpack.c.bf16 %v2879_v6, %v2879_v6 }
 0xbae   : > { %v2881_v21 = vsel %vm2689_vm8, %v2880_v19, %v2879_v6  ;;  %3125 = vmatprep.mubr.bf16.mxu1 %v2892_v20 }
 0xbaf   : > { %v2882_v22 = vrot.slane %v2881_v21, 4 }
 0xbb1   : > { %v2883_v23 = vsel %vm2689_vm8, %v2882_v22, %v2879_v6 }
 0xbb2   : > { %v2885_v27 = vrot.slane %v2883_v23, 3  ;;  %v2888_v33 = vrot.slane %v2883_v23, 1 }
 0xbb4   : > { %v7457_v29 = vpack.c.bf16 %v2885_v27, %v2885_v27  ;;  %v7462_v30 = vpack.c.bf16 %v2888_v33, %v2888_v33 }
 0xbb6   : > { %7458 = vmatmul.mubr.msk.bf16.vlgmr.msra.gmra.mrb[12].mxu1 %vm10993_vm2, %v7457_v29  ;;  %8259 = vmatmul.mubr.msk.bf16.vlgmr.msra.gmra.mrb[20].mxu0 %vm10997_vm3, %v7462_v30 }
 0xbb7   : > { %3542 = vmatpush1.bf16.msra.mxu1 %v8838_v32 }
 0xbb8   : > { %3543 = vmatprep.subr.bf16.mxu1 %v8843_v35 }
 0xbbb   : > { %3544 = vmatpush1.bf16.msra.mxu1 %v8841_v36 }
 0xbbc   : > { %3545 = vmatprep.subr.bf16.mxu1 %v8846_v37 }
 0xbbf   : > { %3546 = vmatpush1.bf16.msra.mxu1 %v8844_v38 }
 0xbc0   : > { %3547 = vmatprep.subr.bf16.mxu1 %v8849_v39 }
 0xbc3   : > { %3548 = vmatpush1.bf16.msra.mxu1 %v8847_v40 }
 0xbc4   : > { %3549 = vmatprep.subr.bf16.mxu1 %v8852_v41 }
 0xbc7   : > { %3550 = vmatpush1.bf16.msra.mxu1 %v8850_v42 }
 0xbc8   : > { %3551 = vmatprep.subr.bf16.mxu1 %v8855_v43 }
 0xbcb   : > { %3552 = vmatpush1.bf16.msra.mxu1 %v8853_v44 }
 0xbcc   : > { %3553 = vmatprep.subr.bf16.mxu1 %v8858_v45 }
 0xbcf   : > { %3554 = vmatpush1.bf16.msra.mxu1 %v8856_v46 }
 0xbd0   : > { %3555 = vmatprep.subr.bf16.mxu1 %v8861_v47 }
 0xbd3   : > { %3556 = vmatpush1.bf16.msra.mxu1 %v8859_v48 }
 0xbd4   : > { %3557 = vmatprep.subr.bf16.mxu1 %v8864_v49 }
 0xbd7   : > { %3558 = vmatpush1.bf16.msra.mxu1 %v8862_v50 }
 0xbd8   : > { %3559 = vmatprep.subr.bf16.mxu1 %v8867_v51 }
 0xbdb   : > { %3560 = vmatpush1.bf16.msra.mxu1 %v8865_v52 }
 0xbdc   : > { %3561 = vmatprep.subr.bf16.mxu1 %v8870_v53 }
 0xbdf   : > { %3562 = vmatpush1.bf16.msra.mxu1 %v8868_v54 }
 0xbe0   : > { %3563 = vmatprep.subr.bf16.mxu1 %v8873_v55 }
 0xbe3   : > { %3564 = vmatpush1.bf16.msra.mxu1 %v8871_v56 }
 0xbe4   : > { %3565 = vmatprep.subr.bf16.mxu1 %v8876_v57 }
 0xbe7   : > { %3566 = vmatpush1.bf16.msra.mxu1 %v8874_v58 }
 0xbe8   : > { %3567 = vmatprep.subr.bf16.mxu1 %v8879_v59 }
 0xbeb   : > { %3568 = vmatpush1.bf16.msra.mxu1 %v8877_v60 }
 0xbec   : > { %3569 = vmatprep.subr.bf16.mxu1 %v8882_v61 }
 0xbef   : > { %3570 = vmatpush1.bf16.msra.mxu1 %v8880_v62 }
 0xbf0   : > { %3571 = vmatprep.subr.bf16.mxu1 %v8885_v63 }
 0xbf3   : > { %3572 = vmatpush1.bf16.msra.mxu1 %v8883_v0 }
 0xbf4   : > { %3582 = vmatprep.subr.bf16.mxu1 %v8888_v2 }
 0xc89   : > { %v7929_v3 = vpop.f32.mrb[12].mxu1  ;;  %v3167_v4 = vpop.f32.mrb[20].mxu0 }
 0xc8a   : > { %v7930_v7 = vpop.f32.mrb[13].mxu1  ;;  %v8260_v8 = vpop.f32.mrb[21].mxu0 }
 0xc8b   : > { %v7931_v9 = vadd.f32 %v7930_v7, %v7929_v3  ;;  %v7932_v10 = vpop.f32.mrb[14].mxu1  ;;  %v3170_v13 = vpop.f32.mrb[22].mxu0  ;;  %v8891_v7 = vld [vmem:[%s11655_s22 + $0x114] ss:$8 sps:$4 sm:$0xff]   ;;  %v8889_v8 = vld [vmem:[%s11655_s22 + $0x110] ss:$8 sps:$4 sm:$0xff]  }
 0xc8c   : > { %v7933_v14 = vpop.f32.mrb[15].mxu1  ;;  %v8261_v16 = vpop.f32.mrb[23].mxu0  ;;  %v8892_v10 = vld [vmem:[%s11655_s22 + $0x120] ss:$8 sps:$4 sm:$0xff]   ;;  %v8897_v13 = vld [vmem:[%s11655_s22 + $0x134] ss:$8 sps:$4 sm:$0xff]  }
 0xc8d   : > { %v3128_v17 = vadd.f32 %v7931_v9, %v7429_v5  ;;  %v8894_v9 = vld [vmem:[%s11655_s22 + $0x124] ss:$8 sps:$4 sm:$0xff]   ;;  %v8895_v14 = vld [vmem:[%s11655_s22 + $0x130] ss:$8 sps:$4 sm:$0xff]  }
 0xc8e   : > { %v8900_v16 = vld [vmem:[%s11655_s22 + $0x144] ss:$8 sps:$4 sm:$0xff]  }
 0xc8f   : > { %v3168_v18 = vadd.f32 %v3167_v4, %v3128_v17  ;;  %v8886_v4 = vld [vmem:[%s11655_s22 + $0x100] ss:$8 sps:$4 sm:$0xff]  }
 0xc90   : > { %v8898_v17 = vld [vmem:[%s11655_s22 + $0x140] ss:$8 sps:$4 sm:$0xff]  }
 0xc91   : > { %v3173_v6 = vsel %vm2856_vm14, %v3168_v18, 0.0 }
 0xc92   : > { %v3174_v19 = vrot.slane %v3173_v6, 4 }
 0xc94   : > { %v3175_v20 = vadd.f32 %v3174_v19, %v3173_v6  ;;  %v8901_v6 = vld [vmem:[%s11655_s22 + $0x150] ss:$8 sps:$4 sm:$0xff]   ;;  %v8906_v19 = vld [vmem:[%s11655_s22 + $0x164] ss:$8 sps:$4 sm:$0xff]  }
 0xc96   : > { %v3176_v21 = vrot.slane %v3175_v20, 2 }
 0xc98   : > { %v3177_v22 = vadd.f32 %v3176_v21, %v3175_v20  ;;  %v8904_v20 = vld [vmem:[%s11655_s22 + $0x160] ss:$8 sps:$4 sm:$0xff]   ;;  %v8909_v21 = vld [vmem:[%s11655_s22 + $0x174] ss:$8 sps:$4 sm:$0xff]  }
 0xc9a   : > { %v3178_v23 = vrot.slane %v3177_v22, 1 }
 0xc9c   : > { %v3179_v27 = vadd.f32 %v3178_v23, %v3177_v22  ;;  %v8907_v22 = vld [vmem:[%s11655_s22 + $0x170] ss:$8 sps:$4 sm:$0xff]  }
 0xc9d   : > { %v3788_v23 = vld [vmem:[#allocation26] sm:$0x3] }
 0xc9e   : > { %v3180_v33 = vmul.f32 0.25, %v3179_v27  ;;  %v8912_v27 = vld [vmem:[%s11660_s26 + $0x4] ss:$8 sps:$4 sm:$0xff]  }
 0xc9f   : > { %4280 = vmatprep.subr.bf16.mxu0 %v8912_v27 }
 0xca0   : > { %v3181_v29 = vsub.f32 %v3168_v18, %v3180_v33  ;;  %v8903_v18 = vld [vmem:[%s11655_s22 + $0x154] ss:$8 sps:$4 sm:$0xff]   ;;  %v8910_v33 = vld [vmem:[%s11660_s26] ss:$8 sps:$4 sm:$0xff]  }
 0xca1   : > { %4281 = vmatpush1.bf16.msra.mxu0 %v8910_v33 }
 0xca2   : > { %v3182_v30 = vmul.f32 %v3181_v29, %v3181_v29 }
 0xca4   : > { %v3183_v31 = vsel %vm2856_vm14, %v3182_v30, 0.0  ;;  %v8913_v30 = vld [vmem:[%s11660_s26 + $0x10] ss:$8 sps:$4 sm:$0xff]  }
 0xca5   : > { %v3184_v32 = vrot.slane %v3183_v31, 4 }
 0xca7   : > { %v3185_v35 = vadd.f32 %v3184_v32, %v3183_v31  ;;  %v8918_v31 = vld [vmem:[%s11660_s26 + $0x24] ss:$8 sps:$4 sm:$0xff]   ;;  %v8916_v32 = vld [vmem:[%s11660_s26 + $0x20] ss:$8 sps:$4 sm:$0xff]  }
 0xca9   : > { %v3186_v36 = vrot.slane %v3185_v35, 2 }
 0xcab   : > { %v3187_v37 = vadd.f32 %v3186_v36, %v3185_v35  ;;  %v8921_v35 = vld [vmem:[%s11660_s26 + $0x34] ss:$8 sps:$4 sm:$0xff]   ;;  %v8919_v36 = vld [vmem:[%s11660_s26 + $0x30] ss:$8 sps:$4 sm:$0xff]  }
 0xcad   : > { %v3188_v38 = vrot.slane %v3187_v37, 1 }
 0xcaf   : > { %v3189_v39 = vadd.f32 %v3188_v38, %v3187_v37  ;;  %v8924_v37 = vld [vmem:[%s11660_s26 + $0x44] ss:$8 sps:$4 sm:$0xff]   ;;  %v8922_v38 = vld [vmem:[%s11660_s26 + $0x40] ss:$8 sps:$4 sm:$0xff]  }
 0xcb1   : > { %v3190_v40 = vmul.f32 0.25, %v3189_v39  ;;  %v8927_v39 = vld [vmem:[%s11660_s26 + $0x54] ss:$8 sps:$4 sm:$0xff]  }
 0xcb3   : > { %v3191_v41 = vadd.f32 1e-05, %v3190_v40  ;;  %v8925_v40 = vld [vmem:[%s11660_s26 + $0x50] ss:$8 sps:$4 sm:$0xff]  }
 0xcb5   : > { %9237 = vrsqrt.f32 %v3191_v41  ;;  %v8930_v41 = vld [vmem:[%s11660_s26 + $0x64] ss:$8 sps:$4 sm:$0xff]  }
 0xcbf   : > { %v9238_v42 = vpop.eup %9237 }
 0xcc0   : > { %v3193_v43 = vmul.f32 %v9238_v42, %v3181_v29  ;;  %v8915_v29 = vld [vmem:[%s11660_s26 + $0x14] ss:$8 sps:$4 sm:$0xff]   ;;  %v8928_v42 = vld [vmem:[%s11660_s26 + $0x60] ss:$8 sps:$4 sm:$0xff]  }
 0xcc1   : > { %4282 = vmatprep.subr.bf16.mxu0 %v8915_v29 }
 0xcc2   : > { %v11040_v44 = vmax.f32 %v3193_v43, 0.0  ;;  %4283 = vmatpush1.bf16.msra.mxu0 %v8913_v30  ;;  %v8933_v43 = vld [vmem:[%s11660_s26 + $0x74] ss:$8 sps:$4 sm:$0xff]  }
 0xcc3   : > { %4284 = vmatprep.subr.bf16.mxu0 %v8918_v31 }
 0xcc4   : > { %v3202_v45 = vrot.slane %v11040_v44, %v10863_v25 }
 0xcc6   : > { %v3203_v46 = vcombine.high %v3202_v45, %v3202_v45  ;;  %v3207_v47 = vsel %vm3206_vm9, %v3202_v45, -inf  ;;  %4285 = vmatpush1.bf16.msra.mxu0 %v8916_v32  ;;  %v8931_v45 = vld [vmem:[%s11660_s26 + $0x70] ss:$8 sps:$4 sm:$0xff]  }
 0xcc7   : > { %v3208_v48 = vrot.slane %v3207_v47, 4  ;;  %4286 = vmatprep.subr.bf16.mxu0 %v8921_v35 }
 0xcc8   : > { %v3214_v49 = vsel %vm3206_vm9, %v3203_v46, -inf  ;;  %v8936_v46 = vld [vmem:[%s11660_s26 + $0x84] ss:$8 sps:$4 sm:$0xff]  }
 0xcc9   : > { %v3209_v50 = vmax.f32 %v3207_v47, %v3208_v48  ;;  %v3215_v51 = vrot.slane %v3214_v49, 4  ;;  %v8934_v47 = vld [vmem:[%s11660_s26 + $0x80] ss:$8 sps:$4 sm:$0xff]   ;;  %v8939_v48 = vld [vmem:[%s11660_s26 + $0x94] ss:$8 sps:$4 sm:$0xff]  }
 0xcca   : > { %4287 = vmatpush1.bf16.msra.mxu0 %v8919_v36 }
 0xccb   : > { %v3210_v52 = vrot.slane %v3209_v50, 2  ;;  %v3216_v53 = vmax.f32 %v3214_v49, %v3215_v51  ;;  %4288 = vmatprep.subr.bf16.mxu0 %v8924_v37  ;;  %v8937_v49 = vld [vmem:[%s11660_s26 + $0x90] ss:$8 sps:$4 sm:$0xff]   ;;  %v8940_v51 = vld [vmem:[%s11660_s26 + $0xa0] ss:$8 sps:$4 sm:$0xff]  }
 0xccd   : > { %v3211_v54 = vmax.f32 %v3209_v50, %v3210_v52  ;;  %v3217_v55 = vrot.slane %v3216_v53, 2  ;;  %v8942_v50 = vld [vmem:[%s11660_s26 + $0xa4] ss:$8 sps:$4 sm:$0xff]   ;;  %v8945_v52 = vld [vmem:[%s11660_s26 + $0xb4] ss:$8 sps:$4 sm:$0xff]  }
 0xcce   : > { %4289 = vmatpush1.bf16.msra.mxu0 %v8922_v38 }
 0xccf   : > { %v3212_v56 = vrot.slane %v3211_v54, 1  ;;  %v3218_v57 = vmax.f32 %v3216_v53, %v3217_v55  ;;  %4290 = vmatprep.subr.bf16.mxu0 %v8927_v39  ;;  %v8943_v53 = vld [vmem:[%s11660_s26 + $0xb0] ss:$8 sps:$4 sm:$0xff]   ;;  %v8946_v55 = vld [vmem:[%s11660_s26 + $0xc0] ss:$8 sps:$4 sm:$0xff]  }
 0xcd1   : > { %v3219_v58 = vrot.slane %v3218_v57, 1  ;;  %v3213_v59 = vmax.f32 %v3211_v54, %v3212_v56  ;;  %v8948_v54 = vld [vmem:[%s11660_s26 + $0xc4] ss:$8 sps:$4 sm:$0xff]   ;;  %v8951_v56 = vld [vmem:[%s11660_s26 + $0xd4] ss:$8 sps:$4 sm:$0xff]  }
 0xcd2   : > { %4291 = vmatpush1.bf16.msra.mxu0 %v8925_v40 }
 0xcd3   : > { %v3220_v25 = vmax.f32 %v3218_v57, %v3219_v58  ;;  %4292 = vmatprep.subr.bf16.mxu0 %v8930_v41  ;;  %v8949_v57 = vld [vmem:[%s11660_s26 + $0xd0] ss:$8 sps:$4 sm:$0xff]   ;;  %v8954_v58 = vld [vmem:[%s11660_s26 + $0xe4] ss:$8 sps:$4 sm:$0xff]  }
 0xcd5   : > { %v3223_v60 = vsel %vm2298_vm13, %v3220_v25, %v3213_v59  ;;  %vm7876_vm13 = vcmp.ne.s32.totalorder %v10735_v11, 1  ;;  %v8952_v59 = vld [vmem:[%s11660_s26 + $0xe0] ss:$8 sps:$4 sm:$0xff]   ;;  %v8957_v25 = vld [vmem:[%s11660_s26 + $0xf4] ss:$8 sps:$4 sm:$0xff]  }
 0xcd6   : > { %v3226_v61 = vrot.slane %v3223_v60, 6  ;;  %v3239_v62 = vpack.c.bf16 %v3223_v60, %v3223_v60  ;;  %vm11068_vm12 = vmpackc.low %vm7876_vm13, %vm7876_vm13  ;;  %4293 = vmatpush1.bf16.msra.mxu0 %v8928_v42 }
 0xcd7   : > { %4294 = vmatprep.subr.bf16.mxu0 %v8933_v43 }
 0xcd8   : > { %v3227_v63 = vsel %vm3225_vm15, %v3226_v61, %v3223_v60  ;;  %3573 = vmatprep.mubr.bf16.mxu1 %v3239_v62  ;;  %v8960_v61 = vld [vmem:[%s11660_s26 + $0x104] ss:$8 sps:$4 sm:$0xff]   ;;  %v3289_v62 = vld [vmem:[#allocation24] sm:$0x3] }
 0xcd9   : > { %v3228_v0 = vrot.slane %v3227_v63, 6  ;;  %v3297_v63 = vsub.s32 1, %v10735_v11 }
 0xcda   : > { %4295 = vmatpush1.bf16.msra.mxu0 %v8931_v45 }
 0xcdb   : > { %v3229_v2 = vsel %vm3225_vm15, %v3228_v0, %v3223_v60  ;;  %4296 = vmatprep.subr.bf16.mxu0 %v8936_v46  ;;  %v8955_v60 = vld [vmem:[%s11660_s26 + $0xf0] ss:$8 sps:$4 sm:$0xff]   ;;  %v3294_v0 = vrot.slane %v3289_v62, %v10759_v26 }
 0xcdc   : > { %v3231_v3 = vrot.slane %v3229_v2, 1  ;;  %v3298_v2 = vrot.slane %v3289_v62, %v3297_v63 }
 0xcde   : > { %v7515_v5 = vpack.c.bf16 %v3231_v3, %v3231_v3  ;;  %4297 = vmatpush1.bf16.msra.mxu0 %v8934_v47 }
 0xcdf   : > { %4298 = vmatprep.subr.bf16.mxu0 %v8939_v48 }
 0xce0   : > { %7516 = vmatmul.mubr.msk.bf16.vlgmr.msra.gmra.mrb[16].mxu1 %vm10993_vm2, %v7515_v5 }
 0xce1   : > { %3583 = vmatpush1.bf16.msra.mxu1 %v8886_v4  ;;  %3614 = vmatprep.mubr.bf16.mxu1 %v10117_v1 }
 0xce2   : > { %3584 = vmatprep.subr.bf16.mxu1 %v8891_v7  ;;  %4299 = vmatpush1.bf16.msra.mxu0 %v8937_v49 }
 0xce3   : > { %4300 = vmatprep.subr.bf16.mxu0 %v8942_v50 }
 0xce5   : > { %3585 = vmatpush1.bf16.msra.mxu1 %v8889_v8 }
 0xce6   : > { %3586 = vmatprep.subr.bf16.mxu1 %v8894_v9  ;;  %4301 = vmatpush1.bf16.msra.mxu0 %v8940_v51 }
 0xce7   : > { %4302 = vmatprep.subr.bf16.mxu0 %v8945_v52 }
 0xce9   : > { %3587 = vmatpush1.bf16.msra.mxu1 %v8892_v10 }
 0xcea   : > { %3588 = vmatprep.subr.bf16.mxu1 %v8897_v13  ;;  %4303 = vmatpush1.bf16.msra.mxu0 %v8943_v53 }
 0xceb   : > { %4304 = vmatprep.subr.bf16.mxu0 %v8948_v54 }
 0xced   : > { %3589 = vmatpush1.bf16.msra.mxu1 %v8895_v14 }
 0xcee   : > { %3590 = vmatprep.subr.bf16.mxu1 %v8900_v16  ;;  %4305 = vmatpush1.bf16.msra.mxu0 %v8946_v55 }
 0xcef   : > { %4306 = vmatprep.subr.bf16.mxu0 %v8951_v56 }
 0xcf1   : > { %3591 = vmatpush1.bf16.msra.mxu1 %v8898_v17 }
 0xcf2   : > { %3592 = vmatprep.subr.bf16.mxu1 %v8903_v18  ;;  %4307 = vmatpush1.bf16.msra.mxu0 %v8949_v57 }
 0xcf3   : > { %4308 = vmatprep.subr.bf16.mxu0 %v8954_v58 }
 0xcf5   : > { %3593 = vmatpush1.bf16.msra.mxu1 %v8901_v6 }
 0xcf6   : > { %3594 = vmatprep.subr.bf16.mxu1 %v8906_v19  ;;  %4309 = vmatpush1.bf16.msra.mxu0 %v8952_v59 }
 0xcf7   : > { %4310 = vmatprep.subr.bf16.mxu0 %v8957_v25 }
 0xcf9   : > { %3595 = vmatpush1.bf16.msra.mxu1 %v8904_v20 }
 0xcfa   : > { %3596 = vmatprep.subr.bf16.mxu1 %v8909_v21  ;;  %4311 = vmatpush1.bf16.msra.mxu0 %v8955_v60 }
 0xcfb   : > { %4321 = vmatprep.subr.bf16.mxu0 %v8960_v61 }
 0xcfd   : > { %3597 = vmatpush1.bf16.msra.mxu1 %v8907_v22 }
 0xd00   : > { %7521 = vmatmul.mubr.msk.bf16.vlgmr.msra.gmra.mrb[16].mxu1 %vm11068_vm12, %v7515_v5 }
 0xd01   : > { %4492 = vmatprep.mubr.bf16.mxu1 %v10117_v1 }
 0xdd3   : > { %v3616_v3 = vpop.f32.mrb[16].mxu1 }
 0xdd4   : > { %v8382_v4 = vadd.f32 %v3616_v3, %v3294_v0  ;;  %v3618_v5 = vpop.f32.mrb[17].mxu1 }
 0xdd5   : > { %v8383_v7 = vadd.f32 %v3618_v5, %v3298_v2  ;;  %v3620_v8 = vpop.f32.mrb[18].mxu1 }
 0xdd6   : > { %v3623_v9 = vsel %vm3206_vm9, %v8382_v4, 0.0  ;;  %v3621_v10 = vpop.f32.mrb[19].mxu1 }
 0xdd7   : > { %v3624_v13 = vrot.slane %v3623_v9, 4  ;;  %v3630_v14 = vsel %vm3206_vm9, %v8383_v7, 0.0 }
 0xdd8   : > { %v3631_v16 = vrot.slane %v3630_v14, 4 }
 0xdd9   : > { %v3625_v17 = vadd.f32 %v3624_v13, %v3623_v9 }
 0xdda   : > { %v3632_v18 = vadd.f32 %v3631_v16, %v3630_v14  ;;  %v8958_v14 = vld [vmem:[%s11660_s26 + $0x100] ss:$8 sps:$4 sm:$0xff]  }
 0xddb   : > { %v3626_v6 = vrot.slane %v3625_v17, 2 }
 0xddc   : > { %v3633_v19 = vrot.slane %v3632_v18, 2 }
 0xddd   : > { %v3627_v20 = vadd.f32 %v3626_v6, %v3625_v17  ;;  %v8963_v17 = vld [vmem:[%s11660_s26 + $0x114] ss:$8 sps:$4 sm:$0xff]   ;;  %v8961_v6 = vld [vmem:[%s11660_s26 + $0x110] ss:$8 sps:$4 sm:$0xff]  }
 0xdde   : > { %v3634_v21 = vadd.f32 %v3633_v19, %v3632_v18  ;;  %v8966_v19 = vld [vmem:[%s11660_s26 + $0x124] ss:$8 sps:$4 sm:$0xff]  }
 0xddf   : > { %v3628_v22 = vrot.slane %v3627_v20, 1 }
 0xde0   : > { %v3635_v27 = vrot.slane %v3634_v21, 1 }
 0xde1   : > { %v3629_v33 = vadd.f32 %v3628_v22, %v3627_v20  ;;  %v8964_v20 = vld [vmem:[%s11660_s26 + $0x120] ss:$8 sps:$4 sm:$0xff]   ;;  %v8967_v22 = vld [vmem:[%s11660_s26 + $0x130] ss:$8 sps:$4 sm:$0xff]  }
 0xde2   : > { %v3636_v29 = vadd.f32 %v3635_v27, %v3634_v21  ;;  %v8969_v21 = vld [vmem:[%s11660_s26 + $0x134] ss:$8 sps:$4 sm:$0xff]   ;;  %v8972_v27 = vld [vmem:[%s11660_s26 + $0x144] ss:$8 sps:$4 sm:$0xff]  }
 0xde3   : > { %v3638_v30 = vmul.f32 0.5, %v3629_v33  ;;  %v8970_v33 = vld [vmem:[%s11660_s26 + $0x140] ss:$8 sps:$4 sm:$0xff]  }
 0xde4   : > { %v3639_v31 = vmul.f32 0.5, %v3636_v29  ;;  %v8975_v29 = vld [vmem:[%s11660_s26 + $0x154] ss:$8 sps:$4 sm:$0xff]  }
 0xde5   : > { %v3640_v32 = vsub.f32 %v8382_v4, %v3638_v30  ;;  %v8973_v30 = vld [vmem:[%s11660_s26 + $0x150] ss:$8 sps:$4 sm:$0xff]  }
 0xde6   : > { %v3641_v35 = vsub.f32 %v8383_v7, %v3639_v31  ;;  %v8978_v31 = vld [vmem:[%s11660_s26 + $0x164] ss:$8 sps:$4 sm:$0xff]  }
 0xde7   : > { %v3642_v36 = vmul.f32 %v3640_v32, %v3640_v32 }
 0xde8   : > { %v3643_v37 = vmul.f32 %v3641_v35, %v3641_v35 }
 0xde9   : > { %v3644_v38 = vsel %vm3206_vm9, %v3642_v36, 0.0  ;;  %v8979_v36 = vld [vmem:[%s11660_s26 + $0x170] ss:$8 sps:$4 sm:$0xff]  }
 0xdea   : > { %v3645_v39 = vrot.slane %v3644_v38, 4  ;;  %v3651_v40 = vsel %vm3206_vm9, %v3643_v37, 0.0  ;;  %v8984_v37 = vld [vmem:[%s11660_s26 + $0x184] ss:$8 sps:$4 sm:$0xff]  }
 0xdeb   : > { %v3652_v41 = vrot.slane %v3651_v40, 4 }
 0xdec   : > { %v3646_v42 = vadd.f32 %v3645_v39, %v3644_v38  ;;  %v8982_v38 = vld [vmem:[%s11660_s26 + $0x180] ss:$8 sps:$4 sm:$0xff]   ;;  %v8987_v39 = vld [vmem:[%s11660_s26 + $0x194] ss:$8 sps:$4 sm:$0xff]  }
 0xded   : > { %v3653_v43 = vadd.f32 %v3652_v41, %v3651_v40  ;;  %v8985_v40 = vld [vmem:[%s11660_s26 + $0x190] ss:$8 sps:$4 sm:$0xff]   ;;  %v8990_v41 = vld [vmem:[%s11660_s26 + $0x1a4] ss:$8 sps:$4 sm:$0xff]  }
 0xdee   : > { %v3647_v45 = vrot.slane %v3646_v42, 2 }
 0xdef   : > { %v3654_v46 = vrot.slane %v3653_v43, 2 }
 0xdf0   : > { %v3648_v47 = vadd.f32 %v3647_v45, %v3646_v42  ;;  %v8988_v42 = vld [vmem:[%s11660_s26 + $0x1a0] ss:$8 sps:$4 sm:$0xff]   ;;  %v8991_v45 = vld [vmem:[%s11660_s26 + $0x1b0] ss:$8 sps:$4 sm:$0xff]  }
 0xdf1   : > { %v3655_v48 = vadd.f32 %v3654_v46, %v3653_v43  ;;  %v8993_v43 = vld [vmem:[%s11660_s26 + $0x1b4] ss:$8 sps:$4 sm:$0xff]   ;;  %v8996_v46 = vld [vmem:[%s11660_s26 + $0x1c4] ss:$8 sps:$4 sm:$0xff]  }
 0xdf2   : > { %v3649_v49 = vrot.slane %v3648_v47, 1 }
 0xdf3   : > { %v3656_v50 = vrot.slane %v3655_v48, 1 }
 0xdf4   : > { %v3650_v51 = vadd.f32 %v3649_v49, %v3648_v47  ;;  %v8994_v47 = vld [vmem:[%s11660_s26 + $0x1c0] ss:$8 sps:$4 sm:$0xff]   ;;  %v8997_v49 = vld [vmem:[%s11660_s26 + $0x1d0] ss:$8 sps:$4 sm:$0xff]  }
 0xdf5   : > { %v3657_v52 = vadd.f32 %v3656_v50, %v3655_v48  ;;  %v8999_v48 = vld [vmem:[%s11660_s26 + $0x1d4] ss:$8 sps:$4 sm:$0xff]   ;;  %v9002_v50 = vld [vmem:[%s11660_s26 + $0x1e4] ss:$8 sps:$4 sm:$0xff]  }
 0xdf6   : > { %v3658_v53 = vmul.f32 0.5, %v3650_v51  ;;  %v9000_v51 = vld [vmem:[%s11660_s26 + $0x1e0] ss:$8 sps:$4 sm:$0xff]  }
 0xdf7   : > { %v3659_v54 = vmul.f32 0.5, %v3657_v52  ;;  %v9005_v52 = vld [vmem:[%s11660_s26 + $0x1f4] ss:$8 sps:$4 sm:$0xff]  }
 0xdf8   : > { %v3660_v55 = vadd.f32 1e-05, %v3658_v53  ;;  %v9003_v53 = vld [vmem:[%s11660_s26 + $0x1f0] ss:$8 sps:$4 sm:$0xff]  }
 0xdf9   : > { %v3661_v56 = vadd.f32 1e-05, %v3659_v54  ;;  %v9008_v54 = vld [vmem:[%s11660_s26 + $0x204] ss:$8 sps:$4 sm:$0xff]  }
 0xdfa   : > { %9239 = vrsqrt.f32 %v3660_v55  ;;  %v9006_v55 = vld [vmem:[%s11660_s26 + $0x200] ss:$8 sps:$4 sm:$0xff]  }
 0xdfb   : > { %9241 = vrsqrt.f32 %v3661_v56 }
 0xe04   : > { %v9240_v57 = vpop.eup %9239 }
 0xe05   : > { %v9242_v58 = vpop.eup %9241  ;;  %v3664_v59 = vmul.f32 %v9240_v57, %v3640_v32  ;;  %v8976_v32 = vld [vmem:[%s11660_s26 + $0x160] ss:$8 sps:$4 sm:$0xff]   ;;  %v9011_v57 = vld [vmem:[%s11660_s26 + $0x214] ss:$8 sps:$4 sm:$0xff]  }
 0xe06   : > { %v3665_v25 = vmul.f32 %v9242_v58, %v3641_v35  ;;  %v8981_v35 = vld [vmem:[%s11660_s26 + $0x174] ss:$8 sps:$4 sm:$0xff]   ;;  %v9009_v58 = vld [vmem:[%s11660_s26 + $0x210] ss:$8 sps:$4 sm:$0xff]  }
 0xe07   : > { %v11116_v60 = vmax.f32 %v3664_v59, 0.0  ;;  %v9014_v59 = vld [vmem:[%s11660_s26 + $0x224] ss:$8 sps:$4 sm:$0xff]  }
 0xe08   : > { %v3667_v61 = vmax.f32 %v3665_v25, 0.0  ;;  %v9012_v25 = vld [vmem:[%s11660_s26 + $0x220] ss:$8 sps:$4 sm:$0xff]  }
 0xe09   : > { %v3668_v62 = vrot.slane %v11116_v60, 6  ;;  %v3688_v56 = vpack.c.bf16 %v11116_v60, %v11116_v60 }
 0xe0a   : > { %v3670_v0 = vrot.slane %v3667_v61, 6  ;;  %v3689_v18 = vpack.c.bf16 %v3667_v61, %v3667_v61 }
 0xe0b   : > { %v3669_v2 = vsel %vm3225_vm15, %v3668_v62, %v11116_v60  ;;  %v9020_v62 = vld [vmem:[%s11660_s26 + $0x244] ss:$8 sps:$4 sm:$0xff]  }
 0xe0c   : > { %v3672_v3 = vrot.slane %v3669_v2, 6  ;;  %v3671_v4 = vsel %vm3225_vm15, %v3670_v0, %v3667_v61  ;;  %v9018_v0 = vld [vmem:[%s11660_s26 + $0x240] ss:$8 sps:$4 sm:$0xff]   ;;  %v9023_v2 = vld [vmem:[%s11660_s26 + $0x254] ss:$8 sps:$4 sm:$0xff]  }
 0xe0d   : > { %v3673_v5 = vrot.slane %v3671_v4, 6  ;;  %v9026_v4 = vld [vmem:[%s11660_s26 + $0x264] ss:$8 sps:$4 sm:$0xff]  }
 0xe0e   : > { %v3674_v7 = vsel %vm3225_vm15, %v3672_v3, %v11116_v60  ;;  %v9017_v60 = vld [vmem:[%s11660_s26 + $0x234] ss:$8 sps:$4 sm:$0xff]   ;;  %v9021_v3 = vld [vmem:[%s11660_s26 + $0x250] ss:$8 sps:$4 sm:$0xff]  }
 0xe0f   : > { %v3675_v8 = vsel %vm3225_vm15, %v3673_v5, %v3667_v61  ;;  %v3678_v9 = vrot.slane %v3674_v7, 1  ;;  %v9015_v61 = vld [vmem:[%s11660_s26 + $0x230] ss:$8 sps:$4 sm:$0xff]   ;;  %v9024_v5 = vld [vmem:[%s11660_s26 + $0x260] ss:$8 sps:$4 sm:$0xff]   ;;  %vm4453_vm15 = vcmask 1040384  }
 0xe10   : > { %v3679_v10 = vrot.slane %v3675_v8, 1  ;;  %v9029_v7 = vld [vmem:[%s11660_s26 + $0x274] ss:$8 sps:$4 sm:$0xff]   ;;  %v9027_v8 = vld [vmem:[%s11660_s26 + $0x270] ss:$8 sps:$4 sm:$0xff]  }
 0xe11   : > { %v11128_v16 = vpack.c.bf16 %v3678_v9, %v3678_v9  ;;  %v9032_v9 = vld [vmem:[%s11660_s26 + $0x284] ss:$8 sps:$4 sm:$0xff]  }
 0xe12   : > { %v11125_v13 = vpack.c.bf16 %v3679_v10, %v3679_v10  ;;  %v9030_v10 = vld [vmem:[%s11660_s26 + $0x280] ss:$8 sps:$4 sm:$0xff]  }
 0xe14   : > { %7622 = vmatprep.mubr.msk.bf16.mxu0 %vm10993_vm2, %v11125_v13 }
 0xe15   : > { %7627 = vmatmul.mubr.msk.bf16.vlgmr.msra.gmra.mrb[24].mxu0 %vm10993_vm2, %v11128_v16 }
 0xe16   : > { %4322 = vmatpush1.bf16.msra.mxu0 %v8958_v14  ;;  %4353 = vmatprep.mubr.bf16.mxu0 %v3689_v18  ;;  %v9033_v14 = vld [vmem:[%s11660_s26 + $0x290] ss:$8 sps:$4 sm:$0xff]   ;;  %v9036_v18 = vld [vmem:[%s11660_s26 + $0x2a0] ss:$8 sps:$4 sm:$0xff]  }
 0xe17   : > { %4323 = vmatprep.subr.bf16.mxu0 %v8963_v17  ;;  %v9038_v17 = vld [vmem:[%s11660_s26 + $0x2a4] ss:$8 sps:$4 sm:$0xff]  }
 0xe1a   : > { %4324 = vmatpush1.bf16.msra.mxu0 %v8961_v6  ;;  %v9041_v6 = vld [vmem:[%s11660_s26 + $0x2b4] ss:$8 sps:$4 sm:$0xff]  }
 0xe1b   : > { %4325 = vmatprep.subr.bf16.mxu0 %v8966_v19  ;;  %v9039_v19 = vld [vmem:[%s11660_s26 + $0x2b0] ss:$8 sps:$4 sm:$0xff]  }
 0xe1e   : > { %4326 = vmatpush1.bf16.msra.mxu0 %v8964_v20  ;;  %v9044_v20 = vld [vmem:[%s11660_s26 + $0x2c4] ss:$8 sps:$4 sm:$0xff]  }
 0xe1f   : > { %4327 = vmatprep.subr.bf16.mxu0 %v8969_v21  ;;  %v9042_v21 = vld [vmem:[%s11660_s26 + $0x2c0] ss:$8 sps:$4 sm:$0xff]  }
 0xe22   : > { %4328 = vmatpush1.bf16.msra.mxu0 %v8967_v22  ;;  %v9047_v22 = vld [vmem:[%s11660_s26 + $0x2d4] ss:$8 sps:$4 sm:$0xff]  }
 0xe23   : > { %4329 = vmatprep.subr.bf16.mxu0 %v8972_v27  ;;  %v9045_v27 = vld [vmem:[%s11660_s26 + $0x2d0] ss:$8 sps:$4 sm:$0xff]  }
 0xe26   : > { %4330 = vmatpush1.bf16.msra.mxu0 %v8970_v33  ;;  %v9050_v33 = vld [vmem:[%s11660_s26 + $0x2e4] ss:$8 sps:$4 sm:$0xff]  }
 0xe27   : > { %4331 = vmatprep.subr.bf16.mxu0 %v8975_v29  ;;  %v9048_v29 = vld [vmem:[%s11660_s26 + $0x2e0] ss:$8 sps:$4 sm:$0xff]  }
 0xe2a   : > { %4332 = vmatpush1.bf16.msra.mxu0 %v8973_v30  ;;  %v9053_v30 = vld [vmem:[%s11660_s26 + $0x2f4] ss:$8 sps:$4 sm:$0xff]  }
 0xe2b   : > { %4333 = vmatprep.subr.bf16.mxu0 %v8978_v31  ;;  %v9051_v31 = vld [vmem:[%s11660_s26 + $0x2f0] ss:$8 sps:$4 sm:$0xff]  }
 0xe2e   : > { %4334 = vmatpush1.bf16.msra.mxu0 %v8976_v32  ;;  %v9056_v32 = vld [vmem:[#allocation27 + $0x1c0] sm:$0xff]  }
 0xe2f   : > { %4335 = vmatprep.subr.bf16.mxu0 %v8981_v35  ;;  %v9057_v35 = vld [vmem:[#allocation27 + $0x180] sm:$0xff]  }
 0xe32   : > { %4336 = vmatpush1.bf16.msra.mxu0 %v8979_v36  ;;  %v9060_v36 = vld [vmem:[#allocation27 + $0x1c8] sm:$0xff]  }
 0xe33   : > { %4337 = vmatprep.subr.bf16.mxu0 %v8984_v37  ;;  %v9061_v37 = vld [vmem:[#allocation27 + $0x188] sm:$0xff]  }
 0xe36   : > { %4338 = vmatpush1.bf16.msra.mxu0 %v8982_v38  ;;  %v9064_v38 = vld [vmem:[#allocation27 + $0x1d0] sm:$0xff]  }
 0xe37   : > { %4339 = vmatprep.subr.bf16.mxu0 %v8987_v39  ;;  %v9065_v39 = vld [vmem:[#allocation27 + $0x190] sm:$0xff]  }
 0xe3a   : > { %4340 = vmatpush1.bf16.msra.mxu0 %v8985_v40  ;;  %v9068_v40 = vld [vmem:[#allocation27 + $0x1d8] sm:$0xff]  }
 0xe3b   : > { %4341 = vmatprep.subr.bf16.mxu0 %v8990_v41  ;;  %v9069_v41 = vld [vmem:[#allocation27 + $0x198] sm:$0xff]  }
 0xe3e   : > { %4342 = vmatpush1.bf16.msra.mxu0 %v8988_v42  ;;  %v9072_v42 = vld [vmem:[#allocation27 + $0x1e0] sm:$0xff]  }
 0xe3f   : > { %4343 = vmatprep.subr.bf16.mxu0 %v8993_v43  ;;  %v9073_v43 = vld [vmem:[#allocation27 + $0x1a0] sm:$0xff]  }
 0xe42   : > { %4344 = vmatpush1.bf16.msra.mxu0 %v8991_v45  ;;  %v3797_v45 = vrot.slane %v3788_v23, %v3297_v63 }
 0xe43   : > { %4345 = vmatprep.subr.bf16.mxu0 %v8996_v46 }
 0xe46   : > { %4346 = vmatpush1.bf16.msra.mxu0 %v8994_v47 }
 0xe47   : > { %4347 = vmatprep.subr.bf16.mxu0 %v8999_v48 }
 0xe4a   : > { %4348 = vmatpush1.bf16.msra.mxu0 %v8997_v49 }
 0xe4b   : > { %4349 = vmatprep.subr.bf16.mxu0 %v9002_v50 }
 0xe4e   : > { %4350 = vmatpush1.bf16.msra.mxu0 %v9000_v51 }
 0xe4f   : > { %4351 = vmatprep.subr.bf16.mxu0 %v9005_v52 }
 0xe52   : > { %4352 = vmatpush1.bf16.msra.mxu0 %v9003_v53 }
 0xe53   : > { %4362 = vmatprep.subr.bf16.mxu0 %v9008_v54 }
 0xe55   : > { %4354 = vmatmul.mubr.bf16.vlgmr.msra.gmra.mrb[24].mxu0 %v3688_v56 }
 0xe56   : > { %4363 = vmatpush1.bf16.msra.mxu0 %v9006_v55  ;;  %7632 = vmatprep.mubr.msk.bf16.mxu0 %vm11068_vm12, %v11125_v13  ;;  %v9035_v13 = vld [vmem:[%s11660_s26 + $0x294] ss:$8 sps:$4 sm:$0xff]  }
 0xe57   : > { %4364 = vmatprep.subr.bf16.mxu0 %v9011_v57 }
 0xe5a   : > { %4365 = vmatpush1.bf16.msra.mxu0 %v9009_v58 }
 0xe5b   : > { %4366 = vmatprep.subr.bf16.mxu0 %v9014_v59 }
 0xe5e   : > { %4367 = vmatpush1.bf16.msra.mxu0 %v9012_v25 }
 0xe5f   : > { %4368 = vmatprep.subr.bf16.mxu0 %v9017_v60 }
 0xe62   : > { %4369 = vmatpush1.bf16.msra.mxu0 %v9015_v61 }
 0xe63   : > { %4370 = vmatprep.subr.bf16.mxu0 %v9020_v62 }
 0xe66   : > { %4371 = vmatpush1.bf16.msra.mxu0 %v9018_v0 }
 0xe67   : > { %4372 = vmatprep.subr.bf16.mxu0 %v9023_v2 }
 0xe6a   : > { %4373 = vmatpush1.bf16.msra.mxu0 %v9021_v3 }
 0xe6b   : > { %4374 = vmatprep.subr.bf16.mxu0 %v9026_v4 }
 0xe6e   : > { %4375 = vmatpush1.bf16.msra.mxu0 %v9024_v5 }
 0xe6f   : > { %4376 = vmatprep.subr.bf16.mxu0 %v9029_v7 }
 0xe72   : > { %4377 = vmatpush1.bf16.msra.mxu0 %v9027_v8 }
 0xe73   : > { %4378 = vmatprep.subr.bf16.mxu0 %v9032_v9 }
 0xe76   : > { %4379 = vmatpush1.bf16.msra.mxu0 %v9030_v10 }
 0xe77   : > { %4380 = vmatprep.subr.bf16.mxu0 %v9035_v13 }
 0xe7a   : > { %4381 = vmatpush1.bf16.msra.mxu0 %v9033_v14 }
 0xe7b   : > { %4382 = vmatprep.subr.bf16.mxu0 %v9038_v17 }
 0xe7e   : > { %4383 = vmatpush1.bf16.msra.mxu0 %v9036_v18 }
 0xe7f   : > { %4384 = vmatprep.subr.bf16.mxu0 %v9041_v6 }
 0xe82   : > { %4385 = vmatpush1.bf16.msra.mxu0 %v9039_v19 }
 0xe83   : > { %4386 = vmatprep.subr.bf16.mxu0 %v9044_v20 }
 0xe86   : > { %4387 = vmatpush1.bf16.msra.mxu0 %v9042_v21 }
 0xe87   : > { %4388 = vmatprep.subr.bf16.mxu0 %v9047_v22 }
 0xe8a   : > { %4389 = vmatpush1.bf16.msra.mxu0 %v9045_v27 }
 0xe8b   : > { %4390 = vmatprep.subr.bf16.mxu0 %v9050_v33 }
 0xe8e   : > { %4391 = vmatpush1.bf16.msra.mxu0 %v9048_v29 }
 0xe8f   : > { %4392 = vmatprep.subr.bf16.mxu0 %v9053_v30 }
 0xe92   : > { %4393 = vmatpush1.bf16.msra.mxu0 %v9051_v31 }
 0xe93   : > { %8010 = vmatprep.subr.bf16.mxu0 %v9056_v32 }
 0xe95   : > { %7637 = vmatmul.mubr.msk.bf16.vlgmr.msra.gmra.mrb[24].mxu0 %vm11068_vm12, %v11128_v16  ;;  %v3793_v16 = vrot.slane %v3788_v23, %v10759_v26  ;;  %v9054_v23 = vld [vmem:[#allocation27 + $0x40] sm:$0xff]  }
 0xe96   : > { %8011 = vmatpush3.bf16.msra.mxu0 %v9057_v35 }
 0xe97   : > { %8012 = vmatprep.subr.bf16.mxu0 %v9060_v36 }
 0xe9a   : > { %8013 = vmatpush3.bf16.msra.mxu0 %v9061_v37 }
 0xe9b   : > { %8014 = vmatprep.subr.bf16.mxu0 %v9064_v38 }
 0xe9e   : > { %8015 = vmatpush3.bf16.msra.mxu0 %v9065_v39 }
 0xe9f   : > { %8016 = vmatprep.subr.bf16.mxu0 %v9068_v40 }
 0xea2   : > { %8017 = vmatpush3.bf16.msra.mxu0 %v9069_v41 }
 0xea3   : > { %8018 = vmatprep.subr.bf16.mxu0 %v9072_v42 }
 0xea6   : > { %8019 = vmatpush3.bf16.msra.mxu0 %v9073_v43 }
 0xf68   : > { %v4396_v46 = vpop.f32.mrb[24].mxu0 }
 0xf69   : > { %v8384_v47 = vadd.f32 %v4396_v46, %v3793_v16  ;;  %v4398_v48 = vpop.f32.mrb[25].mxu0  ;;  %v9055_v46 = vld [vmem:[#allocation27] sm:$0xff]  }
 0xf6a   : > { %v8385_v49 = vadd.f32 %v4398_v48, %v3797_v45  ;;  %v4400_v50 = vpop.f32.mrb[26].mxu0  ;;  %v4447_v45 = vld [vmem:[%s11663_s14] sm:$0x3]  ;;  %v9059_v48 = vld [vmem:[#allocation27 + $0x8] sm:$0xff]   ;;  %s11667_s14 = smov %s11666_s6 }
 0xf6b   : > { %v4403_v51 = vsel %vm3206_vm9, %v8384_v47, 0.0  ;;  %v4401_v52 = vpop.f32.mrb[27].mxu0  ;;  %v9063_v50 = vld [vmem:[#allocation27 + $0x10] sm:$0xff]  }
 0xf6c   : > { %v4404_v53 = vrot.slane %v4403_v51, 4  ;;  %v4410_v54 = vsel %vm3206_vm9, %v8385_v49, 0.0  ;;  %v9067_v52 = vld [vmem:[#allocation27 + $0x18] sm:$0xff]  }
 0xf6d   : > { %v4411_v55 = vrot.slane %v4410_v54, 4 }
 0xf6e   : > { %v4405_v56 = vadd.f32 %v4404_v53, %v4403_v51  ;;  %v9066_v51 = vld [vmem:[#allocation27 + $0x58] sm:$0xff]   ;;  %v9070_v53 = vld [vmem:[#allocation27 + $0x60] sm:$0xff]  }
 0xf6f   : > { %v4412_v57 = vadd.f32 %v4411_v55, %v4410_v54  ;;  %v9071_v54 = vld [vmem:[#allocation27 + $0x20] sm:$0xff]   ;;  %v9074_v55 = vld [vmem:[#allocation27 + $0x68] sm:$0xff]  }
 0xf70   : > { %v4406_v58 = vrot.slane %v4405_v56, 2 }
 0xf71   : > { %v4413_v59 = vrot.slane %v4412_v57, 2 }
 0xf72   : > { %v4407_v25 = vadd.f32 %v4406_v58, %v4405_v56  ;;  %v9075_v56 = vld [vmem:[#allocation27 + $0x28] sm:$0xff]  }
 0xf73   : > { %v4414_v60 = vadd.f32 %v4413_v59, %v4412_v57  ;;  %v9076_v57 = vld [vmem:[#allocation27 + $0x1e8] sm:$0xff]   ;;  %v9078_v59 = vld [vmem:[#allocation27 + $0x70] sm:$0xff]  }
 0xf74   : > { %v4408_v61 = vrot.slane %v4407_v25, 1  ;;  %v9077_v58 = vld [vmem:[#allocation27 + $0x1a8] sm:$0xff]   ;;  %8020 = vmatprep.subr.bf16.mxu0 %v9076_v57 }
 0xf75   : > { %v4415_v63 = vrot.slane %v4414_v60, 1  ;;  %8021 = vmatpush3.bf16.msra.mxu0 %v9077_v58  ;;  %v9104_v57 = vld [vmem:[#allocation27 + $0x148] sm:$0xff]   ;;  %v4539_v58 = vpack.c.bf16 %v11040_v44, %v11040_v44 }
 0xf76   : > { %v4409_v62 = vadd.f32 %v4408_v61, %v4407_v25  ;;  %v9079_v25 = vld [vmem:[#allocation27 + $0x30] sm:$0xff]  }
 0xf77   : > { %v4416_v0 = vadd.f32 %v4415_v63, %v4414_v60  ;;  %v9080_v60 = vld [vmem:[#allocation27 + $0x1f0] sm:$0xff]   ;;  %v9082_v63 = vld [vmem:[#allocation27 + $0x78] sm:$0xff]  }
 0xf78   : > { %v4417_v2 = vmul.f32 0.5, %v4409_v62  ;;  %v9081_v61 = vld [vmem:[#allocation27 + $0x1b0] sm:$0xff]   ;;  %8022 = vmatprep.subr.bf16.mxu0 %v9080_v60  ;;  %v9083_v62 = vld [vmem:[#allocation27 + $0x38] sm:$0xff]  }
 0xf79   : > { %v4418_v3 = vmul.f32 0.5, %v4416_v0  ;;  %8023 = vmatpush3.bf16.msra.mxu0 %v9081_v61  ;;  %v9084_v0 = vld [vmem:[#allocation27 + $0x1f8] sm:$0xff]   ;;  %v9107_v60 = vld [vmem:[#allocation27 + $0x110] sm:$0xff]  }
 0xf7a   : > { %v4419_v4 = vsub.f32 %v8384_v47, %v4417_v2  ;;  %v9058_v47 = vld [vmem:[#allocation27 + $0x48] sm:$0xff]   ;;  %v9085_v2 = vld [vmem:[#allocation27 + $0x1b8] sm:$0xff]   ;;  %8024 = vmatprep.subr.bf16.mxu0 %v9084_v0  ;;  %v9111_v0 = vld [vmem:[#allocation27 + $0x120] sm:$0xff]  }
 0xf7b   : > { %v4420_v5 = vsub.f32 %v8385_v49, %v4418_v3  ;;  %v9062_v49 = vld [vmem:[#allocation27 + $0x50] sm:$0xff]   ;;  %v9086_v3 = vld [vmem:[#allocation27 + $0xc0] sm:$0xff]   ;;  %v9108_v61 = vld [vmem:[#allocation27 + $0x158] sm:$0xff]  }
 0xf7c   : > { %v4421_v7 = vmul.f32 %v4419_v4, %v4419_v4 }
 0xf7d   : > { %v4422_v8 = vmul.f32 %v4420_v5, %v4420_v5  ;;  %8025 = vmatpush3.bf16.msra.mxu0 %v9085_v2  ;;  %v9113_v2 = vld [vmem:[#allocation27 + $0x128] sm:$0xff]  }
 0xf7e   : > { %v4423_v9 = vsel %vm3206_vm9, %v4421_v7, 0.0 }
 0xf7f   : > { %v4424_v10 = vrot.slane %v4423_v9, 4  ;;  %v4430_v13 = vsel %vm3206_vm9, %v4422_v8, 0.0 }
 0xf80   : > { %v4431_v14 = vrot.slane %v4430_v13, 4 }
 0xf81   : > { %v4425_v17 = vadd.f32 %v4424_v10, %v4423_v9 }
 0xf82   : > { %v4432_v18 = vadd.f32 %v4431_v14, %v4430_v13 }
 0xf83   : > { %v4426_v6 = vrot.slane %v4425_v17, 2 }
 0xf84   : > { %v4433_v19 = vrot.slane %v4432_v18, 2 }
 0xf85   : > { %v4427_v20 = vadd.f32 %v4426_v6, %v4425_v17 }
 0xf86   : > { %v4434_v21 = vadd.f32 %v4433_v19, %v4432_v18 }
 0xf87   : > { %v4428_v22 = vrot.slane %v4427_v20, 1 }
 0xf88   : > { %v4435_v27 = vrot.slane %v4434_v21, 1 }
 0xf89   : > { %v4429_v33 = vadd.f32 %v4428_v22, %v4427_v20 }
 0xf8a   : > { %v4436_v29 = vadd.f32 %v4435_v27, %v4434_v21 }
 0xf8b   : > { %v4437_v30 = vmul.f32 0.5, %v4429_v33 }
 0xf8c   : > { %v4438_v31 = vmul.f32 0.5, %v4436_v29 }
 0xf8d   : > { %v4439_v32 = vadd.f32 1e-05, %v4437_v30  ;;  %v9087_v30 = vld [vmem:[#allocation27 + $0x80] sm:$0xff]  }
 0xf8e   : > { %v4440_v35 = vadd.f32 1e-05, %v4438_v31 }
 0xf8f   : > { %9243 = vrsqrt.f32 %v4439_v32 }
 0xf90   : > { %9245 = vrsqrt.f32 %v4440_v35  ;;  %v9088_v35 = vld [vmem:[#allocation27 + $0xc8] sm:$0xff]  }
 0xf99   : > { %v9244_v36 = vpop.eup %9243 }
 0xf9a   : > { %v9246_v37 = vpop.eup %9245  ;;  %v4443_v38 = vmul.f32 %v9244_v36, %v4419_v4 }
 0xf9b   : > { %v4444_v39 = vmul.f32 %v9246_v37, %v4420_v5  ;;  %v9089_v37 = vld [vmem:[#allocation27 + $0x88] sm:$0xff]  }
 0xf9c   : > { %v4445_v40 = vmax.f32 %v4443_v38, 0.0  ;;  %v9090_v38 = vld [vmem:[#allocation27 + $0xd0] sm:$0xff]  }
 0xf9d   : > { %v4446_v41 = vmax.f32 %v4444_v39, 0.0  ;;  %v9091_v39 = vld [vmem:[#allocation27 + $0x90] sm:$0xff]  }
 0xf9e   : > { %v4448_v42 = vpack.c.bf16 %v4445_v40, %v4445_v40  ;;  %v9092_v40 = vld [vmem:[#allocation27 + $0xd8] sm:$0xff]  }
 0xf9f   : > { %v4449_v43 = vpack.c.bf16 %v4446_v41, %v4446_v41  ;;  %v9093_v41 = vld [vmem:[#allocation27 + $0x98] sm:$0xff]  }
 0xfa0   : > { %v4455_v16 = vsel %vm4453_vm15, %v4448_v42, 0  ;;  %v9094_v42 = vld [vmem:[#allocation27 + $0xe0] sm:$0xff]  }
 0xfa1   : > { %7638 = vmatprep.subr.msk.bf16.mxu1 %vm4453_vm15, %v4449_v43  ;;  %v4505_v43 = vrot.slane %v11040_v44, 4 }
 0xfa2   : > { %4461 = vmatpush1.bf16.msra.mxu1 %v4455_v16  ;;  %v9096_v16 = vld [vmem:[#allocation27 + $0xe8] sm:$0xff]  }
 0xfa3   : > { %7944 = vmatprep.subr.bf16.mxu1 %v9054_v23  ;;  %v9095_v23 = vld [vmem:[#allocation27 + $0xa0] sm:$0xff]  }
 0xfa5   : > { %7639 = vmatmul.mubr.msk.bf16.vlgmr.msra.gmra.mrb[20].mxu1 %vm1928_vm6, %v4447_v45  ;;  %v4506_v45 = vsel %vm2689_vm8, %v4505_v43, %v11040_v44  ;;  %v9131_v43 = vld [vmem:[#allocation30 + $0x88] sm:$0xff]  }
 0xfa6   : > { %7945 = vmatpush3.bf16.msra.mxu1 %v9055_v46  ;;  %v9097_v46 = vld [vmem:[#allocation27 + $0xa8] sm:$0xff]  }
 0xfa7   : > { %7946 = vmatprep.subr.bf16.mxu1 %v9058_v47  ;;  %v9098_v47 = vld [vmem:[#allocation27 + $0xf0] sm:$0xff]  }
 0xfaa   : > { %7947 = vmatpush3.bf16.msra.mxu1 %v9059_v48  ;;  %v4509_v48 = vrot.slane %v4506_v45, 4  ;;  %v9134_v45 = vld [vmem:[#allocation30 + $0x90] sm:$0xff]  }
 0xfab   : > { %7948 = vmatprep.subr.bf16.mxu1 %v9062_v49  ;;  %v9099_v49 = vld [vmem:[#allocation27 + $0xb0] sm:$0xff]  }
 0xfae   : > { %7949 = vmatpush3.bf16.msra.mxu1 %v9063_v50  ;;  %v9100_v50 = vld [vmem:[#allocation27 + $0xf8] sm:$0xff]  }
 0xfaf   : > { %7950 = vmatprep.subr.bf16.mxu1 %v9066_v51  ;;  %v11237_v51 = vsel %vm2689_vm8, %v4509_v48, %v11040_v44  ;;  %v9112_v44 = vld [vmem:[#allocation27 + $0x168] sm:$0xff]   ;;  %v9137_v48 = vld [vmem:[#allocation30 + $0x98] sm:$0xff]  }
 0xfb2   : > { %7951 = vmatpush3.bf16.msra.mxu1 %v9067_v52  ;;  %v9101_v52 = vld [vmem:[#allocation27 + $0xb8] sm:$0xff]  }
 0xfb3   : > { %7952 = vmatprep.subr.bf16.mxu1 %v9070_v53  ;;  %v4518_v53 = vrot.slane %v11237_v51, 3 }
 0xfb6   : > { %7953 = vmatpush3.bf16.msra.mxu1 %v9071_v54  ;;  %v9102_v54 = vld [vmem:[#allocation27 + $0x140] sm:$0xff]  }
 0xfb7   : > { %7954 = vmatprep.subr.bf16.mxu1 %v9074_v55  ;;  %v9103_v55 = vld [vmem:[#allocation27 + $0x100] sm:$0xff]  }
 0xfba   : > { %7955 = vmatpush3.bf16.msra.mxu1 %v9075_v56  ;;  %v7726_v56 = vpack.c.bf16 %v4518_v53, %v4518_v53  ;;  %v9142_v53 = vld [vmem:[#allocation30 + $0x28] sm:$0xff]  }
 0xfbb   : > { %7956 = vmatprep.subr.bf16.mxu1 %v9078_v59  ;;  %v9105_v59 = vld [vmem:[#allocation27 + $0x108] sm:$0xff]  }
 0xfbe   : > { %7957 = vmatpush3.bf16.msra.mxu1 %v9079_v25  ;;  %v9106_v25 = vld [vmem:[#allocation27 + $0x150] sm:$0xff]  }
 0xfbf   : > { %7958 = vmatprep.subr.bf16.mxu1 %v9082_v63  ;;  %v9109_v63 = vld [vmem:[#allocation27 + $0x118] sm:$0xff]  }
 0xfc2   : > { %7959 = vmatpush3.bf16.msra.mxu1 %v9083_v62  ;;  %v9110_v62 = vld [vmem:[#allocation27 + $0x160] sm:$0xff]  }
 0xfc3   : > { %7966 = vmatprep.subr.bf16.mxu1 %v9086_v3  ;;  %v9114_v3 = vld [vmem:[#allocation27 + $0x170] sm:$0xff]  }
0x1078   : > { %v4494_v4 = vpop.f32.mrb[20].mxu1 }
0x1079   : > { %v4501_v5 = vrot.slane %v4494_v4, 4  ;;  %v11215_v7 = vpop.f32.mrb[21].mxu1  ;;  %v4537_v36 = vpack.c.bf16 %v4494_v4, %v4494_v4 }
0x107a   : > { %v4503_v8 = vrot.slane %v11215_v7, 4  ;;  %v4498_v9 = vpop.f32.mrb[22].mxu1 }
0x107b   : > { %v4502_v10 = vsel %vm2689_vm8, %v4501_v5, %v4494_v4  ;;  %v4499_v13 = vpop.f32.mrb[23].mxu1  ;;  %v9116_v5 = vld [vmem:[#allocation27 + $0x178] sm:$0xff]   ;;  %v9118_v9 = vld [vmem:[#allocation27 + $0x200] sm:$0xff]  }
0x107c   : > { %v4507_v14 = vrot.slane %v4502_v10, 4  ;;  %v4504_v17 = vsel %vm2689_vm8, %v4503_v8, %v11215_v7  ;;  %v9117_v8 = vld [vmem:[#allocation27 + $0x138] sm:$0xff]   ;;  %v4538_v10 = vpack.c.bf16 %v11215_v7, %v11215_v7  ;;  %v9119_v13 = vld [vmem:[#allocation27 + $0x208] sm:$0xff]  }
0x107d   : > { %v4508_v18 = vrot.slane %v4504_v17, 4  ;;  %v9121_v17 = vld [vmem:[#allocation27 + $0x218] sm:$0xff]  }
0x107e   : > { %v4510_v6 = vsel %vm2689_vm8, %v4507_v14, %v4494_v4  ;;  %v9115_v4 = vld [vmem:[#allocation27 + $0x130] sm:$0xff]  }
0x107f   : > { %v4516_v19 = vrot.slane %v4510_v6, 3  ;;  %v4525_v20 = vrot.slane %v4510_v6, 1  ;;  %v4511_v21 = vsel %vm2689_vm8, %v4508_v18, %v11215_v7  ;;  %v9120_v14 = vld [vmem:[#allocation27 + $0x210] sm:$0xff]   ;;  %v9122_v7 = vld [vmem:[#allocation27 + $0x220] sm:$0xff]   ;;  %v9123_v18 = vld [vmem:[#allocation27 + $0x228] sm:$0xff]  }
0x1080   : > { %v4517_v22 = vrot.slane %v4511_v21, 3  ;;  %v4526_v27 = vrot.slane %v4511_v21, 1  ;;  %v9124_v6 = vld [vmem:[#allocation27 + $0x230] sm:$0xff]  }
0x1081   : > { %v7721_v31 = vpack.c.bf16 %v4516_v19, %v4516_v19  ;;  %v7736_v32 = vpack.c.bf16 %v4525_v20, %v4525_v20  ;;  %v9125_v19 = vld [vmem:[#allocation27 + $0x238] sm:$0xff]   ;;  %v4527_v20 = vrot.slane %v11237_v51, 1  ;;  %v9140_v51 = vld [vmem:[#allocation30 + $0xa0] sm:$0xff]  }
0x1082   : > { %v7716_v33 = vpack.c.bf16 %v4517_v22, %v4517_v22  ;;  %v7731_v29 = vpack.c.bf16 %v4526_v27, %v4526_v27 }
0x1083   : > { %v7741_v21 = vpack.c.bf16 %v4527_v20, %v4527_v20 }
0x1084   : > { %7717 = vmatprep.mubr.msk.bf16.mxu1 %vm10993_vm2, %v7716_v33  ;;  %7732 = vmatprep.mubr.msk.bf16.mxu0 %vm10997_vm3, %v7731_v29  ;;  %v9126_v33 = vld [vmem:[#allocation30 + $0x40] sm:$0xff]  }
0x1085   : > { %7722 = vmatmul.mubr.msk.bf16.vlgmr.msra.gmra.mrb[24].mxu1 %vm10993_vm2, %v7721_v31  ;;  %7737 = vmatmul.mubr.msk.bf16.vlgmr.msra.gmra.mrb[28].mxu0 %vm10997_vm3, %v7736_v32  ;;  %v9127_v31 = vld [vmem:[#allocation30] sm:$0xff]  }
0x1086   : > { %7967 = vmatpush3.bf16.msra.mxu1 %v9087_v30  ;;  %5198 = vmatprep.mubr.bf16.mxu1 %v4537_v36  ;;  %v9128_v32 = vld [vmem:[#allocation30 + $0x80] sm:$0xff]  }
0x1087   : > { %7968 = vmatprep.subr.bf16.mxu1 %v9088_v35  ;;  %8041 = vmatprep.subr.bf16.mxu0 %v9126_v33 }
0x1088   : > { %8042 = vmatpush3.bf16.msra.mxu0 %v9127_v31 }
0x108a   : > { %7969 = vmatpush3.bf16.msra.mxu1 %v9089_v37 }
0x108b   : > { %7970 = vmatprep.subr.bf16.mxu1 %v9090_v38 }
0x108e   : > { %7971 = vmatpush3.bf16.msra.mxu1 %v9091_v39 }
0x108f   : > { %7972 = vmatprep.subr.bf16.mxu1 %v9092_v40 }
0x1092   : > { %7973 = vmatpush3.bf16.msra.mxu1 %v9093_v41  ;;  %v9129_v41 = vld [vmem:[#allocation30 + $0x48] sm:$0xff]  }
0x1093   : > { %7974 = vmatprep.subr.bf16.mxu1 %v9094_v42  ;;  %v9130_v42 = vld [vmem:[#allocation30 + $0x8] sm:$0xff]   ;;  %8043 = vmatprep.subr.bf16.mxu0 %v9129_v41 }
0x1094   : > { %8044 = vmatpush3.bf16.msra.mxu0 %v9130_v42 }
0x1096   : > { %7975 = vmatpush3.bf16.msra.mxu1 %v9095_v23  ;;  %v9132_v23 = vld [vmem:[#allocation30 + $0x50] sm:$0xff]  }
0x1097   : > { %7976 = vmatprep.subr.bf16.mxu1 %v9096_v16  ;;  %v9133_v16 = vld [vmem:[#allocation30 + $0x10] sm:$0xff]   ;;  %8045 = vmatprep.subr.bf16.mxu0 %v9132_v23 }
0x1098   : > { %8046 = vmatpush3.bf16.msra.mxu0 %v9133_v16 }
0x109a   : > { %7977 = vmatpush3.bf16.msra.mxu1 %v9097_v46  ;;  %v9135_v46 = vld [vmem:[#allocation30 + $0x58] sm:$0xff]  }
0x109b   : > { %7978 = vmatprep.subr.bf16.mxu1 %v9098_v47  ;;  %v9136_v47 = vld [vmem:[#allocation30 + $0x18] sm:$0xff]   ;;  %8047 = vmatprep.subr.bf16.mxu0 %v9135_v46 }
0x109c   : > { %8048 = vmatpush3.bf16.msra.mxu0 %v9136_v47 }
0x109e   : > { %7979 = vmatpush3.bf16.msra.mxu1 %v9099_v49  ;;  %v9138_v49 = vld [vmem:[#allocation30 + $0x60] sm:$0xff]  }
0x109f   : > { %7980 = vmatprep.subr.bf16.mxu1 %v9100_v50  ;;  %v9139_v50 = vld [vmem:[#allocation30 + $0x20] sm:$0xff]   ;;  %8049 = vmatprep.subr.bf16.mxu0 %v9138_v49 }
0x10a0   : > { %8050 = vmatpush3.bf16.msra.mxu0 %v9139_v50 }
0x10a2   : > { %7981 = vmatpush3.bf16.msra.mxu1 %v9101_v52  ;;  %v9141_v52 = vld [vmem:[#allocation30 + $0x68] sm:$0xff]  }
0x10a3   : > { %7988 = vmatprep.subr.bf16.mxu1 %v9102_v54  ;;  %v9143_v54 = vld [vmem:[#allocation30 + $0xa8] sm:$0xff]   ;;  %8051 = vmatprep.subr.bf16.mxu0 %v9141_v52 }
0x10a4   : > { %8052 = vmatpush3.bf16.msra.mxu0 %v9142_v53 }
0x10a5   : > { %7727 = vmatmul.mubr.msk.bf16.vlgmr.msra.gmra.mrb[28].mxu1 %vm10993_vm2, %v7726_v56  ;;  %v9145_v56 = vld [vmem:[#allocation30 + $0x30] sm:$0xff]  }
0x10a6   : > { %7989 = vmatpush3.bf16.msra.mxu1 %v9103_v55  ;;  %5238 = vmatprep.mubr.bf16.mxu1 %v4539_v58  ;;  %v9144_v55 = vld [vmem:[#allocation30 + $0x70] sm:$0xff]   ;;  %v9147_v58 = vld [vmem:[#allocation30 + $0x78] sm:$0xff]  }
0x10a7   : > { %7990 = vmatprep.subr.bf16.mxu1 %v9104_v57  ;;  %v9146_v57 = vld [vmem:[#allocation30 + $0xb0] sm:$0xff]   ;;  %8053 = vmatprep.subr.bf16.mxu0 %v9144_v55 }
0x10a8   : > { %8054 = vmatpush3.bf16.msra.mxu0 %v9145_v56 }
0x10a9   : > { %8055 = vmatprep.subr.bf16.mxu0 %v9147_v58  ;;  %v7743_v58 = vld [vmem:[#allocation32] ss:$0 sm:$0xff] }
0x10aa   : > { %7991 = vmatpush3.bf16.msra.mxu1 %v9105_v59  ;;  %v9148_v59 = vld [vmem:[#allocation30 + $0x38] sm:$0xff]  }
0x10ab   : > { %7992 = vmatprep.subr.bf16.mxu1 %v9106_v25  ;;  %v9149_v25 = vld [vmem:[#allocation30 + $0xb8] sm:$0xff]  }
0x10ac   : > { %8056 = vmatpush3.bf16.msra.mxu0 %v9148_v59 }
0x10ad   : > { %8302 = vmatprep.subr.bf16.mxu0 %v10120_v12 }
0x10ae   : > { %7993 = vmatpush3.bf16.msra.mxu1 %v9107_v60  ;;  %v7640_v60 = vld [vmem:[#allocation29] ss:$0 sm:$0xff] }
0x10af   : > { %7994 = vmatprep.subr.bf16.mxu1 %v9108_v61 }
0x10b2   : > { %7995 = vmatpush3.bf16.msra.mxu1 %v9109_v63 }
0x10b3   : > { %7996 = vmatprep.subr.bf16.mxu1 %v9110_v62 }
0x10b6   : > { %7997 = vmatpush3.bf16.msra.mxu1 %v9111_v0 }
0x10b7   : > { %7998 = vmatprep.subr.bf16.mxu1 %v9112_v44 }
0x10ba   : > { %7999 = vmatpush3.bf16.msra.mxu1 %v9113_v2 }
0x10bb   : > { %8000 = vmatprep.subr.bf16.mxu1 %v9114_v3 }
0x10be   : > { %8001 = vmatpush3.bf16.msra.mxu1 %v9115_v4 }
0x10bf   : > { %8002 = vmatprep.subr.bf16.mxu1 %v9116_v5 }
0x10c2   : > { %8003 = vmatpush3.bf16.msra.mxu1 %v9117_v8 }
0x10c3   : > { %8262 = vmatprep.subr.bf16.mxu1 %v10120_v12 }
0x10c5   : > { %5239 = vmatmul.mubr.bf16.vlgmr.msra.gmra.mrb[32].mxu1 %v4538_v10 }
0x10c6   : > { %8263 = vmatpush3.bf16.msra.mxu1 %v9118_v9  ;;  %8278 = vmatprep.mubr.msk.bf16.mxu1 %vm10119_vm0, %v10120_v12 }
0x10c7   : > { %8264 = vmatprep.subr.bf16.mxu1 %v10120_v12 }
0x10ca   : > { %8265 = vmatpush3.bf16.msra.mxu1 %v9119_v13 }
0x10cb   : > { %8266 = vmatprep.subr.bf16.mxu1 %v10120_v12 }
0x10ce   : > { %8267 = vmatpush3.bf16.msra.mxu1 %v9120_v14 }
0x10cf   : > { %8268 = vmatprep.subr.bf16.mxu1 %v10120_v12 }
0x10d2   : > { %8269 = vmatpush3.bf16.msra.mxu1 %v9121_v17 }
0x10d3   : > { %8270 = vmatprep.subr.bf16.mxu1 %v10120_v12 }
0x10d6   : > { %8271 = vmatpush3.bf16.msra.mxu1 %v9122_v7 }
0x10d7   : > { %8272 = vmatprep.subr.bf16.mxu1 %v10120_v12 }
0x10da   : > { %8273 = vmatpush3.bf16.msra.mxu1 %v9123_v18 }
0x10db   : > { %8274 = vmatprep.subr.bf16.mxu1 %v10120_v12 }
0x10de   : > { %8275 = vmatpush3.bf16.msra.mxu1 %v9124_v6 }
0x10df   : > { %8276 = vmatprep.subr.bf16.mxu1 %v10120_v12 }
0x10e2   : > { %8277 = vmatpush3.bf16.msra.mxu1 %v9125_v19 }
0x10e3   : > { %8282 = vmatprep.subr.bf16.mxu1 %v10120_v12 }
0x10e5   : > { %8279 = vmatmul.mubr.msk.bf16.vlgmr.msra.gmra.mrb[36].mxu1 %vm10997_vm3, %v7741_v21 }
0x10e6   : > { %8298 = vmatprep.mubr.msk.bf16.mxu1 %vm10119_vm0, %v10120_v12  ;;  %8283 = vmatpush3.bf16.msra.mxu1 %v9128_v32 }
0x10e7   : > { %8284 = vmatprep.subr.bf16.mxu1 %v10120_v12 }
0x10ea   : > { %8285 = vmatpush3.bf16.msra.mxu1 %v9131_v43 }
0x10eb   : > { %8286 = vmatprep.subr.bf16.mxu1 %v10120_v12 }
0x10ee   : > { %8287 = vmatpush3.bf16.msra.mxu1 %v9134_v45 }
0x10ef   : > { %8288 = vmatprep.subr.bf16.mxu1 %v10120_v12 }
0x10f2   : > { %8289 = vmatpush3.bf16.msra.mxu1 %v9137_v48 }
0x10f3   : > { %8290 = vmatprep.subr.bf16.mxu1 %v10120_v12 }
0x10f6   : > { %8291 = vmatpush3.bf16.msra.mxu1 %v9140_v51 }
0x10f7   : > { %8292 = vmatprep.subr.bf16.mxu1 %v10120_v12 }
0x10fa   : > { %8293 = vmatpush3.bf16.msra.mxu1 %v9143_v54 }
0x10fb   : > { %8294 = vmatprep.subr.bf16.mxu1 %v10120_v12 }
0x10fe   : > { %8295 = vmatpush3.bf16.msra.mxu1 %v9146_v57 }
0x10ff   : > { %8296 = vmatprep.subr.bf16.mxu1 %v10120_v12 }
0x1102   : > { %8297 = vmatpush3.bf16.msra.mxu1 %v9149_v25 }
0x1158   : > { %v7960_v22 = vpop.f32.mrb[24].mxu1  ;;  %v8026_v27 = vpop.f32.mrb[28].mxu0 }
0x1159   : > { %v7961_v29 = vpop.f32.mrb[25].mxu1  ;;  %v8027_v30 = vpop.f32.mrb[29].mxu0 }
0x115a   : > { %v7962_v35 = vadd.f32 %v7961_v29, %v7960_v22  ;;  %v11262_v36 = vadd.f32 %v8027_v30, %v8026_v27  ;;  %v7963_v37 = vpop.f32.mrb[26].mxu1  ;;  %v8029_v38 = vpop.f32.mrb[30].mxu0 }
0x115b   : > { %v7964_v39 = vpop.f32.mrb[27].mxu1  ;;  %v8030_v40 = vpop.f32.mrb[31].mxu0 }
0x115c   : > { %v5161_v62 = vadd.f32 %v7962_v35, %v7640_v60 }
0x1178   : > { %v7982_v61 = vpop.f32.mrb[28].mxu1 }
0x1179   : > { %v7983_v63 = vpop.f32.mrb[29].mxu1 }
0x117a   : > { %v7984_v0 = vadd.f32 %v7983_v63, %v7982_v61  ;;  %v7985_v44 = vpop.f32.mrb[30].mxu1 }
0x117b   : > { %v7986_v2 = vpop.f32.mrb[31].mxu1 }
0x117c   : > { %v5201_v3 = vadd.f32 %v7984_v0, %v5161_v62 }
0x1198   : > { %v8004_v4 = vpop.f32.mrb[32].mxu1 }
0x1199   : > { %v8005_v5 = vpop.f32.mrb[33].mxu1 }
0x119a   : > { %v8006_v8 = vadd.f32 %v8005_v5, %v8004_v4  ;;  %v8007_v9 = vpop.f32.mrb[34].mxu1 }
0x119b   : > { %v8008_v10 = vpop.f32.mrb[35].mxu1 }
0x119c   : > { %v5241_v13 = vadd.f32 %v8006_v8, %v5201_v3 }
0x119e   : > { %v5281_v14 = vadd.f32 %v11262_v36, %v5241_v13 }
0x11b8   : > { %v5320_v17 = vpop.f32.mrb[36].mxu1 }
0x11b9   : > { %v5321_v7 = vadd.f32 %v5320_v17, %v5281_v14  ;;  %v8280_v18 = vpop.f32.mrb[37].mxu1 }
0x11ba   : > { %v5323_v6 = vpop.f32.mrb[38].mxu1 }
0x11bb   : > { %v5326_v19 = vsel %vm2856_vm14, %v5321_v7, 0.0  ;;  %v8281_v20 = vpop.f32.mrb[39].mxu1 }
0x11bc   : > { %v5327_v21 = vrot.slane %v5326_v19, 4 }
0x11be   : > { %v5328_v22 = vadd.f32 %v5327_v21, %v5326_v19 }
0x11c0   : > { %v5329_v27 = vrot.slane %v5328_v22, 2 }
0x11c2   : > { %v5330_v33 = vadd.f32 %v5329_v27, %v5328_v22 }
0x11c4   : > { %v5331_v29 = vrot.slane %v5330_v33, 1 }
0x11c6   : > { %v5332_v30 = vadd.f32 %v5331_v29, %v5330_v33 }
0x11c8   : > { %v5333_v31 = vmul.f32 0.25, %v5332_v30 }
0x11ca   : > { %v5334_v32 = vsub.f32 %v5321_v7, %v5333_v31 }
0x11cc   : > { %v5335_v35 = vmul.f32 %v5334_v32, %v5334_v32 }
0x11ce   : > { %v5336_v37 = vsel %vm2856_vm14, %v5335_v35, 0.0 }
0x11cf   : > { %v5337_v38 = vrot.slane %v5336_v37, 4 }
0x11d1   : > { %v5338_v36 = vadd.f32 %v5337_v38, %v5336_v37  ;;  %v5663_v37 = vld [vmem:[%s11664_s8] sm:$0xf]  ;;  %s11668_s8 = sld [smem:[#allocation60_spill]] }
0x11d2   : > { %v9150_v38 = vld [vmem:[%s11665_s11 + $0x40] sm:$0xff]  }
0x11d3   : > { %v5339_v39 = vrot.slane %v5338_v36, 2  ;;  %8074 = vmatprep.subr.bf16.mxu1 %v9150_v38  ;;  %v9190_v38 = vld [vmem:[%s11667_s14 + $0x20] sm:$0xff]  }
0x11d5   : > { %v5340_v40 = vadd.f32 %v5339_v39, %v5338_v36  ;;  %v9151_v36 = vld [vmem:[%s11665_s11 + $0xc0] sm:$0xff]  }
0x11d6   : > { %v9152_v39 = vld [vmem:[%s11665_s11] sm:$0xff]  }
0x11d7   : > { %v5341_v41 = vrot.slane %v5340_v40, 1 }
0x11d9   : > { %v5342_v42 = vadd.f32 %v5341_v41, %v5340_v40  ;;  %v9153_v40 = vld [vmem:[%s11665_s11 + $0x80] sm:$0xff]   ;;  %v9154_v41 = vld [vmem:[%s11665_s11 + $0x48] sm:$0xff]  }
0x11db   : > { %v5343_v43 = vmul.f32 0.25, %v5342_v42  ;;  %v9155_v42 = vld [vmem:[%s11665_s11 + $0xc8] sm:$0xff]  }
0x11dd   : > { %v5344_v23 = vadd.f32 1e-05, %v5343_v43  ;;  %v9156_v43 = vld [vmem:[%s11665_s11 + $0x8] sm:$0xff]  }
0x11df   : > { %9247 = vrsqrt.f32 %v5344_v23  ;;  %v9157_v23 = vld [vmem:[%s11665_s11 + $0x88] sm:$0xff]  }
0x11e9   : > { %v9248_v16 = vpop.eup %9247 }
0x11ea   : > { %v5346_v45 = vmul.f32 %v9248_v16, %v5334_v32  ;;  %v9158_v16 = vld [vmem:[%s11665_s11 + $0x50] sm:$0xff]  }
0x11ec   : > { %v5347_v46 = vmax.f32 %v5346_v45, 0.0  ;;  %v9159_v45 = vld [vmem:[%s11665_s11 + $0xd0] sm:$0xff]  }
0x11ee   : > { %v5348_v47 = vrot.slane %v5347_v46, 4  ;;  %v5360_v48 = vpack.c.bf16 %v5347_v46, %v5347_v46 }
0x11f0   : > { %v5349_v49 = vsel %vm2689_vm8, %v5348_v47, %v5347_v46  ;;  %5593 = vmatprep.mubr.bf16.mxu0 %v5360_v48  ;;  %v9161_v47 = vld [vmem:[%s11665_s11 + $0x90] sm:$0xff]   ;;  %v9162_v48 = vld [vmem:[%s11665_s11 + $0x58] sm:$0xff]  }
0x11f1   : > { %v5350_v50 = vrot.slane %v5349_v49, 4  ;;  %v9163_v49 = vld [vmem:[%s11665_s11 + $0xd8] sm:$0xff]  }
0x11f3   : > { %v5351_v51 = vsel %vm2689_vm8, %v5350_v50, %v5347_v46  ;;  %v9160_v46 = vld [vmem:[%s11665_s11 + $0x10] sm:$0xff]   ;;  %v9164_v50 = vld [vmem:[%s11665_s11 + $0x18] sm:$0xff]  }
0x11f4   : > { %v5353_v52 = vrot.slane %v5351_v51, 3  ;;  %v5356_v53 = vrot.slane %v5351_v51, 1  ;;  %v9165_v51 = vld [vmem:[%s11665_s11 + $0x98] sm:$0xff]  }
0x11f6   : > { %v7771_v54 = vpack.c.bf16 %v5353_v52, %v5353_v52  ;;  %v7776_v55 = vpack.c.bf16 %v5356_v53, %v5356_v53  ;;  %v9166_v52 = vld [vmem:[%s11665_s11 + $0x60] sm:$0xff]  }
0x11f7   : > { %v9167_v53 = vld [vmem:[%s11665_s11 + $0xe0] sm:$0xff]  }
0x11f8   : > { %7772 = vmatmul.mubr.msk.bf16.vlgmr.msra.gmra.mrb[32].mxu0 %vm10993_vm2, %v7771_v54  ;;  %8299 = vmatmul.mubr.msk.bf16.vlgmr.msra.gmra.mrb[40].mxu1 %vm10997_vm3, %v7776_v55  ;;  %v9168_v54 = vld [vmem:[%s11665_s11 + $0x20] sm:$0xff]   ;;  %vm7821_vm3 = vmneg %vm2315_vm1 }
0x11f9   : > { %8304 = vmatprep.mubr.msk.bf16.mxu0 %vm10119_vm0, %v10120_v12  ;;  %8075 = vmatpush3.bf16.msra.mxu1 %v9152_v39  ;;  %v9169_v55 = vld [vmem:[%s11665_s11 + $0xa0] sm:$0xff]   ;;  %vm7823_vm6 = vmpackc.low %vm7821_vm3, %vm7821_vm3  ;;  %v9192_v39 = vld [vmem:[%s11667_s14 + $0x30] sm:$0xff]  }
0x11fa   : > { %8076 = vmatprep.subr.bf16.mxu1 %v9154_v41  ;;  %v9194_v41 = vld [vmem:[%s11667_s14 + $0x40] sm:$0xff]  }
0x11fd   : > { %8077 = vmatpush3.bf16.msra.mxu1 %v9156_v43  ;;  %v9196_v43 = vld [vmem:[%s11667_s14 + $0x50] sm:$0xff]  }
0x11fe   : > { %8078 = vmatprep.subr.bf16.mxu1 %v9158_v16 }
0x1201   : > { %8079 = vmatpush3.bf16.msra.mxu1 %v9160_v46 }
0x1202   : > { %8080 = vmatprep.subr.bf16.mxu1 %v9162_v48 }
0x1205   : > { %8081 = vmatpush3.bf16.msra.mxu1 %v9164_v50 }
0x1206   : > { %8082 = vmatprep.subr.bf16.mxu1 %v9166_v52 }
0x1209   : > { %8083 = vmatpush3.bf16.msra.mxu1 %v9168_v54 }
0x12cb   : > { %v8057_v56 = vpop.f32.mrb[32].mxu0  ;;  %v5635_v57 = vpop.f32.mrb[40].mxu1 }
0x12cc   : > { %v8058_v59 = vpop.f32.mrb[33].mxu0  ;;  %v8300_v25 = vpop.f32.mrb[41].mxu1 }
0x12cd   : > { %v8059_v60 = vadd.f32 %v8058_v59, %v8057_v56  ;;  %v8060_v61 = vpop.f32.mrb[34].mxu0  ;;  %v5638_v63 = vpop.f32.mrb[42].mxu1  ;;  %v9170_v56 = vld [vmem:[%s11665_s11 + $0x68] sm:$0xff]   ;;  %v9174_v25 = vld [vmem:[%s11665_s11 + $0x70] sm:$0xff]  }
0x12ce   : > { %v8061_v62 = vpop.f32.mrb[35].mxu0  ;;  %v8301_v0 = vpop.f32.mrb[43].mxu1  ;;  %v9173_v59 = vld [vmem:[%s11665_s11 + $0xa8] sm:$0xff]   ;;  %8084 = vmatprep.subr.bf16.mxu1 %v9170_v56  ;;  %v9176_v61 = vld [vmem:[%s11665_s11 + $0x30] sm:$0xff]  }
0x12cf   : > { %v5596_v44 = vadd.f32 %v8059_v60, %v7743_v58  ;;  %v9172_v58 = vld [vmem:[%s11665_s11 + $0x28] sm:$0xff]   ;;  %v9175_v60 = vld [vmem:[%s11665_s11 + $0xf0] sm:$0xff]   ;;  %v9178_v62 = vld [vmem:[%s11665_s11 + $0x78] sm:$0xff]  }
0x12d0   : > { %8085 = vmatpush3.bf16.msra.mxu1 %v9172_v58  ;;  %v9177_v63 = vld [vmem:[%s11665_s11 + $0xb0] sm:$0xff]   ;;  %v9179_v0 = vld [vmem:[%s11665_s11 + $0xf8] sm:$0xff]  }
0x12d1   : > { %v5636_v2 = vadd.f32 %v5635_v57, %v5596_v44  ;;  %v9171_v57 = vld [vmem:[%s11665_s11 + $0xe8] sm:$0xff]   ;;  %8086 = vmatprep.subr.bf16.mxu1 %v9174_v25  ;;  %v9180_v44 = vld [vmem:[%s11665_s11 + $0x38] sm:$0xff]  }
0x12d3   : > { %v5641_v3 = vsel %vm2856_vm14, %v5636_v2, 0.0 }
0x12d4   : > { %v5642_v4 = vrot.slane %v5641_v3, 4  ;;  %8087 = vmatpush3.bf16.msra.mxu1 %v9176_v61 }
0x12d5   : > { %8088 = vmatprep.subr.bf16.mxu1 %v9178_v62 }
0x12d6   : > { %v5643_v24 = vadd.f32 %v5642_v4, %v5641_v3 }
0x12d8   : > { %v5644_v5 = vrot.slane %v5643_v24, 2  ;;  %8089 = vmatpush3.bf16.msra.mxu1 %v9180_v44 }
0x12d9   : > { %8308 = vmatprep.subr.bf16.mxu1 %v10120_v12 }
0x12da   : > { %v5645_v8 = vadd.f32 %v5644_v5, %v5643_v24 }
0x12dc   : > { %v5646_v9 = vrot.slane %v5645_v8, 1 }
0x12de   : > { %v5647_v10 = vadd.f32 %v5646_v9, %v5645_v8 }
0x12e0   : > { %v5648_v13 = vmul.f32 0.25, %v5647_v10  ;;  %v5712_v10 = vrot.slane %v10949_v34, 7 }
0x12e2   : > { %v5649_v14 = vsub.f32 %v5636_v2, %v5648_v13  ;;  %v9181_v2 = vld [vmem:[%s11665_s11 + $0xb8] sm:$0xff]  }
0x12e4   : > { %v5650_v17 = vmul.f32 %v5649_v14, %v5649_v14 }
0x12e6   : > { %v5651_v7 = vsel %vm2856_vm14, %v5650_v17, 0.0  ;;  %v5714_v17 = vsel %vm1798_vm4, 0.0, %v5712_v10 }
0x12e7   : > { %v5652_v18 = vrot.slane %v5651_v7, 4 }
0x12e9   : > { %v5653_v6 = vadd.f32 %v5652_v18, %v5651_v7 }
0x12eb   : > { %v5654_v19 = vrot.slane %v5653_v6, 2 }
0x12ed   : > { %v5655_v20 = vadd.f32 %v5654_v19, %v5653_v6 }
0x12ef   : > { %v5656_v21 = vrot.slane %v5655_v20, 1 }
0x12f1   : > { %v5657_v22 = vadd.f32 %v5656_v21, %v5655_v20  ;;  %v9182_v21 = vld [vmem:[%s11665_s11 + $0x100] sm:$0xff]  }
0x12f3   : > { %v5658_v27 = vmul.f32 0.25, %v5657_v22 }
0x12f5   : > { %v5659_v33 = vadd.f32 1e-05, %v5658_v27  ;;  %v9183_v27 = vld [vmem:[%s11665_s11 + $0x108] sm:$0xff]  }
0x12f7   : > { %9249 = vrsqrt.f32 %v5659_v33  ;;  %v9184_v33 = vld [vmem:[%s11665_s11 + $0x110] sm:$0xff]  }
0x1301   : > { %v9250_v29 = vpop.eup %9249 }
0x1302   : > { %v5661_v30 = vmul.f32 %v9250_v29, %v5649_v14  ;;  %v5723_v14 = vpop.permute.xlu0 %5722  ;;  %v5716_v29 = vrot.slane %v10949_v34, 1  ;;  %v9186_v34 = vld [vmem:[%s11666_s6] sm:$0xff]   ;;  %s11669_s6 = sld [smem:[#allocation85_spill]] }
0x1304   : > { %v5662_v31 = vmax.f32 %v5661_v30, 0.0  ;;  %v9185_v30 = vld [vmem:[%s11665_s11 + $0x118] sm:$0xff]   ;;  %v5718_v28 = vsel %vm2315_vm1, 0.0, %v5716_v29 }
0x1306   : > { %v5664_v32 = vpack.c.bf16 %v5662_v31, %v5662_v31  ;;  %v5732_v31 = vpack.c.bf16 %v5718_v28, %v5718_v28 }
0x1308   : > { %v5669_v35 = vsel %vm3206_vm9, %v5664_v32, 0  ;;  %v9187_v32 = vld [vmem:[%s11667_s14 + $0x8] sm:$0xff]   ;;  %s11670_s10 = smov %s11669_s6 }
0x1309   : > { %8303 = vmatpush3.bf16.msra.mxu0 %v5669_v35  ;;  %v9188_v35 = vld [vmem:[%s11667_s14 + $0x10] sm:$0xff]  }
0x130a   : > { %8096 = vmatprep.subr.bf16.mxu0 %v9151_v36  ;;  %v9191_v36 = vld [vmem:[%s11667_s14 + $0x28] sm:$0xff]  }
0x130c   : > { %8305 = vmatmul.mubr.msk.bf16.vlgmr.msra.gmra.mrb[36].mxu0 %vm1931_vm7, %v5663_v37  ;;  %v9189_v37 = vld [vmem:[%s11667_s14 + $0x18] sm:$0xff]   ;;  %vm11671_vm7 = vcmp.lt.s32.totalorder %v10735_v11, 7 }
0x130d   : > { %8097 = vmatpush3.bf16.msra.mxu0 %v9153_v40  ;;  %v9193_v40 = vld [vmem:[%s11667_s14 + $0x38] sm:$0xff]   ;;  %vm11672_vm8 = vmmov %vm11671_vm7 }
0x130e   : > { %8098 = vmatprep.subr.bf16.mxu0 %v9155_v42  ;;  %v9195_v42 = vld [vmem:[%s11667_s14 + $0x48] sm:$0xff]   ;;  %vm11682_vm15 = vmmov %vm11671_vm7 }
0x130f   : > { %vm11683_vm3 = vmmov %vm11671_vm7 }
0x1311   : > { %8099 = vmatpush3.bf16.msra.mxu0 %v9157_v23 }
0x1312   : > { %8100 = vmatprep.subr.bf16.mxu0 %v9159_v45 }
0x1315   : > { %8101 = vmatpush3.bf16.msra.mxu0 %v9161_v47  ;;  %v7779_v47 = vld [vmem:[#allocation33] ss:$0 sm:$0xff] }
0x1316   : > { %8102 = vmatprep.subr.bf16.mxu0 %v9163_v49 }
0x1319   : > { %8103 = vmatpush3.bf16.msra.mxu0 %v9165_v51 }
0x131a   : > { %8104 = vmatprep.subr.bf16.mxu0 %v9167_v53 }
0x131d   : > { %8105 = vmatpush3.bf16.msra.mxu0 %v9169_v55 }
0x131e   : > { %8106 = vmatprep.subr.bf16.mxu0 %v9171_v57 }
0x1321   : > { %8107 = vmatpush3.bf16.msra.mxu0 %v9173_v59 }
0x1322   : > { %8108 = vmatprep.subr.bf16.mxu0 %v9175_v60 }
0x1325   : > { %8109 = vmatpush3.bf16.msra.mxu0 %v9177_v63 }
0x1326   : > { %8110 = vmatprep.subr.bf16.mxu0 %v9179_v0 }
0x1329   : > { %8111 = vmatpush3.bf16.msra.mxu0 %v9181_v2 }
0x132a   : > { %6290 = vmatprep.subr.bf16.mxu0 %v10117_v1 }
0x13df   : > { %v5705_v3 = vpop.f32.mrb[36].mxu0 }
0x13e0   : > { %v5715_v4 = vrot.slane %v5705_v3, 1  ;;  %5720 = vrot.lane.b32.xlu1 %v5705_v3, %s10124_s7  ;;  %v8306_v24 = vpop.f32.mrb[37].mxu0  ;;  %v5711_v13 = vrot.slane %v5705_v3, 7 }
0x13e1   : > { %v5708_v5 = vpop.f32.mrb[38].mxu0 }
0x13e2   : > { %v7824_v8 = vpack.c.bf16 %v5715_v4, %v5715_v4  ;;  %v8307_v9 = vpop.f32.mrb[39].mxu0  ;;  %v7819_v22 = vpack.c.bf16 %v5711_v13, %v5711_v13 }
0x13e4   : > { %7825 = vmatprep.mubr.msk.bf16.mxu0 %vm7823_vm6, %v7824_v8 }
0x1452   : > { %v5721_v7 = vpop.permute.xlu1 %5720 }
0x1453   : > { %v5724_v18 = vsel %vm2055_vm10, %v5721_v7, %v5723_v14  ;;  %v5727_v6 = vsel %vm2055_vm10, %v5714_v17, %v5721_v7 }
0x1454   : > { %v5729_v19 = vpack.c.bf16 %v5727_v6, %v5727_v6  ;;  %v5730_v20 = vpack.c.bf16 %v5724_v18, %v5724_v18  ;;  %v9197_v18 = vld [vmem:[%s11667_s14 + $0x58] sm:$0xff]  }
0x1456   : > { %6063 = vmatprep.mubr.bf16.mxu1 %v5729_v19  ;;  %6104 = vmatmul.mubr.bf16.vlgmr.msra.gmra.mrb[40].mxu0 %v5730_v20 }
0x1457   : > { %7820 = vmatmul.mubr.msk.bf16.vlgmr.msra.gmra.mrb[44].mxu1 %vm10993_vm2, %v7819_v22  ;;  %6291 = vmatpush1.bf16.msra.mxu0 %v9186_v34  ;;  %v7827_v34 = vld [vmem:[#allocation35] ss:$0 sm:$0xff]  ;;  %vm11676_vm2 = vcmask 261120  }
0x1458   : > { %8309 = vmatpush3.bf16.msra.mxu1 %v9182_v21  ;;  %8316 = vmatprep.mubr.msk.bf16.mxu1 %vm10119_vm0, %v10120_v12 }
0x1459   : > { %8310 = vmatprep.subr.bf16.mxu1 %v10120_v12  ;;  %6292 = vmatprep.subr.bf16.mxu0 %v10117_v1 }
0x145b   : > { %6293 = vmatpush1.bf16.msra.mxu0 %v9187_v32 }
0x145c   : > { %8311 = vmatpush3.bf16.msra.mxu1 %v9183_v27  ;;  %6294 = vmatprep.subr.bf16.mxu0 %v10117_v1 }
0x145d   : > { %8312 = vmatprep.subr.bf16.mxu1 %v10120_v12 }
0x145f   : > { %6295 = vmatpush1.bf16.msra.mxu0 %v9188_v35 }
0x1460   : > { %8313 = vmatpush3.bf16.msra.mxu1 %v9184_v33  ;;  %6296 = vmatprep.subr.bf16.mxu0 %v10117_v1 }
0x1461   : > { %8314 = vmatprep.subr.bf16.mxu1 %v10120_v12 }
0x1463   : > { %6297 = vmatpush1.bf16.msra.mxu0 %v9189_v37 }
0x1464   : > { %8315 = vmatpush3.bf16.msra.mxu1 %v9185_v30  ;;  %6298 = vmatprep.subr.bf16.mxu0 %v10117_v1 }
0x1465   : > { %8320 = vmatprep.subr.bf16.mxu1 %v10120_v12 }
0x1467   : > { %8317 = vmatmul.mubr.msk.bf16.vlgmr.msra.gmra.mrb[48].mxu1 %vm2055_vm10, %v5732_v31  ;;  %6299 = vmatpush1.bf16.msra.mxu0 %v9190_v38 }
0x1468   : > { %8322 = vmatprep.mubr.msk.bf16.mxu1 %vm10119_vm0, %v10120_v12  ;;  %6300 = vmatprep.subr.bf16.mxu0 %v10117_v1 }
0x146b   : > { %6301 = vmatpush1.bf16.msra.mxu0 %v9191_v36 }
0x146c   : > { %6302 = vmatprep.subr.bf16.mxu0 %v10117_v1 }
0x146f   : > { %6303 = vmatpush1.bf16.msra.mxu0 %v9192_v39 }
0x1470   : > { %6304 = vmatprep.subr.bf16.mxu0 %v10117_v1 }
0x1473   : > { %6305 = vmatpush1.bf16.msra.mxu0 %v9193_v40 }
0x1474   : > { %6306 = vmatprep.subr.bf16.mxu0 %v10117_v1 }
0x1477   : > { %6307 = vmatpush1.bf16.msra.mxu0 %v9194_v41 }
0x1478   : > { %6308 = vmatprep.subr.bf16.mxu0 %v10117_v1 }
0x147b   : > { %6309 = vmatpush1.bf16.msra.mxu0 %v9195_v42 }
0x147c   : > { %6310 = vmatprep.subr.bf16.mxu0 %v10117_v1 }
0x147f   : > { %6311 = vmatpush1.bf16.msra.mxu0 %v9196_v43 }
0x1480   : > { %6312 = vmatprep.subr.bf16.mxu0 %v10117_v1 }
0x1483   : > { %6313 = vmatpush1.bf16.msra.mxu0 %v9197_v18  ;;  %v9215_v18 = vld [vmem:[%s11670_s10 + $0x78] sm:$0xff]  }
0x1484   : > { %8326 = vmatprep.subr.bf16.mxu0 %v10120_v12 }
0x1529   : > { %v8112_v23 = vpop.f32.mrb[40].mxu0 }
0x152a   : > { %v8090_v16 = vpop.f32.mrb[44].mxu1  ;;  %v8113_v45 = vpop.f32.mrb[41].mxu0 }
0x152b   : > { %v8114_v46 = vadd.f32 %v8113_v45, %v8112_v23  ;;  %v8091_v48 = vpop.f32.mrb[45].mxu1  ;;  %v8115_v49 = vpop.f32.mrb[42].mxu0 }
0x152c   : > { %v8092_v50 = vadd.f32 %v8091_v48, %v8090_v16  ;;  %v8093_v51 = vpop.f32.mrb[46].mxu1  ;;  %v8116_v52 = vpop.f32.mrb[43].mxu0 }
0x152d   : > { %v8094_v53 = vpop.f32.mrb[47].mxu1 }
0x152e   : > { %v6066_v54 = vadd.f32 %v8092_v50, %v7779_v47 }
0x1530   : > { %v6106_v55 = vadd.f32 %v8114_v46, %v6066_v54 }
0x153a   : > { %v6145_v56 = vpop.f32.mrb[48].mxu1 }
0x153b   : > { %v6146_v57 = vadd.f32 %v6145_v56, %v6106_v55  ;;  %v8318_v58 = vpop.f32.mrb[49].mxu1 }
0x153c   : > { %v6148_v59 = vpop.f32.mrb[50].mxu1 }
0x153d   : > { %v6151_v25 = vsel %vm2055_vm10, %v6146_v57, 0.0  ;;  %v8319_v1 = vpop.f32.mrb[51].mxu1 }
0x153e   : > { %v6152_v60 = vrot.slane %v6151_v25, 4 }
0x1540   : > { %v6153_v61 = vadd.f32 %v6152_v60, %v6151_v25  ;;  %v9198_v60 = vld [vmem:[%s11668_s8] sm:$0xff]   ;;  %s10126_s8 = smov 96  }
0x1542   : > { %v6154_v63 = vrot.slane %v6153_v61, 2 }
0x1544   : > { %v6155_v62 = vadd.f32 %v6154_v63, %v6153_v61  ;;  %v9199_v61 = vld [vmem:[%s11669_s6 + $0x40] sm:$0xff]   ;;  %s11674_s6 = sld [smem:[#allocation87_spill]] }
0x1545   : > { %v9200_v63 = vld [vmem:[%s11670_s10] sm:$0xff]  }
0x1546   : > { %v6156_v0 = vrot.slane %v6155_v62, 1 }
0x1548   : > { %v6157_v44 = vadd.f32 %v6156_v0, %v6155_v62  ;;  %v9201_v62 = vld [vmem:[%s11670_s10 + $0x48] sm:$0xff]  }
0x1549   : > { %v9202_v0 = vld [vmem:[%s11670_s10 + $0x8] sm:$0xff]  }
0x154a   : > { %v6158_v2 = vmul.f32 0.125, %v6157_v44  ;;  %v9203_v44 = vld [vmem:[%s11670_s10 + $0x50] sm:$0xff]  }
0x154c   : > { %v6159_v3 = vsub.f32 %v6146_v57, %v6158_v2  ;;  %v9204_v2 = vld [vmem:[%s11670_s10 + $0x10] sm:$0xff]  }
0x154e   : > { %v6160_v4 = vmul.f32 %v6159_v3, %v6159_v3 }
0x1550   : > { %v6161_v24 = vsel %vm2055_vm10, %v6160_v4, 0.0  ;;  %v9206_v4 = vld [vmem:[%s11670_s10 + $0x18] sm:$0xff]  }
0x1551   : > { %v6162_v5 = vrot.slane %v6161_v24, 4 }
0x1553   : > { %v6163_v8 = vadd.f32 %v6162_v5, %v6161_v24  ;;  %v9207_v24 = vld [vmem:[%s11670_s10 + $0x60] sm:$0xff]  }
0x1554   : > { %v9208_v5 = vld [vmem:[%s11670_s10 + $0x20] sm:$0xff]  }
0x1555   : > { %v6164_v9 = vrot.slane %v6163_v8, 2 }
0x1557   : > { %v6165_v10 = vadd.f32 %v6164_v9, %v6163_v8  ;;  %v9209_v8 = vld [vmem:[%s11670_s10 + $0x68] sm:$0xff]  }
0x1558   : > { %v9210_v9 = vld [vmem:[%s11670_s10 + $0x28] sm:$0xff]  }
0x1559   : > { %v6166_v13 = vrot.slane %v6165_v10, 1 }
0x155b   : > { %v6167_v14 = vadd.f32 %v6166_v13, %v6165_v10  ;;  %v9211_v10 = vld [vmem:[%s11670_s10 + $0x80] sm:$0xff]   ;;  %v9212_v13 = vld [vmem:[%s11670_s10 + $0x70] sm:$0xff]  }
0x155d   : > { %v6168_v17 = vmul.f32 0.125, %v6167_v14  ;;  %v9213_v14 = vld [vmem:[%s11670_s10 + $0x30] sm:$0xff]  }
0x155f   : > { %v6169_v7 = vadd.f32 1e-05, %v6168_v17  ;;  %v8755_v17 = vpop.permute.xlu0 %8754 }
0x1561   : > { %9251 = vrsqrt.f32 %v6169_v7  ;;  %v9214_v7 = vld [vmem:[%s11670_s10 + $0x88] sm:$0xff]  }
0x156b   : > { %v9252_v6 = vpop.eup %9251 }
0x156c   : > { %v6171_v19 = vmul.f32 %v9252_v6, %v6159_v3  ;;  %v9205_v3 = vld [vmem:[%s11670_s10 + $0x58] sm:$0xff]   ;;  %v8756_v6 = vunpack.i.l.bf16 %v8755_v17 }
0x156e   : > { %v6172_v20 = vmax.f32 %v6171_v19, 0.0  ;;  %v9216_v19 = vld [vmem:[%s11670_s10 + $0x38] sm:$0xff]   ;;  %s9937_s10 = sshll.u32 %s10127_s9, 4  ;;  %s9938_s10 = int_to_ptr.vmem [resolvable:$false] %s9937_s10 }
0x156f   : > { %s9939_s11 = scalar_lea.vmem %s9938_s10, 32 }
0x1570   : > { %6178 = vrot.lane.b32.xlu1 %v6172_v20, %s10124_s7  ;;  %v6175_v21 = vrot.slane %v6172_v20, 1  ;;  %v6173_v33 = vrot.slane %v6172_v20, 7 }
0x1572   : > { %v6176_v22 = vsel %vm2315_vm1, 0.0, %v6175_v21  ;;  %v6174_v30 = vsel %vm1798_vm4, 0.0, %v6173_v33  ;;  %vm6360_vm1 = vcmask 64512   ;;  %v8757_v21 = vunpack.i.h.bf16 %v8755_v17 }
0x1573   : > { %v6183_v27 = vpack.c.bf16 %v6176_v22, %v6176_v22 }
0x1575   : > { %7840 = vmatprep.mubr.msk.bf16.mxu0 %vm2055_vm10, %v6183_v27 }
0x15e2   : > { %v6179_v29 = vpop.permute.xlu1 %6178 }
0x15e3   : > { %v6181_v28 = vsel %vm2055_vm10, %v6174_v30, %v6179_v29 }
0x15e4   : > { %v6182_v31 = vpack.c.bf16 %v6181_v28, %v6181_v28 }
0x15e6   : > { %6323 = vmatmul.mubr.bf16.vlgmr.msra.gmra.mrb[44].mxu0 %v6182_v31 }
0x15e7   : > { %8330 = vmatprep.mubr.msk.bf16.mxu0 %vm10119_vm0, %v10120_v12  ;;  %8327 = vmatpush3.bf16.msra.mxu0 %v9211_v10 }
0x15e8   : > { %8328 = vmatprep.subr.bf16.mxu0 %v10120_v12 }
0x15eb   : > { %8329 = vmatpush3.bf16.msra.mxu0 %v9214_v7 }
0x15ec   : > { %8350 = vmatprep.subr.bf16.mxu0 %v10120_v12 }
0x16b9   : > { %v6324_v32 = vpop.f32.mrb[44].mxu0 }
0x16ba   : > { %v6325_v35 = vadd.f32 %v7827_v34, %v6324_v32  ;;  %v6326_v37 = vpop.f32.mrb[45].mxu0 }
0x16bb   : > { %v6327_v38 = vpop.f32.mrb[46].mxu0 }
0x16bc   : > { %v6330_v36 = vsel %vm2055_vm10, %v6325_v35, 0.0  ;;  %v6328_v39 = vpop.f32.mrb[47].mxu0 }
0x16bd   : > { %v6331_v40 = vrot.slane %v6330_v36, 4 }
0x16bf   : > { %v6332_v41 = vadd.f32 %v6331_v40, %v6330_v36 }
0x16c1   : > { %v6333_v42 = vrot.slane %v6332_v41, 2 }
0x16c3   : > { %v6334_v43 = vadd.f32 %v6333_v42, %v6332_v41 }
0x16c5   : > { %v6335_v23 = vrot.slane %v6334_v43, 1 }
0x16c7   : > { %v6336_v16 = vadd.f32 %v6335_v23, %v6334_v43 }
0x16c9   : > { %v6337_v45 = vmul.f32 0.125, %v6336_v16 }
0x16cb   : > { %v6338_v46 = vsub.f32 %v6325_v35, %v6337_v45 }
0x16cd   : > { %v6339_v47 = vmul.f32 %v6338_v46, %v6338_v46 }
0x16cf   : > { %v6340_v48 = vsel %vm2055_vm10, %v6339_v47, 0.0 }
0x16d0   : > { %v6341_v49 = vrot.slane %v6340_v48, 4 }
0x16d2   : > { %v6342_v50 = vadd.f32 %v6341_v49, %v6340_v48 }
0x16d4   : > { %v6343_v51 = vrot.slane %v6342_v50, 2 }
0x16d6   : > { %v6344_v52 = vadd.f32 %v6343_v51, %v6342_v50 }
0x16d8   : > { %v6345_v53 = vrot.slane %v6344_v52, 1 }
0x16da   : > { %v6346_v54 = vadd.f32 %v6345_v53, %v6344_v52 }
0x16dc   : > { %v6347_v55 = vmul.f32 0.125, %v6346_v54 }
0x16de   : > { %v6348_v56 = vadd.f32 1e-05, %v6347_v55  ;;  %v9217_v55 = vld [vmem:[%s11674_s6] sm:$0xff]  }
0x16e0   : > { %9253 = vrsqrt.f32 %v6348_v56 }
0x16ea   : > { %v9254_v57 = vpop.eup %9253 }
0x16eb   : > { %v6350_v58 = vmul.f32 %v9254_v57, %v6338_v46 }
0x16ed   : > { %v6351_v59 = vmax.f32 %v6350_v58, 0.0 }
0x16ef   : > { %v6354_v25 = vpack.c.bf16 %v6351_v59, %v6351_v59 }
0x16f1   : > { %v6365_v1 = vsel %vm2856_vm14, %v6354_v25, 0  ;;  %vm11673_vm14 = vcmp.eq.s32.totalorder %v10745_v15, 15 }
0x16f2   : > { %8321 = vmatpush3.bf16.msra.mxu1 %v6365_v1  ;;  %vm11684_vm6 = vmmov %vm11673_vm14 }
0x16f3   : > { %8125 = vmatprep.subr.bf16.mxu1 %v9199_v61  ;;  %v7843_v61 = vld [vmem:[#allocation36] ss:$0 sm:$0xff] }
0x16f5   : > { %8323 = vmatmul.mubr.msk.bf16.vlgmr.msra.gmra.mrb[52].mxu1 %vm6360_vm1, %v9198_v60 }
0x16f6   : > { %8126 = vmatpush3.bf16.msra.mxu1 %v9200_v63 }
0x16f7   : > { %8127 = vmatprep.subr.bf16.mxu1 %v9201_v62 }
0x16fa   : > { %8128 = vmatpush3.bf16.msra.mxu1 %v9202_v0 }
0x16fb   : > { %8129 = vmatprep.subr.bf16.mxu1 %v9203_v44 }
0x16fe   : > { %8130 = vmatpush3.bf16.msra.mxu1 %v9204_v2 }
0x16ff   : > { %8131 = vmatprep.subr.bf16.mxu1 %v9205_v3 }
0x1702   : > { %8132 = vmatpush3.bf16.msra.mxu1 %v9206_v4 }
0x1703   : > { %8133 = vmatprep.subr.bf16.mxu1 %v9207_v24 }
0x1706   : > { %8134 = vmatpush3.bf16.msra.mxu1 %v9208_v5 }
0x1707   : > { %8135 = vmatprep.subr.bf16.mxu1 %v9209_v8 }
0x170a   : > { %8136 = vmatpush3.bf16.msra.mxu1 %v9210_v9 }
0x170b   : > { %8137 = vmatprep.subr.bf16.mxu1 %v9212_v13 }
0x170e   : > { %8138 = vmatpush3.bf16.msra.mxu1 %v9213_v14 }
0x170f   : > { %8139 = vmatprep.subr.bf16.mxu1 %v9215_v18 }
0x1712   : > { %8140 = vmatpush3.bf16.msra.mxu1 %v9216_v19 }
0x1713   : > { %8334 = vmatprep.subr.bf16.mxu1 %v10120_v12 }
0x17c8   : > { %v6401_v20 = vpop.f32.mrb[52].mxu1 }
0x17c9   : > { %v6414_v22 = vsel %vm2055_vm10, %v6401_v20, %v8756_v6  ;;  %v8324_v27 = vpop.f32.mrb[53].mxu1 }
0x17ca   : > { %v6404_v33 = vpop.f32.mrb[54].mxu1  ;;  %v6416_v29 = vrot.slane %v6414_v22, 7  ;;  %v6422_v31 = vrot.slane %v6414_v22, 1 }
0x17cb   : > { %v6415_v30 = vsel %vm2055_vm10, %v6404_v33, %v8757_v21  ;;  %v8325_v28 = vpop.f32.mrb[55].mxu1 }
0x17cc   : > { %v6417_v34 = vrot.slane %v6415_v30, 7  ;;  %v6423_v32 = vrot.slane %v6415_v30, 1  ;;  %v8758_v35 = vpack.i.bf16 %v6415_v30, %v6414_v22 }
0x17ce   : > { %v6419_v37 = vsel %vm1900_vm5, %v6417_v34, %v6416_v29  ;;  %8759 = vrot.lane.b32.xlu1 %v8758_v35, %s10126_s8  ;;  %v6424_v38 = vsel %vm11671_vm7, %v6422_v31, %v6423_v32  ;;  %v6425_v36 = vsel %vm11672_vm8, %v6423_v32, %v6422_v31  ;;  %v6418_v39 = vsel %vm1900_vm5, %v6416_v29, %v6417_v34  ;;  %s11675_s8 = smov %s11674_s6  ;;  %s11681_s6 = smov 32  }
0x17cf   : > { %v6427_v40 = vsel %vm11673_vm14, 0.0, %v6425_v36  ;;  %v6420_v16 = vsel %vm1798_vm4, 0.0, %v6419_v37  ;;  %v9218_v56 = vld [vmem:[%s11675_s8 + $0x8] sm:$0xff]   ;;  %v9219_v57 = vld [vmem:[%s11675_s8 + $0x10] sm:$0xff]   ;;  %v9220_v58 = vld [vmem:[%s11675_s8 + $0x18] sm:$0xff]   ;;  %vm6967_vm14 = vcmask 122880  }
0x17d0   : > { %v8763_v41 = vpack.i.bf16 %v6427_v40, %v6424_v38  ;;  %v9221_v40 = vld [vmem:[%s11675_s8 + $0x20] sm:$0xff]  }
0x17d2   : > { %8764 = vrot.lane.b32.xlu0 %v8763_v41, %s10124_s7  ;;  %v9222_v41 = vld [vmem:[%s11675_s8 + $0x28] sm:$0xff]  }
0x1840   : > { %v8760_v42 = vpop.permute.xlu1 %8759 }
0x1841   : > { %v8762_v43 = vunpack.i.h.bf16 %v8760_v42  ;;  %v8761_v23 = vunpack.i.l.bf16 %v8760_v42 }
0x1843   : > { %v6444_v45 = vsel %vm2114_vm11, %v6420_v16, %v8761_v23  ;;  %v6445_v46 = vsel %vm2114_vm11, %v6418_v39, %v8762_v43 }
0x1844   : > { %v6448_v47 = vpack.c.bf16 %v6445_v46, %v6444_v45  ;;  %v8765_v48 = vpop.permute.xlu0 %8764 }
0x1845   : > { %v8767_v49 = vunpack.i.h.bf16 %v8765_v48  ;;  %v8766_v50 = vunpack.i.l.bf16 %v8765_v48 }
0x1847   : > { %v6450_v51 = vpack.c.bf16 %v8767_v49, %v8766_v50  ;;  %v6446_v52 = vsel %vm2055_vm10, %v8761_v23, %v8766_v50  ;;  %v6447_v53 = vsel %vm2055_vm10, %v8762_v43, %v8767_v49 }
0x1848   : > { %v6449_v54 = vpack.c.bf16 %v6447_v53, %v6446_v52 }
0x1849   : > { %8331 = vmatmul.mubr.msk.bf16.vlgmr.msra.gmra.mrb[48].mxu0 %vm11676_vm2, %v6450_v51 }
0x184a   : > { %6637 = vmatprep.mubr.bf16.mxu1 %v6449_v54  ;;  %8354 = vmatprep.mubr.msk.bf16.mxu0 %vm10119_vm0, %v10120_v12 }
0x184b   : > { %6638 = vmatmul.mubr.bf16.vlgmr.msra.gmra.mrb[56].mxu1 %v6448_v47 }
0x184c   : > { %8346 = vmatprep.mubr.msk.bf16.mxu1 %vm10119_vm0, %v10120_v12  ;;  %8335 = vmatpush3.bf16.msra.mxu1 %v9217_v55  ;;  %vm11677_vm0 = vmmov %vm11676_vm2 }
0x184d   : > { %8336 = vmatprep.subr.bf16.mxu1 %v10120_v12  ;;  %vm11678_vm9 = vmmov %vm11677_vm0 }
0x184e   : > { %vm11679_vm13 = vmmov %vm11677_vm0 }
0x184f   : > { %vm11680_vm12 = vmmov %vm11677_vm0 }
0x1850   : > { %8337 = vmatpush3.bf16.msra.mxu1 %v9218_v56  ;;  %vm11685_vm1 = vmmov %vm11677_vm0 }
0x1851   : > { %8338 = vmatprep.subr.bf16.mxu1 %v10120_v12  ;;  %vm11686_vm7 = vmmov %vm11677_vm0 }
0x1852   : > { %vm11691_vm8 = vmmov %vm11677_vm0 }
0x1854   : > { %8339 = vmatpush3.bf16.msra.mxu1 %v9219_v57  ;;  %v6914_v57 = vld [vmem:[#allocation2] sm:$0x1] }
0x1855   : > { %8340 = vmatprep.subr.bf16.mxu1 %v10120_v12 }
0x1858   : > { %8341 = vmatpush3.bf16.msra.mxu1 %v9220_v58 }
0x1859   : > { %8342 = vmatprep.subr.bf16.mxu1 %v10120_v12 }
0x185c   : > { %8343 = vmatpush3.bf16.msra.mxu1 %v9221_v40 }
0x185d   : > { %8344 = vmatprep.subr.bf16.mxu1 %v10120_v12 }
0x1860   : > { %8345 = vmatpush3.bf16.msra.mxu1 %v9222_v41 }
0x191c   : > { %v6680_v59 = vpop.f32.mrb[48].mxu0 }
0x191d   : > { %v8332_v25 = vpop.f32.mrb[49].mxu0 }
0x191e   : > { %v8141_v1 = vpop.f32.mrb[56].mxu1  ;;  %v6683_v60 = vpop.f32.mrb[50].mxu0 }
0x191f   : > { %v8142_v63 = vpop.f32.mrb[57].mxu1  ;;  %v8333_v62 = vpop.f32.mrb[51].mxu0 }
0x1920   : > { %v8143_v0 = vadd.f32 %v8142_v63, %v8141_v1  ;;  %v8144_v44 = vpop.f32.mrb[58].mxu1 }
0x1921   : > { %v8145_v2 = vpop.f32.mrb[59].mxu1 }
0x1922   : > { %v6640_v3 = vadd.f32 %v8143_v0, %v7843_v61  ;;  %v8146_v4 = vadd.f32 %v8145_v2, %v8144_v44 }
0x1924   : > { %v6681_v24 = vadd.f32 %v6680_v59, %v6640_v3  ;;  %v6643_v5 = vadd.f32 %v8146_v4, %v7843_v61  ;;  %v7863_v3 = vld [vmem:[#allocation38] ss:$0 sm:$0xff] }
0x1926   : > { %v6684_v8 = vadd.f32 %v6683_v60, %v6643_v5  ;;  %v6687_v9 = vsel %vm11677_vm0, %v6681_v24, 0.0 }
0x1928   : > { %v6688_v10 = vsel %vm11678_vm9, %v6684_v8, 0.0 }
0x1929   : > { %v6689_v13 = vadd.f32 %v6688_v10, %v6687_v9 }
0x192b   : > { %v6690_v14 = vrot.slane %v6689_v13, 4 }
0x192d   : > { %v6691_v17 = vadd.f32 %v6690_v14, %v6689_v13 }
0x192f   : > { %v6692_v7 = vrot.slane %v6691_v17, 2 }
0x1931   : > { %v6693_v18 = vadd.f32 %v6692_v7, %v6691_v17 }
0x1933   : > { %v6694_v6 = vrot.slane %v6693_v18, 1 }
0x1935   : > { %v6695_v19 = vadd.f32 %v6694_v6, %v6693_v18 }
0x1937   : > { %v6696_v20 = vmul.f32 0.0625, %v6695_v19 }
0x1939   : > { %v6697_v21 = vsub.f32 %v6681_v24, %v6696_v20  ;;  %v6698_v22 = vsub.f32 %v6684_v8, %v6696_v20 }
0x193b   : > { %v6699_v27 = vmul.f32 %v6697_v21, %v6697_v21  ;;  %v6700_v33 = vmul.f32 %v6698_v22, %v6698_v22 }
0x193d   : > { %v6701_v29 = vsel %vm11679_vm13, %v6699_v27, 0.0  ;;  %v6702_v30 = vsel %vm11680_vm12, %v6700_v33, 0.0 }
0x193e   : > { %v6703_v28 = vadd.f32 %v6702_v30, %v6701_v29 }
0x1940   : > { %v6704_v31 = vrot.slane %v6703_v28, 4 }
0x1942   : > { %v6705_v34 = vadd.f32 %v6704_v31, %v6703_v28 }
0x1944   : > { %v6706_v32 = vrot.slane %v6705_v34, 2 }
0x1946   : > { %v6707_v35 = vadd.f32 %v6706_v32, %v6705_v34 }
0x1948   : > { %v6708_v37 = vrot.slane %v6707_v35, 1 }
0x194a   : > { %v6709_v38 = vadd.f32 %v6708_v37, %v6707_v35 }
0x194c   : > { %v6710_v36 = vmul.f32 0.0625, %v6709_v38 }
0x194e   : > { %v6711_v39 = vadd.f32 1e-05, %v6710_v36 }
0x1950   : > { %9255 = vrsqrt.f32 %v6711_v39 }
0x195a   : > { %v9256_v42 = vpop.eup %9255 }
0x195b   : > { %v6714_v43 = vmul.f32 %v9256_v42, %v6698_v22  ;;  %v6713_v23 = vmul.f32 %v9256_v42, %v6697_v21 }
0x195d   : > { %v6715_v16 = vmax.f32 %v6713_v23, 0.0  ;;  %v6716_v45 = vmax.f32 %v6714_v43, 0.0 }
0x195f   : > { %v8768_v46 = vpack.i.bf16 %v6716_v45, %v6715_v16  ;;  %v6723_v47 = vrot.slane %v6715_v16, 1  ;;  %v6724_v48 = vrot.slane %v6716_v45, 1  ;;  %v6718_v49 = vrot.slane %v6716_v45, 7 }
0x1960   : > { %v6717_v50 = vrot.slane %v6715_v16, 7 }
0x1961   : > { %8769 = vrot.lane.b32.xlu1 %v8768_v46, %s11681_s6  ;;  %v6725_v51 = vsel %vm11682_vm15, %v6723_v47, %v6724_v48  ;;  %v6726_v52 = vsel %vm11683_vm3, %v6724_v48, %v6723_v47  ;;  %s7872_s6 = sshll.u32 %s10357_s2, 4 }
0x1962   : > { %v6728_v53 = vsel %vm11684_vm6, 0.0, %v6726_v52  ;;  %v6719_v54 = vsel %vm1900_vm5, %v6717_v50, %v6718_v49  ;;  %v6720_v55 = vsel %vm1900_vm5, %v6718_v49, %v6717_v50  ;;  %vm11688_vm5 = vmmov %vm11677_vm0  ;;  %s11476_s5 = scalar_lea.hbm %s10334_s17, %s7872_s6 }
0x1963   : > { %v8773_v56 = vpack.i.bf16 %v6728_v53, %v6725_v51  ;;  %v6721_v60 = vsel %vm1798_vm4, 0.0, %v6720_v55  ;;  %vm11687_vm4 = vmmov %vm11677_vm0  ;;  %v6913_v51 = vld [vmem:[#allocation39] sm:$0x1] }
0x1965   : > { %8774 = vrot.lane.b32.xlu0 %v8773_v56, %s10124_s7  ;;  %s1525_s7 = sand.u32 1, %s10039_s0  }
0x1966   : > { %s1526_s3 = scalar_lea.vmem [#allocation41], %s1525_s7  ;;  %s6970_s2 = scalar_lea.sflag [#allocation5], %s1525_s7 }
0x1967   : > { %s6982_s4 = sshll.u32 %s1526_s3, 4  ;;  %s11478_s4 = int_to_ptr.vmem [resolvable:$true] %s6982_s4 }
0x1968   : > { %s9933_s8 = scalar_lea.vmem %s11478_s4, 16  ;;  %p9940_p3 = scmp.lt.s32.totalorder %s11478_s4, %s9938_s10 }
0x1969   : > { %6917 = vperm.xlu0 %8732, %v6914_v57   ;;  %p9934_p13 = scmp.ne.s32.totalorder %s11478_s4, %s9933_s8  ;;  %p9941_p4 = scmp.lt.s32.totalorder %s9939_s11, %s9933_s8 }
0x196b   : > { %p9935_p2 = pnand %p9934_p13, %p11692_p1  ;;  %p9942_p12 = por %p9941_p4, %p9940_p3 }
0x196d   : > { %p9936_p0 = pneg %p9935_p2 }
0x196f   : > { %p9943_p5 = pnand %p9942_p12, %p9936_p0 }
0x19d3   : > { %v8770_v58 = vpop.permute.xlu1 %8769 }
0x19d4   : > { %v8772_v59 = vunpack.i.h.bf16 %v8770_v58  ;;  %v8771_v25 = vunpack.i.l.bf16 %v8770_v58 }
0x19d6   : > { %v6745_v63 = vsel %vm11685_vm1, %v6721_v60, %v8771_v25  ;;  %v6746_v62 = vsel %vm11686_vm7, %v6719_v54, %v8772_v59 }
0x19d7   : > { %v8775_v1 = vpop.permute.xlu0 %8774 }
0x19d8   : > { %v8777_v15 = vunpack.i.h.bf16 %v8775_v1  ;;  %v8776_v61 = vunpack.i.l.bf16 %v8775_v1 }
0x19da   : > { %v6747_v0 = vsel %vm2055_vm10, %v6745_v63, %v8776_v61  ;;  %v6748_v44 = vsel %vm2055_vm10, %v6746_v62, %v8777_v15  ;;  %vm11689_vm10 = vmmov %vm11677_vm0 }
0x19db   : > { %v6749_v2 = vpack.c.bf16 %v6748_v44, %v6747_v0 }
0x19dd   : > { %8347 = vmatmul.mubr.msk.bf16.vlgmr.msra.gmra.mrb[60].mxu1 %vm2114_vm11, %v6749_v2  ;;  %vm11690_vm11 = vmmov %vm11677_vm0 }
0x19e8   : > { %v6918_v52 = vpop.permute.xlu0 %6917 }
0x19e9   : > { %v6923_v53 = vrot.slane %v6918_v52, %v10759_v26 }
0x1ab0   : > { %v6842_v4 = vpop.f32.mrb[60].mxu1 }
0x1ab1   : > { %v6843_v24 = vadd.f32 %v7863_v3, %v6842_v4  ;;  %v8348_v5 = vpop.f32.mrb[61].mxu1 }
0x1ab2   : > { %v6845_v8 = vpop.f32.mrb[62].mxu1 }
0x1ab3   : > { %v6846_v11 = vadd.f32 %v7863_v3, %v6845_v8  ;;  %v8349_v9 = vpop.f32.mrb[63].mxu1  ;;  %v6849_v10 = vsel %vm11687_vm4, %v6843_v24, 0.0 }
0x1ab5   : > { %v6850_v13 = vsel %vm11688_vm5, %v6846_v11, 0.0 }
0x1ab6   : > { %v6851_v14 = vadd.f32 %v6850_v13, %v6849_v10 }
0x1ab8   : > { %v6852_v17 = vrot.slane %v6851_v14, 4 }
0x1aba   : > { %v6853_v7 = vadd.f32 %v6852_v17, %v6851_v14 }
0x1abc   : > { %v6854_v18 = vrot.slane %v6853_v7, 2 }
0x1abe   : > { %v6855_v6 = vadd.f32 %v6854_v18, %v6853_v7 }
0x1ac0   : > { %v6856_v19 = vrot.slane %v6855_v6, 1 }
0x1ac2   : > { %v6857_v20 = vadd.f32 %v6856_v19, %v6855_v6 }
0x1ac4   : > { %v6858_v21 = vmul.f32 0.0625, %v6857_v20 }
0x1ac6   : > { %v6860_v22 = vsub.f32 %v6846_v11, %v6858_v21  ;;  %v6859_v27 = vsub.f32 %v6843_v24, %v6858_v21 }
0x1ac8   : > { %v6862_v33 = vmul.f32 %v6860_v22, %v6860_v22  ;;  %v6861_v29 = vmul.f32 %v6859_v27, %v6859_v27 }
0x1aca   : > { %v6864_v30 = vsel %vm11689_vm10, %v6862_v33, 0.0  ;;  %v6863_v28 = vsel %vm11690_vm11, %v6861_v29, 0.0 }
0x1acb   : > { %v6865_v31 = vadd.f32 %v6864_v30, %v6863_v28 }
0x1acd   : > { %v6866_v34 = vrot.slane %v6865_v31, 4 }
0x1acf   : > { %v6867_v32 = vadd.f32 %v6866_v34, %v6865_v31 }
0x1ad1   : > { %v6868_v35 = vrot.slane %v6867_v32, 2 }
0x1ad3   : > { %v6869_v37 = vadd.f32 %v6868_v35, %v6867_v32 }
0x1ad5   : > { %v6870_v38 = vrot.slane %v6869_v37, 1 }
0x1ad7   : > { %v6871_v36 = vadd.f32 %v6870_v38, %v6869_v37 }
0x1ad9   : > { %v6872_v39 = vmul.f32 0.0625, %v6871_v36 }
0x1adb   : > { %v6873_v40 = vadd.f32 1e-05, %v6872_v39 }
0x1add   : > { %9257 = vrsqrt.f32 %v6873_v40 }
0x1ae7   : > { %v9258_v41 = vpop.eup %9257 }
0x1ae8   : > { %v6875_v42 = vmul.f32 %v9258_v41, %v6859_v27  ;;  %v6876_v43 = vmul.f32 %v9258_v41, %v6860_v22 }
0x1aea   : > { %v6877_v23 = vmax.f32 %v6875_v42, 0.0  ;;  %v6878_v16 = vmax.f32 %v6876_v43, 0.0 }
0x1aec   : > { %6879 = vxpose.xlu1.b32.start [1/2] (short) (narrow) %v6877_v23, 32 }
0x1af0   : > { %6880 = vxpose.xlu1.b32.end [2/2] (short) (narrow) %v6878_v16, 32 }
0x1b6c   : > { %v6895_v45 = vpop.trf.xlu1 }
0x1b70   : > { %v6896_v46 = vpop.trf.xlu1 }
0x1b71   : > { %v6911_v47 = vpack.c.bf16 %v6896_v46, %v6895_v45 }
0x1b73   : > { %8351 = vmatpush3.bf16.msra.mxu0 %v6911_v47 }
0x1b74   : > { %v6897_v48 = vpop.trf.xlu1  ;;  %8352 = vmatprep.subr.bf16.mxu0 %v10120_v12 }
0x1b78   : > { %v6898_v49 = vpop.trf.xlu1 }
0x1b79   : > { %v6912_v50 = vpack.c.bf16 %v6898_v49, %v6897_v48 }
0x1b7b   : > { %8353 = vmatpush3.bf16.msra.mxu0 %v6912_v50 }
0x1b7e   : > { %8355 = vmatmul.mubr.msk.bf16.vlgmr.msra.gmra.mrb[52].mxu0 %vm11691_vm8, %v6913_v51 }
0x1c51   : > { %v6961_v54 = vpop.f32.mrb[52].mxu0 }
0x1c52   : > { %v6962_v55 = vadd.f32 %v6961_v54, %v6923_v53  ;;  %v8356_v56 = vpop.f32.mrb[53].mxu0 }
0x1c53   : > { %v6964_v12 = vpop.f32.mrb[54].mxu0 }
0x1c54   : > { %v8357_v57 = vpop.f32.mrb[55].mxu0  ;;  %6968 = vst.msk [vmem:[%s1526_s3] sm:$0x1] %vm6967_vm14, %v6962_v55 }
0x1c55   : > { %9946 = shalt.err (!%p9943_p5)
}
0x1c56   : > { %s9947_s3 = scalar_lea.hbm %s11476_s5, 16  ;;  %s9951_s9 = scalar_lea.hbm %s10334_s17, 32 }
0x1c57   : > { %p9948_p6 = scmp.ne.s32.totalorder %s11476_s5, %s9947_s3  ;;  %p9952_p7 = scmp.lt.u32.totalorder %s11476_s5, %s10334_s17 }
0x1c58   : > { %p9953_p8 = scmp.lt.u32.totalorder %s9951_s9, %s9947_s3  ;;  %p9955_p13 = scmp.lt.u32.totalorder %s9947_s3, %s11476_s5 }
0x1c59   : > { %p9949_p9 = pnand %p9948_p6, %p11692_p1 }
0x1c5a   : > { %p9954_p11 = por %p9953_p8, %p9952_p7 }
0x1c5b   : > { %p9950_p10 = pneg %p9949_p9 }
0x1c5c   : > { %p9956_p2 = por %p9955_p13, %p9954_p11 }
0x1c5e   : > { %p9957_p0 = pnand %p9956_p2, %p9950_p10 }
0x1c60   : > { %9960 = shalt.err (!%p9957_p0)
}
0x1c61   : > { %8494 = dma.vmem_to_hbm [thread:$0]  (%p11692_p1), %s11478_s4, 16, %s11476_s5, %s6970_s2  }
0x1c62 PF: > { %s11693_s10 = sld [smem:[#allocation92_spill]]  ;;  %p8621_p3 = scmp.ge.s32.totalorder %s10047_s1, 2 }
0x1c63   : > { %s6994_s11 = sand.u32 1, %s10035_s28  }
0x1c64   : > { %s6995_s8 = scalar_lea.sflag [#allocation5], %s6994_s11 }
0x1c68   : > { %p11694_p4 = scmp.ne.s32.totalorder %s11693_s10, 0 }
0x1c6a   : > { %p8570_p12 = pnand %p8621_p3, %p11694_p4 }
0x1c6c   : > { %10030 = dma.done.wait (!%p8570_p12), %s6995_s8, 16  }
0x1c6d   : > { %10032 = vsyncadd (!%p8570_p12), %s6995_s8, 4294967280  ;;  %s11695_s1 = sld [smem:[#allocation90_spill]]  ;;  %s11696_s7 = sld [smem:[#allocation89_spill]] }
0x1c6e   : > { %s11697_s6 = sld [smem:[#allocation91_spill]]  ;;  %s11698_s28 = smov %s10039_s0 }
0x1c73   : > { %p106_p5 = scmp.ge.s32.totalorder %s11695_s1, 4   ;;  %s11699_s0 = smov %s11696_s7 }
0x1c75   :  { %108 = sbr.rel (!%p106_p5) target bundleno = 96 (0x60), region = 357 }
0x1c7c   :  { %6999 = vsyncpa [#allocation4], 1 }
0x1c7d   :  { %7001 = vsyncpa [#allocation4 + $0x1], 1 }
0x1c7e   :  { %7002 = vsyncpa [#allocation7], 1 }
0x1c7f   :  { %7003 = vsyncpa [#allocation10], 1 }
0x1c80   :  { %7004 = vsyncpa [#allocation13], 1 }
0x1c81   :  { %7005 = vsyncpa [#allocation16], 1 }
0x1c82   :  { %7006 = vsyncpa [#allocation19], 1 }
0x1c83   :  { %7007 = vsyncpa [#allocation22], 1 }
0x1c84   :  { %7008 = vsyncpa [#allocation25], 1 }
0x1c85   :  { %7009 = vsyncpa [#allocation28], 1 }
0x1c86   :  { %7010 = vsyncpa [#allocation31], 1 }
0x1c87   :  { %7011 = vsyncpa [#allocation34], 1 }
0x1c88   :  { %7012 = vsyncpa [#allocation37], 1 }
0x1c89   :  { %7013 = vsyncpa [#allocation40], 1 }
0x1c8a   :  { %7014 = vsyncpa [#allocation5], 1 }
0x1c8b   :  { %7016 = vsyncpa [#allocation5 + $0x1], 1 }

</bundles_post_ra>
